<compile_context>
chip_gen: v7x
topology: tpu7x:2x2x1
jax: 0.10.0
libtpu: 0.0.40
codegen_flags: <defaults>
</compile_context>

<pallas_src>
import functools
import math

import jax
import jax.numpy as jnp
from jax.experimental import pallas as pl
from jax.experimental.pallas import tpu as pltpu

_LANE = 128


def _round_up(v, m):
    return ((v + m - 1) // m) * m


def _vmem_limit(total_block_bytes):
    # total_block_bytes already includes double-buffer multipliers for pipelined operands.
    # 2x headroom for compiler temporaries; floor 8 MiB; clamp to 56 MiB (< v7x's 64 MiB/TC).
    return int(min(max(2 * int(total_block_bytes) + (2 << 20), 8 << 20), 56 << 20))


# --------- Pass 1: XW = X @ W1  (per-node feature transform, large row tiles) ---------
def _xw_kernel(x_ref, w1_ref, xw_ref):
    xw_ref[...] = jnp.dot(x_ref[...], w1_ref[...],
                          preferred_element_type=jnp.float32).astype(xw_ref.dtype)


# --------- Pass 2: HW = relu(A_hat @ XW + b1) @ W2   (K-tiled aggregation, fused transform) ---------
def _layer1_kernel(adj_ref, xw_ref, b1_ref, w2_ref, hw_ref, acc_ref):
    k = pl.program_id(1)

    @pl.when(k == 0)
    def _():
        acc_ref[...] = jnp.zeros_like(acc_ref)

    # adj_ref: [tm, tk] bf16, xw_ref: [tk, HP] bf16 -> f32 accumulation on the MXU.
    acc_ref[...] += jnp.dot(adj_ref[...], xw_ref[...], preferred_element_type=jnp.float32)

    @pl.when(k == pl.num_programs(1) - 1)
    def _():
        h = jnp.maximum(acc_ref[...] + b1_ref[...], 0.0)   # bias + ReLU in f32
        # TODO(synk): training-mode dropout (pltpu.prng_random_bits mask) not emitted; eval only.
        hw_ref[...] = jnp.dot(h.astype(jnp.bfloat16), w2_ref[...],
                              preferred_element_type=jnp.float32).astype(hw_ref.dtype)


# --------- Pass 3: out = log_softmax(A_hat @ HW + b2)   (K-tiled aggregation, masked softmax) ---------
def _layer2_kernel(adj_ref, hw_ref, b2_ref, out_ref, acc_ref, *, num_classes):
    k = pl.program_id(1)

    @pl.when(k == 0)
    def _():
        acc_ref[...] = jnp.zeros_like(acc_ref)

    acc_ref[...] += jnp.dot(adj_ref[...], hw_ref[...], preferred_element_type=jnp.float32)

    @pl.when(k == pl.num_programs(1) - 1)
    def _():
        z = acc_ref[...] + b2_ref[...]
        lane = jax.lax.broadcasted_iota(jnp.int32, z.shape, 1)
        valid = lane < num_classes                    # mask zero-padded class lanes
        zm = jnp.where(valid, z, jnp.float32(-1e30))
        zmax = jnp.max(zm, axis=1, keepdims=True)
        shifted = zm - zmax
        sumexp = jnp.sum(jnp.where(valid, jnp.exp(shifted), 0.0), axis=1, keepdims=True)
        out_ref[...] = jnp.where(valid, shifted - jnp.log(sumexp), 0.0).astype(out_ref.dtype)


def gcn_forward(x, adj_norm, w1, b1, w2, b2, *, block_rows=256, block_k=512):
    n, f = x.shape
    hid = w1.shape[1]
    c = w2.shape[1]

    tm = block_rows
    tk = block_k
    np_ = _round_up(n, math.lcm(tm, tk))      # rows padded so both tm and tk divide N
    hp = _round_up(hid, _LANE)
    cp = _round_up(c, _LANE)

    # Zero-pad and pre-cast.  Padded rows/cols of A_hat are zero, so real rows are unaffected;
    # padded hidden/class lanes carry zeros and the softmax masks the class padding.
    x_p = jnp.pad(x.astype(jnp.float32), ((0, np_ - n), (0, 0))).astype(jnp.bfloat16)
    adj_p = jnp.pad(adj_norm.astype(jnp.float32),
                    ((0, np_ - n), (0, np_ - n))).astype(jnp.bfloat16)
    w1_p = jnp.pad(w1.astype(jnp.float32), ((0, 0), (0, hp - hid))).astype(jnp.bfloat16)
    b1_p = jnp.pad(b1.astype(jnp.float32).reshape(1, hid), ((0, 0), (0, hp - hid)))
    w2_p = jnp.pad(w2.astype(jnp.float32), ((0, hp - hid), (0, cp - c))).astype(jnp.bfloat16)
    b2_p = jnp.pad(b2.astype(jnp.float32).reshape(1, c), ((0, 0), (0, cp - c)))

    # ---- Pass 1: XW = X @ W1 ----
    # Launch-overhead dominated: use one step for the whole padded N when the X/XW slabs are
    # small, otherwise fall back to tk-sized row tiles (tk divides np_ by construction).
    tm1 = np_ if np_ * (f + hp) * 2 <= (12 << 20) else tk
    xw = pl.pallas_call(
        _xw_kernel,
        out_shape=jax.ShapeDtypeStruct((np_, hp), jnp.bfloat16),
        grid=(np_ // tm1,),
        in_specs=[
            pl.BlockSpec((tm1, f), lambda i: (i, 0)),
            pl.BlockSpec((f, hp), lambda i: (0, 0)),
        ],
        out_specs=pl.BlockSpec((tm1, hp), lambda i: (i, 0)),
        compiler_params=pltpu.CompilerParams(
            dimension_semantics=("parallel",),
            vmem_limit_bytes=_vmem_limit(2 * tm1 * f * 2 + 2 * f * hp * 2 + 2 * tm1 * hp * 2),
        ),
        cost_estimate=pl.CostEstimate(
            flops=2 * np_ * f * hp,
            transcendentals=0,
            bytes_accessed=np_ * f * 2 + f * hp * 2 + np_ * hp * 2,
        ),
    )(x_p, w1_p)

    grid = (np_ // tm, np_ // tk)
    adj_block_bytes = 2 * tm * tk * 2

    # ---- Pass 2: HW = relu(A_hat @ XW + b1) @ W2 ----
    hw = pl.pallas_call(
        _layer1_kernel,
        out_shape=jax.ShapeDtypeStruct((np_, cp), jnp.bfloat16),
        grid=grid,
        in_specs=[
            pl.BlockSpec((tm, tk), lambda i, k: (i, k)),   # adjacency tile (pipelined)
            pl.BlockSpec((tk, hp), lambda i, k: (k, 0)),   # matching XW K-slab
            pl.BlockSpec((1, hp), lambda i, k: (0, 0)),
            pl.BlockSpec((hp, cp), lambda i, k: (0, 0)),
        ],
        out_specs=pl.BlockSpec((tm, cp), lambda i, k: (i, 0)),
        scratch_shapes=[pltpu.VMEM((tm, hp), jnp.float32)],
        compiler_params=pltpu.CompilerParams(
            dimension_semantics=("parallel", "arbitrary"),
            vmem_limit_bytes=_vmem_limit(
                adj_block_bytes + 2 * tk * hp * 2 + hp * 4 + hp * cp * 2
                + 2 * tm * cp * 2 + tm * hp * 4),
        ),
        cost_estimate=pl.CostEstimate(
            flops=2 * np_ * np_ * hp + 2 * np_ * hp * cp,
            transcendentals=0,
            bytes_accessed=np_ * np_ * 2 + (np_ // tm) * np_ * hp * 2 + hp * cp * 2 + np_ * cp * 2,
        ),
    )(adj_p, xw, b1_p, w2_p)

    # ---- Pass 3: out = log_softmax(A_hat @ HW + b2) ----
    out_p = pl.pallas_call(
        functools.partial(_layer2_kernel, num_classes=c),
        out_shape=jax.ShapeDtypeStruct((np_, cp), jnp.float32),
        grid=grid,
        in_specs=[
            pl.BlockSpec((tm, tk), lambda i, k: (i, k)),   # adjacency tile (pipelined)
            pl.BlockSpec((tk, cp), lambda i, k: (k, 0)),   # matching HW K-slab
            pl.BlockSpec((1, cp), lambda i, k: (0, 0)),
        ],
        out_specs=pl.BlockSpec((tm, cp), lambda i, k: (i, 0)),
        scratch_shapes=[pltpu.VMEM((tm, cp), jnp.float32)],
        compiler_params=pltpu.CompilerParams(
            dimension_semantics=("parallel", "arbitrary"),
            vmem_limit_bytes=_vmem_limit(
                adj_block_bytes + 2 * tk * cp * 2 + cp * 4 + 2 * tm * cp * 4 + tm * cp * 4),
        ),
        cost_estimate=pl.CostEstimate(
            flops=2 * np_ * np_ * cp + 8 * np_ * cp,
            transcendentals=np_ * cp + np_,
            bytes_accessed=np_ * np_ * 2 + (np_ // tm) * np_ * cp * 2 + np_ * cp * 4,
        ),
    )(adj_p, hw, b2_p)

    return out_p[:n, :c]


def build_normalized_adj(edge_index, num_nodes):
    """Dense A_hat = D^{-1/2} (A + I) D^{-1/2} matching PyG gcn_norm (add_remaining_self_loops).

    A[dst, src] accumulates per edge (duplicates add); self-loops (weight 1) added only where missing.
    """
    src, dst = edge_index[0], edge_index[1]
    adj = jnp.zeros((num_nodes, num_nodes), jnp.float32)
    adj = adj.at[dst, src].add(1.0)                       # aggregate source features at target row
    diag = jnp.diagonal(adj)
    adj = adj + jnp.diag(jnp.where(diag == 0, 1.0, 0.0))  # remaining self-loops
    deg = jnp.sum(adj, axis=1)
    deg_inv_sqrt = jnp.where(deg > 0, 1.0 / jnp.sqrt(deg), 0.0)
    return deg_inv_sqrt[:, None] * adj * deg_inv_sqrt[None, :]


def glorot(key, shape):
    fan_in, fan_out = shape
    limit = jnp.sqrt(6.0 / (fan_in + fan_out))
    return jax.random.uniform(key, shape, jnp.float32, -limit, limit)


if __name__ == "__main__":
    key = jax.random.PRNGKey(0)
    k_x, k_e, k_w1, k_w2 = jax.random.split(key, 4)

    # Small synthetic graph consistent with Net: dataIfo = (num_features, num_classes)
    num_nodes = 64
    num_features = 32
    hidden = 16
    num_classes = 8
    num_edges = 256

    x = jax.random.normal(k_x, (num_nodes, num_features), jnp.float32)
    edge_index = jax.random.randint(k_e, (2, num_edges), 0, num_nodes, jnp.int32)

    # Deterministic GCNConv parameters: glorot weights, zero biases.
    w1 = glorot(k_w1, (num_features, hidden))
    b1 = jnp.zeros((1, hidden), jnp.float32)
    w2 = glorot(k_w2, (hidden, num_classes))
    b2 = jnp.zeros((1, num_classes), jnp.float32)

    adj_norm = build_normalized_adj(edge_index, num_nodes)

    out = jax.block_until_ready(jax.jit(gcn_forward)(x, adj_norm, w1, b1, w2, b2))
    assert out.shape == (num_nodes, num_classes)

    # Reference 1: plain-JAX forward with the same bf16 operand casts (tight check).
    bf = lambda a: a.astype(jnp.bfloat16)
    xw_r = jnp.dot(bf(x), bf(w1), preferred_element_type=jnp.float32).astype(jnp.bfloat16)
    h_r = jnp.maximum(jnp.dot(bf(adj_norm), xw_r, preferred_element_type=jnp.float32) + b1, 0.0)
    hw_r = jnp.dot(bf(h_r), bf(w2), preferred_element_type=jnp.float32).astype(jnp.bfloat16)
    z_r = jnp.dot(bf(adj_norm), hw_r, preferred_element_type=jnp.float32) + b2
    ref_bf16 = jax.nn.log_softmax(z_r, axis=1)
    assert jnp.allclose(out, ref_bf16, atol=1e-2, rtol=1e-2), "mismatch vs bf16-mirrored JAX reference"

    # Reference 2: pure f32 forward (loose check bounding the bf16 quantization error).
    h32 = jnp.maximum(adj_norm @ (x @ w1) + b1, 0.0)
    z32 = adj_norm @ (h32 @ w2) + b2
    ref_f32 = jax.nn.log_softmax(z32, axis=1)
    assert jnp.allclose(out, ref_f32, atol=1.5e-1, rtol=1.5e-1), "mismatch vs f32 JAX reference"

    print("KERNEL_OK")
</pallas_src>

<mosaic_0001>
module attributes {stable_mosaic.version = 11 : i64} {
  func.func @_layer1_kernel(%arg0: i32, %arg1: i32, %arg2: memref<256x512xbf16, #tpu.memory_space<vmem>>, %arg3: memref<512x128xbf16, #tpu.memory_space<vmem>>, %arg4: memref<1x128xf32, #tpu.memory_space<vmem>>, %arg5: memref<128x128xbf16, #tpu.memory_space<vmem>>, %arg6: memref<256x128xbf16, #tpu.memory_space<vmem>>, %arg7: memref<256x128xf32, #tpu.memory_space<vmem>>) attributes {dimension_semantics = [#tpu.dimension_semantics<parallel>, #tpu.dimension_semantics<arbitrary>], iteration_bounds = array<i64: 2, 1>, scalar_prefetch = 0 : i64, scratch_operands = 1 : i64, tpu.core_type = #tpu.core_type<tc>, window_params = [{transform_indices = @transform_0, window_bounds = array<i64: 256, 512>}, {transform_indices = @transform_1, window_bounds = array<i64: 512, 128>}, {pipeline_mode = #tpu.pipeline_mode<synchronous>, transform_indices = @transform_2, window_bounds = array<i64: 1, 128>}, {pipeline_mode = #tpu.pipeline_mode<synchronous>, transform_indices = @transform_3, window_bounds = array<i64: 128, 128>}, {transform_indices = @transform_4, window_bounds = array<i64: 256, 128>}]} {
    %c0_i32 = arith.constant 0 : i32
    %0 = arith.cmpi eq, %arg1, %c0_i32 : i32
    %1 = arith.extui %0 : i1 to i32
    %c0_i32_0 = arith.constant 0 : i32
    %2 = arith.cmpi ne, %1, %c0_i32_0 : i32
    scf.if %2 {
      %cst_10 = arith.constant 0.000000e+00 : f32
      %12 = vector.broadcast %cst_10 : f32 to vector<256x128xf32>
      %c0_11 = arith.constant 0 : index
      %c0_12 = arith.constant 0 : index
      %13 = vector.load %arg7[%c0_11, %c0_12] : memref<256x128xf32, #tpu.memory_space<vmem>>, vector<256x128xf32>
      tpu.vector_store %arg7[%c0_11, %c0_12], %12 {strides = array<i32>} : memref<256x128xf32, #tpu.memory_space<vmem>>, vector<256x128xf32>,
    } else {
    }
    %c0 = arith.constant 0 : index
    %c0_1 = arith.constant 0 : index
    %3 = vector.load %arg7[%c0, %c0_1] : memref<256x128xf32, #tpu.memory_space<vmem>>, vector<256x128xf32>
    %c0_2 = arith.constant 0 : index
    %c0_3 = arith.constant 0 : index
    %4 = vector.load %arg2[%c0_2, %c0_3] : memref<256x512xbf16, #tpu.memory_space<vmem>>, vector<256x512xbf16>
    %c0_4 = arith.constant 0 : index
    %c0_5 = arith.constant 0 : index
    %5 = vector.load %arg3[%c0_4, %c0_5] : memref<512x128xbf16, #tpu.memory_space<vmem>>, vector<512x128xbf16>
    %cst = arith.constant dense<0.000000e+00> : vector<256x128xf32>
    %6 = tpu.matmul %4, %5, %cst {dimension_numbers = #tpu.dot_dimension_numbers<[1], [0], [0], [1], [0, 0, 1, 1], [], []>} : vector<256x512xbf16>, vector<512x128xbf16>, vector<256x128xf32> -> vector<256x128xf32>
    %7 = arith.addf %3, %6 : vector<256x128xf32>
    %c0_6 = arith.constant 0 : index
    %c0_7 = arith.constant 0 : index
    %8 = vector.load %arg7[%c0_6, %c0_7] : memref<256x128xf32, #tpu.memory_space<vmem>>, vector<256x128xf32>
    tpu.vector_store %arg7[%c0_6, %c0_7], %7 {strides = array<i32>} : memref<256x128xf32, #tpu.memory_space<vmem>>, vector<256x128xf32>,
    %c0_i32_8 = arith.constant 0 : i32
    %9 = arith.cmpi eq, %arg1, %c0_i32_8 : i32
    %10 = arith.extui %9 : i1 to i32
    %c0_i32_9 = arith.constant 0 : i32
    %11 = arith.cmpi ne, %10, %c0_i32_9 : i32
    scf.if %11 {
      %c0_10 = arith.constant 0 : index
      %c0_11 = arith.constant 0 : index
      %12 = vector.load %arg7[%c0_10, %c0_11] : memref<256x128xf32, #tpu.memory_space<vmem>>, vector<256x128xf32>
      %c0_12 = arith.constant 0 : index
      %c0_13 = arith.constant 0 : index
      %13 = vector.load %arg4[%c0_12, %c0_13] : memref<1x128xf32, #tpu.memory_space<vmem>>, vector<1x128xf32>
      %14 = vector.broadcast %13 : vector<1x128xf32> to vector<256x128xf32>
      %15 = arith.addf %12, %14 : vector<256x128xf32>
      %cst_14 = arith.constant 0.000000e+00 : f32
      %16 = vector.broadcast %cst_14 : f32 to vector<256x128xf32>
      %17 = arith.maximumf %15, %16 : vector<256x128xf32>
      %18 = arith.truncf %17 : vector<256x128xf32> to vector<256x128xbf16>
      %c0_15 = arith.constant 0 : index
      %c0_16 = arith.constant 0 : index
      %19 = vector.load %arg5[%c0_15, %c0_16] : memref<128x128xbf16, #tpu.memory_space<vmem>>, vector<128x128xbf16>
      %cst_17 = arith.constant dense<0.000000e+00> : vector<256x128xf32>
      %20 = tpu.matmul %18, %19, %cst_17 {dimension_numbers = #tpu.dot_dimension_numbers<[1], [0], [0], [1], [0, 0, 1, 1], [], []>} : vector<256x128xbf16>, vector<128x128xbf16>, vector<256x128xf32> -> vector<256x128xf32>
      %21 = arith.truncf %20 : vector<256x128xf32> to vector<256x128xbf16>
      %c0_18 = arith.constant 0 : index
      %c0_19 = arith.constant 0 : index
      %22 = vector.load %arg6[%c0_18, %c0_19] : memref<256x128xbf16, #tpu.memory_space<vmem>>, vector<256x128xbf16>
      tpu.vector_store %arg6[%c0_18, %c0_19], %21 {strides = array<i32>} : memref<256x128xbf16, #tpu.memory_space<vmem>>, vector<256x128xbf16>,
    } else {
    }
    return
  }
  func.func @transform_0(%arg0: i32, %arg1: i32) -> (i32, i32) {
    %c0_i32 = arith.constant 0 : i32
    return %arg0, %arg1 : i32, i32
  }
  func.func @transform_1(%arg0: i32, %arg1: i32) -> (i32, i32) {
    %c0_i32 = arith.constant 0 : i32
    %c0_i32_0 = arith.constant 0 : i32
    return %arg1, %c0_i32 : i32, i32
  }
  func.func @transform_2(%arg0: i32, %arg1: i32) -> (i32, i32) {
    %c0_i32 = arith.constant 0 : i32
    %c0_i32_0 = arith.constant 0 : i32
    %c0_i32_1 = arith.constant 0 : i32
    return %c0_i32, %c0_i32_0 : i32, i32
  }
  func.func @transform_3(%arg0: i32, %arg1: i32) -> (i32, i32) {
    %c0_i32 = arith.constant 0 : i32
    %c0_i32_0 = arith.constant 0 : i32
    %c0_i32_1 = arith.constant 0 : i32
    return %c0_i32, %c0_i32_0 : i32, i32
  }
  func.func @transform_4(%arg0: i32, %arg1: i32) -> (i32, i32) {
    %c0_i32 = arith.constant 0 : i32
    %c0_i32_0 = arith.constant 0 : i32
    return %arg0, %c0_i32 : i32, i32
  }
}

module attributes {stable_mosaic.version = 11 : i64} {
  func.func @_layer2_kernel(%arg0: i32, %arg1: i32, %arg2: memref<256x512xbf16, #tpu.memory_space<vmem>>, %arg3: memref<512x128xbf16, #tpu.memory_space<vmem>>, %arg4: memref<1x128xf32, #tpu.memory_space<vmem>>, %arg5: memref<256x128xf32, #tpu.memory_space<vmem>>, %arg6: memref<256x128xf32, #tpu.memory_space<vmem>>) attributes {dimension_semantics = [#tpu.dimension_semantics<parallel>, #tpu.dimension_semantics<arbitrary>], iteration_bounds = array<i64: 2, 1>, scalar_prefetch = 0 : i64, scratch_operands = 1 : i64, tpu.core_type = #tpu.core_type<tc>, window_params = [{transform_indices = @transform_0, window_bounds = array<i64: 256, 512>}, {transform_indices = @transform_1, window_bounds = array<i64: 512, 128>}, {pipeline_mode = #tpu.pipeline_mode<synchronous>, transform_indices = @transform_2, window_bounds = array<i64: 1, 128>}, {transform_indices = @transform_3, window_bounds = array<i64: 256, 128>}]} {
    %c0_i32 = arith.constant 0 : i32
    %0 = arith.cmpi eq, %arg1, %c0_i32 : i32
    %1 = arith.extui %0 : i1 to i32
    %c0_i32_0 = arith.constant 0 : i32
    %2 = arith.cmpi ne, %1, %c0_i32_0 : i32
    scf.if %2 {
      %cst_10 = arith.constant 0.000000e+00 : f32
      %12 = vector.broadcast %cst_10 : f32 to vector<256x128xf32>
      %c0_11 = arith.constant 0 : index
      %c0_12 = arith.constant 0 : index
      %13 = vector.load %arg6[%c0_11, %c0_12] : memref<256x128xf32, #tpu.memory_space<vmem>>, vector<256x128xf32>
      tpu.vector_store %arg6[%c0_11, %c0_12], %12 {strides = array<i32>} : memref<256x128xf32, #tpu.memory_space<vmem>>, vector<256x128xf32>,
    } else {
    }
    %c0 = arith.constant 0 : index
    %c0_1 = arith.constant 0 : index
    %3 = vector.load %arg6[%c0, %c0_1] : memref<256x128xf32, #tpu.memory_space<vmem>>, vector<256x128xf32>
    %c0_2 = arith.constant 0 : index
    %c0_3 = arith.constant 0 : index
    %4 = vector.load %arg2[%c0_2, %c0_3] : memref<256x512xbf16, #tpu.memory_space<vmem>>, vector<256x512xbf16>
    %c0_4 = arith.constant 0 : index
    %c0_5 = arith.constant 0 : index
    %5 = vector.load %arg3[%c0_4, %c0_5] : memref<512x128xbf16, #tpu.memory_space<vmem>>, vector<512x128xbf16>
    %cst = arith.constant dense<0.000000e+00> : vector<256x128xf32>
    %6 = tpu.matmul %4, %5, %cst {dimension_numbers = #tpu.dot_dimension_numbers<[1], [0], [0], [1], [0, 0, 1, 1], [], []>} : vector<256x512xbf16>, vector<512x128xbf16>, vector<256x128xf32> -> vector<256x128xf32>
    %7 = arith.addf %3, %6 : vector<256x128xf32>
    %c0_6 = arith.constant 0 : index
    %c0_7 = arith.constant 0 : index
    %8 = vector.load %arg6[%c0_6, %c0_7] : memref<256x128xf32, #tpu.memory_space<vmem>>, vector<256x128xf32>
    tpu.vector_store %arg6[%c0_6, %c0_7], %7 {strides = array<i32>} : memref<256x128xf32, #tpu.memory_space<vmem>>, vector<256x128xf32>,
    %c0_i32_8 = arith.constant 0 : i32
    %9 = arith.cmpi eq, %arg1, %c0_i32_8 : i32
    %10 = arith.extui %9 : i1 to i32
    %c0_i32_9 = arith.constant 0 : i32
    %11 = arith.cmpi ne, %10, %c0_i32_9 : i32
    scf.if %11 {
      %c0_10 = arith.constant 0 : index
      %c0_11 = arith.constant 0 : index
      %12 = vector.load %arg6[%c0_10, %c0_11] : memref<256x128xf32, #tpu.memory_space<vmem>>, vector<256x128xf32>
      %c0_12 = arith.constant 0 : index
      %c0_13 = arith.constant 0 : index
      %13 = vector.load %arg4[%c0_12, %c0_13] : memref<1x128xf32, #tpu.memory_space<vmem>>, vector<1x128xf32>
      %14 = vector.broadcast %13 : vector<1x128xf32> to vector<256x128xf32>
      %15 = arith.addf %12, %14 : vector<256x128xf32>
      %16 = tpu.iota {dimensions = array<i32: 1>} : vector<256x128xi32>
      %c8_i32 = arith.constant 8 : i32
      %17 = vector.broadcast %c8_i32 : i32 to vector<256x128xi32>
      %18 = arith.cmpi slt, %16, %17 : vector<256x128xi32>
      %cst_14 = arith.constant -1.000000e+30 : f32
      %19 = vector.broadcast %cst_14 : f32 to vector<256x128xf32>
      %20 = arith.select %18, %15, %19 : vector<256x128xi1>, vector<256x128xf32>
      %cst_15 = arith.constant dense<0xFF800000> : vector<256xf32>
      %21 = vector.multi_reduction <maximumf>, %20, %cst_15 [1] : vector<256x128xf32> to vector<256xf32>
      %22 = vector.shape_cast %21 : vector<256xf32> to vector<256x1xf32>
      %23 = vector.broadcast %22 : vector<256x1xf32> to vector<256x128xf32>
      %24 = arith.subf %20, %23 : vector<256x128xf32>
      %25 = math.exp %24 : vector<256x128xf32>
      %cst_16 = arith.constant 0.000000e+00 : f32
      %26 = vector.broadcast %cst_16 : f32 to vector<256x128xf32>
      %27 = arith.select %18, %25, %26 : vector<256x128xi1>, vector<256x128xf32>
      %cst_17 = arith.constant dense<0.000000e+00> : vector<256xf32>
      %28 = vector.multi_reduction <add>, %27, %cst_17 [1] : vector<256x128xf32> to vector<256xf32>
      %29 = vector.shape_cast %28 : vector<256xf32> to vector<256x1xf32>
      %30 = math.log %29 : vector<256x1xf32>
      %31 = vector.broadcast %30 : vector<256x1xf32> to vector<256x128xf32>
      %32 = arith.subf %24, %31 : vector<256x128xf32>
      %cst_18 = arith.constant 0.000000e+00 : f32
      %33 = vector.broadcast %cst_18 : f32 to vector<256x128xf32>
      %34 = arith.select %18, %32, %33 : vector<256x128xi1>, vector<256x128xf32>
      %c0_19 = arith.constant 0 : index
      %c0_20 = arith.constant 0 : index
      %35 = vector.load %arg5[%c0_19, %c0_20] : memref<256x128xf32, #tpu.memory_space<vmem>>, vector<256x128xf32>
      tpu.vector_store %arg5[%c0_19, %c0_20], %34 {strides = array<i32>} : memref<256x128xf32, #tpu.memory_space<vmem>>, vector<256x128xf32>,
    } else {
    }
    return
  }
  func.func @transform_0(%arg0: i32, %arg1: i32) -> (i32, i32) {
    %c0_i32 = arith.constant 0 : i32
    return %arg0, %arg1 : i32, i32
  }
  func.func @transform_1(%arg0: i32, %arg1: i32) -> (i32, i32) {
    %c0_i32 = arith.constant 0 : i32
    %c0_i32_0 = arith.constant 0 : i32
    return %arg1, %c0_i32 : i32, i32
  }
  func.func @transform_2(%arg0: i32, %arg1: i32) -> (i32, i32) {
    %c0_i32 = arith.constant 0 : i32
    %c0_i32_0 = arith.constant 0 : i32
    %c0_i32_1 = arith.constant 0 : i32
    return %c0_i32, %c0_i32_0 : i32, i32
  }
  func.func @transform_3(%arg0: i32, %arg1: i32) -> (i32, i32) {
    %c0_i32 = arith.constant 0 : i32
    %c0_i32_0 = arith.constant 0 : i32
    return %arg0, %c0_i32 : i32, i32
  }
}

module attributes {stable_mosaic.version = 11 : i64} {
  func.func @_xw_kernel(%arg0: i32, %arg1: memref<512x32xbf16, #tpu.memory_space<vmem>>, %arg2: memref<32x128xbf16, #tpu.memory_space<vmem>>, %arg3: memref<512x128xbf16, #tpu.memory_space<vmem>>) attributes {dimension_semantics = [#tpu.dimension_semantics<parallel>], iteration_bounds = array<i64: 1>, scalar_prefetch = 0 : i64, scratch_operands = 0 : i64, tpu.core_type = #tpu.core_type<tc>, window_params = [{transform_indices = @transform_0, window_bounds = array<i64: 512, 32>}, {pipeline_mode = #tpu.pipeline_mode<synchronous>, transform_indices = @transform_1, window_bounds = array<i64: 32, 128>}, {transform_indices = @transform_2, window_bounds = array<i64: 512, 128>}]} {
    %c0 = arith.constant 0 : index
    %c0_0 = arith.constant 0 : index
    %0 = vector.load %arg1[%c0, %c0_0] : memref<512x32xbf16, #tpu.memory_space<vmem>>, vector<512x32xbf16>
    %c0_1 = arith.constant 0 : index
    %c0_2 = arith.constant 0 : index
    %1 = vector.load %arg2[%c0_1, %c0_2] : memref<32x128xbf16, #tpu.memory_space<vmem>>, vector<32x128xbf16>
    %cst = arith.constant dense<0.000000e+00> : vector<512x128xf32>
    %2 = tpu.matmul %0, %1, %cst {dimension_numbers = #tpu.dot_dimension_numbers<[1], [0], [0], [1], [0, 0, 1, 1], [], []>} : vector<512x32xbf16>, vector<32x128xbf16>, vector<512x128xf32> -> vector<512x128xf32>
    %3 = arith.truncf %2 : vector<512x128xf32> to vector<512x128xbf16>
    %c0_3 = arith.constant 0 : index
    %c0_4 = arith.constant 0 : index
    %4 = vector.load %arg3[%c0_3, %c0_4] : memref<512x128xbf16, #tpu.memory_space<vmem>>, vector<512x128xbf16>
    tpu.vector_store %arg3[%c0_3, %c0_4], %3 {strides = array<i32>} : memref<512x128xbf16, #tpu.memory_space<vmem>>, vector<512x128xbf16>,
    return
  }
  func.func @transform_0(%arg0: i32) -> (i32, i32) {
    %c0_i32 = arith.constant 0 : i32
    %c0_i32_0 = arith.constant 0 : i32
    return %arg0, %c0_i32 : i32, i32
  }
  func.func @transform_1(%arg0: i32) -> (i32, i32) {
    %c0_i32 = arith.constant 0 : i32
    %c0_i32_0 = arith.constant 0 : i32
    %c0_i32_1 = arith.constant 0 : i32
    return %c0_i32, %c0_i32_0 : i32, i32
  }
  func.func @transform_2(%arg0: i32) -> (i32, i32) {
    %c0_i32 = arith.constant 0 : i32
    %c0_i32_0 = arith.constant 0 : i32
    return %arg0, %c0_i32 : i32, i32
  }
}

</mosaic_0001>

<bundles_post_ra>
// kernel: gcn_forward.3
= control target key start
LH: loop header
LB: loop body
LE: loop exit
PB: predicated region body
PF: predicated region fallthrough
CT: control target
= control target key end

     0   :  { %vm252_vm0 = vcmask 261120   ;;  %s1732_s1 = inlined_call_operand.vmem [shape: bf16[32,128], index: 1, kind: input, shape index: {}]   ;;  %s1733_s0 = inlined_call_operand.vmem [shape: bf16[512,32], index: 0, kind: input, shape index: {}]   ;;  %s1734_s2 = inlined_call_operand.vmem [shape: bf16[512,128], index: 2, kind: output, shape index: {}]  }
   0x1   :  { %v1453_v0 = vld [vmem:[%s1732_s1] sm:$0xff]   ;;  %v1454_v1 = vld [vmem:[%s1732_s1 + $0x8] sm:$0xff]   ;;  %v1459_v6 = vld [vmem:[%s1733_s0 + $0x10] sm:$0xff]  }
   0x2   :  { %1381 = vmatprep.subr.bf16.mxu0 %v1453_v0  ;;  %1449 = vmatprep.subr.bf16.mxu1 %v1453_v0  ;;  %v1455_v2 = vld [vmem:[%s1733_s0] sm:$0xff]   ;;  %v1457_v4 = vld [vmem:[%s1733_s0 + $0x8] sm:$0xff]   ;;  %v1460_v7 = vld [vmem:[%s1733_s0 + $0x90] sm:$0xff]  }
   0x3   :  { %1382 = vmatpush3.bf16.msra.mxu0 %v1453_v0  ;;  %1451 = vmatpush3.bf16.msra.mxu1 %v1453_v0  ;;  %v1456_v3 = vld [vmem:[%s1733_s0 + $0x80] sm:$0xff]   ;;  %v1458_v5 = vld [vmem:[%s1733_s0 + $0x88] sm:$0xff]   ;;  %v1461_v8 = vld [vmem:[%s1733_s0 + $0x18] sm:$0xff]  }
   0x4   :  { %1383 = vmatprep.subr.bf16.mxu0 %v1454_v1  ;;  %1450 = vmatprep.subr.bf16.mxu1 %v1454_v1  ;;  %v1462_v9 = vld [vmem:[%s1733_s0 + $0x98] sm:$0xff]   ;;  %v1463_v10 = vld [vmem:[%s1733_s0 + $0x20] sm:$0xff]   ;;  %v1465_v12 = vld [vmem:[%s1733_s0 + $0x28] sm:$0xff]  }
   0x5   :  { %1385 = vmatprep.mubr.msk.bf16.mxu0 %vm252_vm0, %v1455_v2  ;;  %1417 = vmatprep.mubr.msk.bf16.mxu1 %vm252_vm0, %v1456_v3  ;;  %v1464_v11 = vld [vmem:[%s1733_s0 + $0xa0] sm:$0xff]   ;;  %v1466_v13 = vld [vmem:[%s1733_s0 + $0xa8] sm:$0xff]   ;;  %v1467_v14 = vld [vmem:[%s1733_s0 + $0x30] sm:$0xff]  }
   0x6   :  { %v1468_v15 = vld [vmem:[%s1733_s0 + $0xb0] sm:$0xff]   ;;  %v1469_v16 = vld [vmem:[%s1733_s0 + $0x38] sm:$0xff]   ;;  %v1471_v18 = vld [vmem:[%s1733_s0 + $0x40] sm:$0xff]  }
   0x7   :  { %1384 = vmatpush3.bf16.msra.mxu0 %v1454_v1  ;;  %1452 = vmatpush3.bf16.msra.mxu1 %v1454_v1  ;;  %v1470_v17 = vld [vmem:[%s1733_s0 + $0xb8] sm:$0xff]   ;;  %v1472_v19 = vld [vmem:[%s1733_s0 + $0xc0] sm:$0xff]   ;;  %v1473_v20 = vld [vmem:[%s1733_s0 + $0x48] sm:$0xff]  }
   0x8   :  { %v1474_v21 = vld [vmem:[%s1733_s0 + $0xc8] sm:$0xff]   ;;  %v1475_v22 = vld [vmem:[%s1733_s0 + $0x50] sm:$0xff]   ;;  %v1477_v24 = vld [vmem:[%s1733_s0 + $0x58] sm:$0xff]  }
   0x9   :  { %v1476_v23 = vld [vmem:[%s1733_s0 + $0xd0] sm:$0xff]   ;;  %v1478_v25 = vld [vmem:[%s1733_s0 + $0xd8] sm:$0xff]   ;;  %v1479_v26 = vld [vmem:[%s1733_s0 + $0x60] sm:$0xff]  }
   0xa   :  { %1386 = vmatmul.mubr.msk.bf16.vlgmr.msra.gmra.mrb[0].mxu0 %vm252_vm0, %v1457_v4  ;;  %1418 = vmatmul.mubr.msk.bf16.vlgmr.msra.gmra.mrb[0].mxu1 %vm252_vm0, %v1458_v5  ;;  %v1480_v27 = vld [vmem:[%s1733_s0 + $0xe0] sm:$0xff]   ;;  %v1481_v28 = vld [vmem:[%s1733_s0 + $0x68] sm:$0xff]   ;;  %v1483_v30 = vld [vmem:[%s1733_s0 + $0x70] sm:$0xff]  }
   0xb   :  { %1389 = vmatprep.mubr.msk.bf16.mxu0 %vm252_vm0, %v1459_v6  ;;  %1421 = vmatprep.mubr.msk.bf16.mxu1 %vm252_vm0, %v1460_v7  ;;  %v1482_v29 = vld [vmem:[%s1733_s0 + $0xe8] sm:$0xff]   ;;  %v1484_v31 = vld [vmem:[%s1733_s0 + $0xf0] sm:$0xff]   ;;  %v1485_v32 = vld [vmem:[%s1733_s0 + $0x78] sm:$0xff]  }
   0xc   :  { %v1486_v33 = vld [vmem:[%s1733_s0 + $0xf8] sm:$0xff]  }
  0x12   :  { %1390 = vmatmul.mubr.msk.bf16.gmra.mrb[4].mxu0 %vm252_vm0, %v1461_v8  ;;  %1422 = vmatmul.mubr.msk.bf16.gmra.mrb[4].mxu1 %vm252_vm0, %v1462_v9 }
  0x13   :  { %1393 = vmatprep.mubr.msk.bf16.mxu0 %vm252_vm0, %v1463_v10  ;;  %1425 = vmatprep.mubr.msk.bf16.mxu1 %vm252_vm0, %v1464_v11 }
  0x1a   :  { %1394 = vmatmul.mubr.msk.bf16.gmra.mrb[8].mxu0 %vm252_vm0, %v1465_v12  ;;  %1426 = vmatmul.mubr.msk.bf16.gmra.mrb[8].mxu1 %vm252_vm0, %v1466_v13 }
  0x1b   :  { %1397 = vmatprep.mubr.msk.bf16.mxu0 %vm252_vm0, %v1467_v14  ;;  %1429 = vmatprep.mubr.msk.bf16.mxu1 %vm252_vm0, %v1468_v15 }
  0x22   :  { %1398 = vmatmul.mubr.msk.bf16.gmra.mrb[12].mxu0 %vm252_vm0, %v1469_v16  ;;  %1430 = vmatmul.mubr.msk.bf16.gmra.mrb[12].mxu1 %vm252_vm0, %v1470_v17 }
  0x23   :  { %1401 = vmatprep.mubr.msk.bf16.mxu0 %vm252_vm0, %v1471_v18  ;;  %1433 = vmatprep.mubr.msk.bf16.mxu1 %vm252_vm0, %v1472_v19 }
  0x2a   :  { %1402 = vmatmul.mubr.msk.bf16.gmra.mrb[16].mxu0 %vm252_vm0, %v1473_v20  ;;  %1434 = vmatmul.mubr.msk.bf16.gmra.mrb[16].mxu1 %vm252_vm0, %v1474_v21 }
  0x2b   :  { %1405 = vmatprep.mubr.msk.bf16.mxu0 %vm252_vm0, %v1475_v22  ;;  %1437 = vmatprep.mubr.msk.bf16.mxu1 %vm252_vm0, %v1476_v23 }
  0x32   :  { %1406 = vmatmul.mubr.msk.bf16.gmra.mrb[20].mxu0 %vm252_vm0, %v1477_v24  ;;  %1438 = vmatmul.mubr.msk.bf16.gmra.mrb[20].mxu1 %vm252_vm0, %v1478_v25 }
  0x33   :  { %1409 = vmatprep.mubr.msk.bf16.mxu0 %vm252_vm0, %v1479_v26  ;;  %1441 = vmatprep.mubr.msk.bf16.mxu1 %vm252_vm0, %v1480_v27 }
  0x3a   :  { %1410 = vmatmul.mubr.msk.bf16.gmra.mrb[24].mxu0 %vm252_vm0, %v1481_v28  ;;  %1442 = vmatmul.mubr.msk.bf16.gmra.mrb[24].mxu1 %vm252_vm0, %v1482_v29 }
  0x3b   :  { %1413 = vmatprep.mubr.msk.bf16.mxu0 %vm252_vm0, %v1483_v30  ;;  %1445 = vmatprep.mubr.msk.bf16.mxu1 %vm252_vm0, %v1484_v31 }
  0x42   :  { %1414 = vmatmul.mubr.msk.bf16.gmra.mrb[28].mxu0 %vm252_vm0, %v1485_v32  ;;  %1446 = vmatmul.mubr.msk.bf16.gmra.mrb[28].mxu1 %vm252_vm0, %v1486_v33 }
  0xdd   :  { %v1387_v34 = vpop.f32.mrb[0].mxu0  ;;  %v1419_v35 = vpop.f32.mrb[0].mxu1 }
  0xde   :  { %v383_v36 = vpop.f32.mrb[1].mxu0  ;;  %v511_v37 = vpop.f32.mrb[1].mxu1 }
  0xdf   :  { %v1388_v38 = vpop.f32.mrb[2].mxu0  ;;  %v1420_v39 = vpop.f32.mrb[2].mxu1 }
  0xe0   :  { %v1164_v40 = vpack.c.bf16 %v1388_v38, %v1387_v34  ;;  %v1244_v41 = vpack.c.bf16 %v1420_v39, %v1419_v35  ;;  %v386_v42 = vpop.f32.mrb[3].mxu0  ;;  %v514_v43 = vpop.f32.mrb[3].mxu1 }
  0xe1   :  { %v1159_v44 = vpack.c.bf16 %v386_v42, %v383_v36  ;;  %v1239_v45 = vpack.c.bf16 %v514_v43, %v511_v37 }
  0xe2   :  { %1316 = vst [vmem:[%s1734_s2 + $0x8] sm:$0xff] %v1164_v40   ;;  %1332 = vst [vmem:[%s1734_s2 + $0x88] sm:$0xff] %v1244_v41  }
  0xe3   :  { %1160 = vst [vmem:[%s1734_s2] sm:$0xff] %v1159_v44   ;;  %1331 = vst [vmem:[%s1734_s2 + $0x80] sm:$0xff] %v1239_v45  }
  0xe5   :  { %v1391_v46 = vpop.f32.mrb[4].mxu0  ;;  %v1423_v47 = vpop.f32.mrb[4].mxu1 }
  0xe6   :  { %v399_v48 = vpop.f32.mrb[5].mxu0  ;;  %v527_v49 = vpop.f32.mrb[5].mxu1 }
  0xe7   :  { %v1392_v50 = vpop.f32.mrb[6].mxu0  ;;  %v1424_v51 = vpop.f32.mrb[6].mxu1 }
  0xe8   :  { %v1174_v52 = vpack.c.bf16 %v1392_v50, %v1391_v46  ;;  %v1254_v53 = vpack.c.bf16 %v1424_v51, %v1423_v47  ;;  %v402_v54 = vpop.f32.mrb[7].mxu0  ;;  %v530_v55 = vpop.f32.mrb[7].mxu1 }
  0xe9   :  { %v1169_v56 = vpack.c.bf16 %v402_v54, %v399_v48  ;;  %v1249_v57 = vpack.c.bf16 %v530_v55, %v527_v49 }
  0xea   :  { %1318 = vst [vmem:[%s1734_s2 + $0x18] sm:$0xff] %v1174_v52   ;;  %1334 = vst [vmem:[%s1734_s2 + $0x98] sm:$0xff] %v1254_v53  }
  0xeb   :  { %1317 = vst [vmem:[%s1734_s2 + $0x10] sm:$0xff] %v1169_v56   ;;  %1333 = vst [vmem:[%s1734_s2 + $0x90] sm:$0xff] %v1249_v57  }
  0xed   :  { %v1395_v58 = vpop.f32.mrb[8].mxu0  ;;  %v1427_v59 = vpop.f32.mrb[8].mxu1 }
  0xee   :  { %v415_v60 = vpop.f32.mrb[9].mxu0  ;;  %v543_v61 = vpop.f32.mrb[9].mxu1 }
  0xef   :  { %v1396_v62 = vpop.f32.mrb[10].mxu0  ;;  %v1428_v63 = vpop.f32.mrb[10].mxu1 }
  0xf0   :  { %v1184_v0 = vpack.c.bf16 %v1396_v62, %v1395_v58  ;;  %v1264_v1 = vpack.c.bf16 %v1428_v63, %v1427_v59  ;;  %v418_v2 = vpop.f32.mrb[11].mxu0  ;;  %v546_v3 = vpop.f32.mrb[11].mxu1 }
  0xf1   :  { %v1179_v4 = vpack.c.bf16 %v418_v2, %v415_v60  ;;  %v1259_v5 = vpack.c.bf16 %v546_v3, %v543_v61 }
  0xf2   :  { %1320 = vst [vmem:[%s1734_s2 + $0x28] sm:$0xff] %v1184_v0   ;;  %1336 = vst [vmem:[%s1734_s2 + $0xa8] sm:$0xff] %v1264_v1  }
  0xf3   :  { %1319 = vst [vmem:[%s1734_s2 + $0x20] sm:$0xff] %v1179_v4   ;;  %1335 = vst [vmem:[%s1734_s2 + $0xa0] sm:$0xff] %v1259_v5  }
  0xf5   :  { %v1399_v6 = vpop.f32.mrb[12].mxu0  ;;  %v1431_v7 = vpop.f32.mrb[12].mxu1 }
  0xf6   :  { %v431_v8 = vpop.f32.mrb[13].mxu0  ;;  %v559_v9 = vpop.f32.mrb[13].mxu1 }
  0xf7   :  { %v1400_v10 = vpop.f32.mrb[14].mxu0  ;;  %v1432_v11 = vpop.f32.mrb[14].mxu1 }
  0xf8   :  { %v1194_v12 = vpack.c.bf16 %v1400_v10, %v1399_v6  ;;  %v1274_v13 = vpack.c.bf16 %v1432_v11, %v1431_v7  ;;  %v434_v14 = vpop.f32.mrb[15].mxu0  ;;  %v562_v15 = vpop.f32.mrb[15].mxu1 }
  0xf9   :  { %v1189_v16 = vpack.c.bf16 %v434_v14, %v431_v8  ;;  %v1269_v17 = vpack.c.bf16 %v562_v15, %v559_v9 }
  0xfa   :  { %1322 = vst [vmem:[%s1734_s2 + $0x38] sm:$0xff] %v1194_v12   ;;  %1338 = vst [vmem:[%s1734_s2 + $0xb8] sm:$0xff] %v1274_v13  }
  0xfb   :  { %1321 = vst [vmem:[%s1734_s2 + $0x30] sm:$0xff] %v1189_v16   ;;  %1337 = vst [vmem:[%s1734_s2 + $0xb0] sm:$0xff] %v1269_v17  }
  0xfd   :  { %v1403_v18 = vpop.f32.mrb[16].mxu0  ;;  %v1435_v19 = vpop.f32.mrb[16].mxu1 }
  0xfe   :  { %v447_v20 = vpop.f32.mrb[17].mxu0  ;;  %v575_v21 = vpop.f32.mrb[17].mxu1 }
  0xff   :  { %v1404_v22 = vpop.f32.mrb[18].mxu0  ;;  %v1436_v23 = vpop.f32.mrb[18].mxu1 }
 0x100   :  { %v1204_v24 = vpack.c.bf16 %v1404_v22, %v1403_v18  ;;  %v1284_v25 = vpack.c.bf16 %v1436_v23, %v1435_v19  ;;  %v450_v26 = vpop.f32.mrb[19].mxu0  ;;  %v578_v27 = vpop.f32.mrb[19].mxu1 }
 0x101   :  { %v1199_v28 = vpack.c.bf16 %v450_v26, %v447_v20  ;;  %v1279_v29 = vpack.c.bf16 %v578_v27, %v575_v21 }
 0x102   :  { %1324 = vst [vmem:[%s1734_s2 + $0x48] sm:$0xff] %v1204_v24   ;;  %1340 = vst [vmem:[%s1734_s2 + $0xc8] sm:$0xff] %v1284_v25  }
 0x103   :  { %1323 = vst [vmem:[%s1734_s2 + $0x40] sm:$0xff] %v1199_v28   ;;  %1339 = vst [vmem:[%s1734_s2 + $0xc0] sm:$0xff] %v1279_v29  }
 0x105   :  { %v1407_v30 = vpop.f32.mrb[20].mxu0  ;;  %v1439_v31 = vpop.f32.mrb[20].mxu1 }
 0x106   :  { %v463_v32 = vpop.f32.mrb[21].mxu0  ;;  %v591_v33 = vpop.f32.mrb[21].mxu1 }
 0x107   :  { %v1408_v34 = vpop.f32.mrb[22].mxu0  ;;  %v1440_v35 = vpop.f32.mrb[22].mxu1 }
 0x108   :  { %v1214_v36 = vpack.c.bf16 %v1408_v34, %v1407_v30  ;;  %v1294_v37 = vpack.c.bf16 %v1440_v35, %v1439_v31  ;;  %v466_v38 = vpop.f32.mrb[23].mxu0  ;;  %v594_v39 = vpop.f32.mrb[23].mxu1 }
 0x109   :  { %v1209_v40 = vpack.c.bf16 %v466_v38, %v463_v32  ;;  %v1289_v41 = vpack.c.bf16 %v594_v39, %v591_v33 }
 0x10a   :  { %1326 = vst [vmem:[%s1734_s2 + $0x58] sm:$0xff] %v1214_v36   ;;  %1342 = vst [vmem:[%s1734_s2 + $0xd8] sm:$0xff] %v1294_v37  }
 0x10b   :  { %1325 = vst [vmem:[%s1734_s2 + $0x50] sm:$0xff] %v1209_v40   ;;  %1341 = vst [vmem:[%s1734_s2 + $0xd0] sm:$0xff] %v1289_v41  }
 0x10d   :  { %v1411_v42 = vpop.f32.mrb[24].mxu0  ;;  %v1443_v43 = vpop.f32.mrb[24].mxu1 }
 0x10e   :  { %v479_v44 = vpop.f32.mrb[25].mxu0  ;;  %v607_v45 = vpop.f32.mrb[25].mxu1 }
 0x10f   :  { %v1412_v46 = vpop.f32.mrb[26].mxu0  ;;  %v1444_v47 = vpop.f32.mrb[26].mxu1 }
 0x110   :  { %v1224_v48 = vpack.c.bf16 %v1412_v46, %v1411_v42  ;;  %v1304_v49 = vpack.c.bf16 %v1444_v47, %v1443_v43  ;;  %v482_v50 = vpop.f32.mrb[27].mxu0  ;;  %v610_v51 = vpop.f32.mrb[27].mxu1 }
 0x111   :  { %v1219_v52 = vpack.c.bf16 %v482_v50, %v479_v44  ;;  %v1299_v53 = vpack.c.bf16 %v610_v51, %v607_v45 }
 0x112   :  { %1328 = vst [vmem:[%s1734_s2 + $0x68] sm:$0xff] %v1224_v48   ;;  %1344 = vst [vmem:[%s1734_s2 + $0xe8] sm:$0xff] %v1304_v49  }
 0x113   :  { %1327 = vst [vmem:[%s1734_s2 + $0x60] sm:$0xff] %v1219_v52   ;;  %1343 = vst [vmem:[%s1734_s2 + $0xe0] sm:$0xff] %v1299_v53  }
 0x115   :  { %v1415_v54 = vpop.f32.mrb[28].mxu0  ;;  %v1447_v55 = vpop.f32.mrb[28].mxu1 }
 0x116   :  { %v495_v56 = vpop.f32.mrb[29].mxu0  ;;  %v623_v57 = vpop.f32.mrb[29].mxu1 }
 0x117   :  { %v1416_v58 = vpop.f32.mrb[30].mxu0  ;;  %v1448_v59 = vpop.f32.mrb[30].mxu1 }
 0x118   :  { %v1234_v60 = vpack.c.bf16 %v1416_v58, %v1415_v54  ;;  %v1314_v61 = vpack.c.bf16 %v1448_v59, %v1447_v55  ;;  %v498_v62 = vpop.f32.mrb[31].mxu0  ;;  %v626_v63 = vpop.f32.mrb[31].mxu1 }
 0x119   :  { %v1229_v0 = vpack.c.bf16 %v498_v62, %v495_v56  ;;  %v1309_v1 = vpack.c.bf16 %v626_v63, %v623_v57 }
 0x11a   :  { %1330 = vst [vmem:[%s1734_s2 + $0x78] sm:$0xff] %v1234_v60   ;;  %1346 = vst [vmem:[%s1734_s2 + $0xf8] sm:$0xff] %v1314_v61  }
 0x11b   :  { %1329 = vst [vmem:[%s1734_s2 + $0x70] sm:$0xff] %v1229_v0   ;;  %1345 = vst [vmem:[%s1734_s2 + $0xf0] sm:$0xff] %v1309_v1  }

// kernel: gcn_forward.4
= control target key start
LH: loop header
LB: loop body
LE: loop exit
PB: predicated region body
PF: predicated region fallthrough
CT: control target
= control target key end

     0   :  { %s2741_s15 = smov 0   ;;  %s2743_s16 = smov 0   ;;  %s3082_s0 = inlined_call_operand.vmem [shape: bf16[512,512], index: 0, kind: input, shape index: {}]   ;;  %s3083_s1 = inlined_call_operand.vmem [shape: bf16[512,128], index: 1, kind: input, shape index: {}]   ;;  %s3084_s2 = inlined_call_operand.vmem [shape: f32[1,128], index: 2, kind: input, shape index: {}]   ;;  %s3085_s3 = inlined_call_operand.vmem [shape: bf16[128,128], index: 3, kind: input, shape index: {}]   ;;  %s3086_s4 = inlined_call_operand.vmem [shape: bf16[512,128], index: 4, kind: output, shape index: {}]  }
   0x1   :  { %s2745_s17 = smov 0  }
   0x2 LB: > { %s26_s18 = sadd.s32 1, %s2710_s16  ;;  %p1947_p0 = scmp.ge.s32.totalorder %s2714_s17, 1  ;;  %s2714_s17 = sphi %s2745_s17, %s14_s17   ;;  %s2710_s16 = sphi %s2743_s16, %s3088_s16   ;;  %s2706_s15 = sphi %s2741_s15, %s3087_s15  }
   0x3   : > { %p28_p1 = scmp.ge.s32.totalorder %s26_s18, 2  ;;  %p194_p2 = scmp.lt.s32.totalorder %s2714_s17, 3 }
   0x5   : > { %s3090_s18 = smov (%p28_p1, %s26_s18), 0  ;;  %p195_p3 = pnand %p1947_p0, %p194_p2 }
   0x6   : > { %v2556_v0 = vld [vmem:[%s3083_s1 + $0x40] sm:$0xff] (!%p195_p3)   ;;  %s1948_s21 = sshll.u32 (!%p195_p3), %s2706_s15, 5  ;;  %v2558_v2 = vld [vmem:[%s3083_s1 + $0x48] sm:$0xff] (!%p195_p3)   ;;  %v2560_v4 = vld [vmem:[%s3083_s1 + $0x50] sm:$0xff] (!%p195_p3)  }
   0x7   : > { %198 = sbr.rel (%p195_p3) target bundleno = 634 (0x27a), region = 36  ;;  %v2557_v1 = vld [vmem:[%s3083_s1] sm:$0xff] (!%p195_p3)   ;;  %2516 = vmatprep.subr.bf16.mxu1 (!%p195_p3), %v2556_v0  ;;  %2220 = vmatprep.subr.bf16.mxu0 (!%p195_p3), %v2556_v0  ;;  %v2559_v3 = vld [vmem:[%s3083_s1 + $0x8] sm:$0xff] (!%p195_p3)   ;;  %p232_p4 = scmp.lt.s32.totalorder (!%p195_p3), %s1948_s21, 63  ;;  %v2561_v5 = vld [vmem:[%s3083_s1 + $0x10] sm:$0xff] (!%p195_p3)  }
   0x8   : > { %2524 = vmatpush3.bf16.msra.mxu1 (!%p195_p3), %v2557_v1  ;;  %2221 = vmatpush3.bf16.msra.mxu0 (!%p195_p3), %v2557_v1  ;;  %v2562_v6 = vld [vmem:[%s3083_s1 + $0x58] sm:$0xff] (!%p195_p3)   ;;  %v2564_v8 = vld [vmem:[%s3083_s1 + $0x60] sm:$0xff] (!%p195_p3)   ;;  %v2566_v10 = vld [vmem:[%s3083_s1 + $0x68] sm:$0xff] (!%p195_p3)  }
   0x9   : > { %2517 = vmatprep.subr.bf16.mxu1 (!%p195_p3), %v2558_v2  ;;  %2222 = vmatprep.subr.bf16.mxu0 (!%p195_p3), %v2558_v2  ;;  %v2563_v7 = vld [vmem:[%s3083_s1 + $0x18] sm:$0xff] (!%p195_p3)   ;;  %v2565_v9 = vld [vmem:[%s3083_s1 + $0x20] sm:$0xff] (!%p195_p3)   ;;  %v2567_v12 = vld [vmem:[%s3083_s1 + $0x28] sm:$0xff] (!%p195_p3)  }
   0xa   : > { %v2568_v13 = vld [vmem:[%s3083_s1 + $0x70] sm:$0xff] (!%p195_p3)   ;;  %v2570_v15 = vld [vmem:[%s3083_s1 + $0x78] sm:$0xff] (!%p195_p3)   ;;  %v2575_v17 = vld [vmem:[%s3083_s1 + $0xc0] sm:$0xff] (!%p195_p3)  }
   0xb   : > { %v2569_v14 = vld [vmem:[%s3083_s1 + $0x30] sm:$0xff] (!%p195_p3)   ;;  %v2571_v16 = vld [vmem:[%s3083_s1 + $0x38] sm:$0xff] (!%p195_p3)   ;;  %v2576_v19 = vld [vmem:[%s3083_s1 + $0x80] sm:$0xff] (!%p195_p3)  }
   0xc   : > { %2525 = vmatpush3.bf16.msra.mxu1 (!%p195_p3), %v2559_v3  ;;  %2223 = vmatpush3.bf16.msra.mxu0 (!%p195_p3), %v2559_v3  ;;  %v2577_v21 = vld [vmem:[%s3083_s1 + $0xc8] sm:$0xff] (!%p195_p3)   ;;  %v2582_v24 = vld [vmem:[%s3083_s1 + $0xd0] sm:$0xff] (!%p195_p3)   ;;  %v2584_v28 = vld [vmem:[%s3083_s1 + $0xd8] sm:$0xff] (!%p195_p3)  }
   0xd   : > { %2518 = vmatprep.subr.bf16.mxu1 (!%p195_p3), %v2560_v4  ;;  %2224 = vmatprep.subr.bf16.mxu0 (!%p195_p3), %v2560_v4  ;;  %v2578_v22 = vld [vmem:[%s3083_s1 + $0x88] sm:$0xff] (!%p195_p3)   ;;  %v2583_v25 = vld [vmem:[%s3083_s1 + $0x90] sm:$0xff] (!%p195_p3)   ;;  %v2585_v31 = vld [vmem:[%s3083_s1 + $0x98] sm:$0xff] (!%p195_p3)  }
   0xe   : > { %s3092_s21 = smov (!%p232_p4, %s1948_s21), 63  ;;  %v2589_v33 = vld [vmem:[%s3083_s1 + $0xe0] sm:$0xff]   ;;  %v2591_v38 = vld [vmem:[%s3083_s1 + $0xe8] sm:$0xff]   ;;  %v2596_v41 = vld [vmem:[%s3083_s1 + $0xf0] sm:$0xff]  }
   0xf   : > { %s2092_s10 = sshll.u32 %s3092_s21, 4  ;;  %v2590_v36 = vld [vmem:[%s3083_s1 + $0xa0] sm:$0xff]   ;;  %v2592_v39 = vld [vmem:[%s3083_s1 + $0xa8] sm:$0xff]   ;;  %v2597_v44 = vld [vmem:[%s3083_s1 + $0xb0] sm:$0xff]   ;;  %s1952_s19 = sshll.u32 %s3092_s21, 2 }
  0x10   : > { %2526 = vmatpush3.bf16.msra.mxu1 %v2561_v5  ;;  %2225 = vmatpush3.bf16.msra.mxu0 %v2561_v5  ;;  %s2792_s15 = scalar_lea.vmem %s3082_s0, %s2092_s10  ;;  %v2598_v46 = vld [vmem:[%s3083_s1 + $0xf8] sm:$0xff]   ;;  %s3055_s23 = scalar_lea.vmem %s3086_s4, %s1952_s19 }
  0x11   : > { %2519 = vmatprep.subr.bf16.mxu1 %v2562_v6  ;;  %2226 = vmatprep.subr.bf16.mxu0 %v2562_v6  ;;  %v2574_v11 = vld [vmem:[%s2792_s15 + $0x184] ss:$16 sps:$4 sm:$0xff]   ;;  %v2572_v18 = vld [vmem:[%s2792_s15 + $0x180] ss:$16 sps:$4 sm:$0xff]   ;;  %v2605_v45 = vld [vmem:[%s2792_s15 + $0xc] ss:$16 sps:$4 sm:$0xff]  }
  0x12   : > { %1091 = vmatprep.mubr.bf16.mxu1 %v2574_v11  ;;  %v2579_v20 = vld [vmem:[%s2792_s15 + $0x1a4] ss:$16 sps:$4 sm:$0xff]   ;;  %v2581_v23 = vld [vmem:[%s2792_s15 + $0x1a0] ss:$16 sps:$4 sm:$0xff]   ;;  %v2599_v47 = vld [vmem:[%s3083_s1 + $0xb8] sm:$0xff]  }
  0x13   : > { %v2600_v26 = vld [vmem:[%s2792_s15] ss:$16 sps:$4 sm:$0xff]   ;;  %v2602_v27 = vld [vmem:[%s2792_s15 + $0x4] ss:$16 sps:$4 sm:$0xff]   ;;  %v2603_v48 = vld [vmem:[%s2792_s15 + $0x8] ss:$16 sps:$4 sm:$0xff]  }
  0x14   : > { %2527 = vmatpush3.bf16.msra.mxu1 %v2563_v7  ;;  %2227 = vmatpush3.bf16.msra.mxu0 %v2563_v7  ;;  %v2586_v29 = vld [vmem:[%s2792_s15 + $0x1c4] ss:$16 sps:$4 sm:$0xff]   ;;  %v2588_v32 = vld [vmem:[%s2792_s15 + $0x1c0] ss:$16 sps:$4 sm:$0xff]   ;;  %v2608_v51 = vld [vmem:[%s2792_s15 + $0x2c] ss:$16 sps:$4 sm:$0xff]  }
  0x15   : > { %2520 = vmatprep.subr.bf16.mxu1 %v2564_v8  ;;  %2228 = vmatprep.subr.bf16.mxu0 %v2564_v8  ;;  %v2606_v30 = vld [vmem:[%s2792_s15 + $0x24] ss:$16 sps:$4 sm:$0xff]   ;;  %v2610_v34 = vld [vmem:[%s2792_s15 + $0x20] ss:$16 sps:$4 sm:$0xff]   ;;  %v2611_v53 = vld [vmem:[%s2792_s15 + $0x28] ss:$16 sps:$4 sm:$0xff]  }
  0x16   : > { %995 = vmatprep.mubr.bf16.mxu0 %v2602_v27  ;;  %v2612_v35 = vld [vmem:[%s2792_s15 + $0x44] ss:$16 sps:$4 sm:$0xff]   ;;  %v2595_v40 = vld [vmem:[%s2792_s15 + $0x1e0] ss:$16 sps:$4 sm:$0xff]   ;;  %v2614_v55 = vld [vmem:[%s2792_s15 + $0x4c] ss:$16 sps:$4 sm:$0xff]  }
  0x17   : > { %v2593_v37 = vld [vmem:[%s2792_s15 + $0x1e4] ss:$16 sps:$4 sm:$0xff]   ;;  %v2616_v42 = vld [vmem:[%s2792_s15 + $0x40] ss:$16 sps:$4 sm:$0xff]   ;;  %v2617_v57 = vld [vmem:[%s2792_s15 + $0x48] ss:$16 sps:$4 sm:$0xff]  }
  0x18   : > { %2528 = vmatpush3.bf16.msra.mxu1 %v2565_v9  ;;  %2229 = vmatpush3.bf16.msra.mxu0 %v2565_v9  ;;  %v2618_v43 = vld [vmem:[%s2792_s15 + $0x64] ss:$16 sps:$4 sm:$0xff]   ;;  %v2622_v49 = vld [vmem:[%s2792_s15 + $0x60] ss:$16 sps:$4 sm:$0xff]   ;;  %v2620_v59 = vld [vmem:[%s2792_s15 + $0x6c] ss:$16 sps:$4 sm:$0xff]  }
  0x19   : > { %2521 = vmatprep.subr.bf16.mxu1 %v2566_v10  ;;  %2230 = vmatprep.subr.bf16.mxu0 %v2566_v10  ;;  %v2624_v50 = vld [vmem:[%s2792_s15 + $0x84] ss:$16 sps:$4 sm:$0xff]   ;;  %v2628_v52 = vld [vmem:[%s2792_s15 + $0x80] ss:$16 sps:$4 sm:$0xff]   ;;  %v2623_v61 = vld [vmem:[%s2792_s15 + $0x68] ss:$16 sps:$4 sm:$0xff]  }
  0x1a   : > { %v2630_v54 = vld [vmem:[%s2792_s15 + $0xa4] ss:$16 sps:$4 sm:$0xff]   ;;  %v2634_v56 = vld [vmem:[%s2792_s15 + $0xa0] ss:$16 sps:$4 sm:$0xff]   ;;  %v2626_v63 = vld [vmem:[%s2792_s15 + $0x8c] ss:$16 sps:$4 sm:$0xff]  }
  0x1b   : > { %v2636_v58 = vld [vmem:[%s2792_s15 + $0xc4] ss:$16 sps:$4 sm:$0xff]   ;;  %v2640_v60 = vld [vmem:[%s2792_s15 + $0xc0] ss:$16 sps:$4 sm:$0xff]   ;;  %v2629_v1 = vld [vmem:[%s2792_s15 + $0x88] ss:$16 sps:$4 sm:$0xff]  }
  0x1c   : > { %2529 = vmatpush3.bf16.msra.mxu1 %v2567_v12  ;;  %2231 = vmatpush3.bf16.msra.mxu0 %v2567_v12  ;;  %v2642_v62 = vld [vmem:[%s2792_s15 + $0xe4] ss:$16 sps:$4 sm:$0xff]   ;;  %v2646_v0 = vld [vmem:[%s2792_s15 + $0xe0] ss:$16 sps:$4 sm:$0xff]   ;;  %v2632_v3 = vld [vmem:[%s2792_s15 + $0xac] ss:$16 sps:$4 sm:$0xff]  }
  0x1d   : > { %2522 = vmatprep.subr.bf16.mxu1 %v2568_v13  ;;  %2232 = vmatprep.subr.bf16.mxu0 %v2568_v13  ;;  %v2648_v2 = vld [vmem:[%s2792_s15 + $0x104] ss:$16 sps:$4 sm:$0xff]   ;;  %v2652_v4 = vld [vmem:[%s2792_s15 + $0x100] ss:$16 sps:$4 sm:$0xff]   ;;  %v2635_v5 = vld [vmem:[%s2792_s15 + $0xa8] ss:$16 sps:$4 sm:$0xff]  }
  0x1e   : > { %v2654_v6 = vld [vmem:[%s2792_s15 + $0x124] ss:$16 sps:$4 sm:$0xff]   ;;  %v2638_v7 = vld [vmem:[%s2792_s15 + $0xcc] ss:$16 sps:$4 sm:$0xff]   ;;  %v2658_v8 = vld [vmem:[%s2792_s15 + $0x120] ss:$16 sps:$4 sm:$0xff]  }
  0x1f   : > { %v2641_v9 = vld [vmem:[%s2792_s15 + $0xc8] ss:$16 sps:$4 sm:$0xff]   ;;  %v2660_v10 = vld [vmem:[%s2792_s15 + $0x144] ss:$16 sps:$4 sm:$0xff]   ;;  %v2644_v11 = vld [vmem:[%s2792_s15 + $0xec] ss:$16 sps:$4 sm:$0xff]  }
  0x20   : > { %2530 = vmatpush3.bf16.msra.mxu1 %v2569_v14  ;;  %2233 = vmatpush3.bf16.msra.mxu0 %v2569_v14  ;;  %v2664_v12 = vld [vmem:[%s2792_s15 + $0x140] ss:$16 sps:$4 sm:$0xff]   ;;  %v2647_v13 = vld [vmem:[%s2792_s15 + $0xe8] ss:$16 sps:$4 sm:$0xff]   ;;  %v2666_v14 = vld [vmem:[%s2792_s15 + $0x164] ss:$16 sps:$4 sm:$0xff]  }
  0x21   : > { %2523 = vmatprep.subr.bf16.mxu1 %v2570_v15  ;;  %2234 = vmatprep.subr.bf16.mxu0 %v2570_v15  ;;  %v2650_v15 = vld [vmem:[%s2792_s15 + $0x10c] ss:$16 sps:$4 sm:$0xff]   ;;  %v2671_v27 = vld [vmem:[%s2792_s15 + $0x168] ss:$16 sps:$4 sm:$0xff]  }
  0x24   : > { %2531 = vmatpush3.bf16.msra.mxu1 %v2571_v16  ;;  %2235 = vmatpush3.bf16.msra.mxu0 %v2571_v16  ;;  %v2670_v16 = vld [vmem:[%s2792_s15 + $0x160] ss:$16 sps:$4 sm:$0xff]  }
  0x25   : > { %2332 = vmatprep.subr.bf16.mxu1 %v2575_v17  ;;  %v2653_v17 = vld [vmem:[%s2792_s15 + $0x108] ss:$16 sps:$4 sm:$0xff]  }
  0x27   : > { %1092 = vmatmul.mubr.bf16.vlgmr.msra.gmra.mrb[0].mxu1 %v2572_v18  ;;  %996 = vmatmul.mubr.bf16.vlgmr.msra.gmra.mrb[0].mxu0 %v2600_v26  ;;  %v2656_v18 = vld [vmem:[%s2792_s15 + $0x12c] ss:$16 sps:$4 sm:$0xff]  }
  0x28   : > { %2333 = vmatpush3.bf16.msra.mxu1 %v2576_v19  ;;  %1099 = vmatprep.mubr.bf16.mxu1 %v2579_v20  ;;  %v2684_v19 = vld [vmem:[%s3085_s3] sm:$0xff]   ;;  %v2659_v20 = vld [vmem:[%s2792_s15 + $0x128] ss:$16 sps:$4 sm:$0xff]  }
  0x29   : > { %2334 = vmatprep.subr.bf16.mxu1 %v2577_v21  ;;  %1003 = vmatprep.mubr.bf16.mxu0 %v2606_v30  ;;  %v2662_v21 = vld [vmem:[%s2792_s15 + $0x14c] ss:$16 sps:$4 sm:$0xff]  }
  0x2a   : > { %2468 = vmatprep.subr.bf16.mxu0 %v2684_v19  ;;  %v2687_v26 = vld [vmem:[%s3085_s3 + $0x18] sm:$0xff]   ;;  %v2689_v30 = vld [vmem:[%s3085_s3 + $0x28] sm:$0xff]  }
  0x2b   : > { %2469 = vmatpush3.bf16.msra.mxu0 %v2684_v19 }
  0x2c   : > { %2335 = vmatpush3.bf16.msra.mxu1 %v2578_v22  ;;  %v2685_v22 = vld [vmem:[%s3085_s3 + $0x8] sm:$0xff]  }
  0x2d   : > { %2336 = vmatprep.subr.bf16.mxu1 %v2582_v24  ;;  %v2668_v24 = vld [vmem:[%s2792_s15 + $0x16c] ss:$16 sps:$4 sm:$0xff]   ;;  %2470 = vmatprep.subr.bf16.mxu0 %v2685_v22 }
  0x2f   : > { %1100 = vmatmul.mubr.bf16.gmra.mrb[4].mxu1 %v2581_v23  ;;  %1004 = vmatmul.mubr.bf16.gmra.mrb[4].mxu0 %v2610_v34  ;;  %v2665_v23 = vld [vmem:[%s2792_s15 + $0x148] ss:$16 sps:$4 sm:$0xff]  }
  0x30   : > { %2337 = vmatpush3.bf16.msra.mxu1 %v2583_v25  ;;  %1107 = vmatprep.mubr.bf16.mxu1 %v2586_v29  ;;  %v2686_v25 = vld [vmem:[%s3085_s3 + $0x10] sm:$0xff]   ;;  %v2688_v29 = vld [vmem:[%s3085_s3 + $0x20] sm:$0xff]   ;;  %v2691_v34 = vld [vmem:[%s3085_s3 + $0x38] sm:$0xff]  }
  0x31   : > { %2338 = vmatprep.subr.bf16.mxu1 %v2584_v28  ;;  %1011 = vmatprep.mubr.bf16.mxu0 %v2612_v35  ;;  %v2672_v28 = vld [vmem:[%s2792_s15 + $0x18c] ss:$16 sps:$4 sm:$0xff]   ;;  %v2677_v35 = vld [vmem:[%s2792_s15 + $0x1a8] ss:$16 sps:$4 sm:$0xff]  }
  0x32   : > { %2471 = vmatpush3.bf16.msra.mxu0 %v2685_v22 }
  0x33   : > { %2472 = vmatprep.subr.bf16.mxu0 %v2686_v25 }
  0x34   : > { %2339 = vmatpush3.bf16.msra.mxu1 %v2585_v31  ;;  %v2674_v31 = vld [vmem:[%s2792_s15 + $0x188] ss:$16 sps:$4 sm:$0xff]  }
  0x35   : > { %2340 = vmatprep.subr.bf16.mxu1 %v2589_v33  ;;  %v2690_v33 = vld [vmem:[%s3085_s3 + $0x30] sm:$0xff]  }
  0x36   : > { %2473 = vmatpush3.bf16.msra.mxu0 %v2686_v25 }
  0x37   : > { %1108 = vmatmul.mubr.bf16.gmra.mrb[8].mxu1 %v2588_v32  ;;  %1012 = vmatmul.mubr.bf16.gmra.mrb[8].mxu0 %v2616_v42  ;;  %v2675_v32 = vld [vmem:[%s2792_s15 + $0x1ac] ss:$16 sps:$4 sm:$0xff]  }
  0x38   : > { %2341 = vmatpush3.bf16.msra.mxu1 %v2590_v36  ;;  %1115 = vmatprep.mubr.bf16.mxu1 %v2593_v37  ;;  %v2678_v36 = vld [vmem:[%s2792_s15 + $0x1cc] ss:$16 sps:$4 sm:$0xff]   ;;  %v2680_v37 = vld [vmem:[%s2792_s15 + $0x1c8] ss:$16 sps:$4 sm:$0xff]  }
  0x39   : > { %2342 = vmatprep.subr.bf16.mxu1 %v2591_v38  ;;  %1019 = vmatprep.mubr.bf16.mxu0 %v2618_v43  ;;  %v2681_v38 = vld [vmem:[%s2792_s15 + $0x1ec] ss:$16 sps:$4 sm:$0xff]  }
  0x3a   : > { %2474 = vmatprep.subr.bf16.mxu0 %v2687_v26 }
  0x3b   : > { %2475 = vmatpush3.bf16.msra.mxu0 %v2687_v26 }
  0x3c   : > { %2343 = vmatpush3.bf16.msra.mxu1 %v2592_v39  ;;  %2476 = vmatprep.subr.bf16.mxu0 %v2688_v29  ;;  %v2683_v39 = vld [vmem:[%s2792_s15 + $0x1e8] ss:$16 sps:$4 sm:$0xff]  }
  0x3d   : > { %2344 = vmatprep.subr.bf16.mxu1 %v2596_v41 }
  0x3f   : > { %1116 = vmatmul.mubr.bf16.gmra.mrb[12].mxu1 %v2595_v40  ;;  %1020 = vmatmul.mubr.bf16.gmra.mrb[12].mxu0 %v2622_v49 }
  0x40   : > { %2345 = vmatpush3.bf16.msra.mxu1 %v2597_v44  ;;  %1156 = vmatprep.mubr.bf16.mxu1 %v2605_v45 }
  0x41   : > { %2346 = vmatprep.subr.bf16.mxu1 %v2598_v46  ;;  %1027 = vmatprep.mubr.bf16.mxu0 %v2624_v50 }
  0x42   : > { %2477 = vmatpush3.bf16.msra.mxu0 %v2688_v29 }
  0x43   : > { %2478 = vmatprep.subr.bf16.mxu0 %v2689_v30 }
  0x44   : > { %2347 = vmatpush3.bf16.msra.mxu1 %v2599_v47 }
  0x46   : > { %2479 = vmatpush3.bf16.msra.mxu0 %v2689_v30 }
  0x47   : > { %1157 = vmatmul.mubr.bf16.vlgmr.msra.gmra.mrb[16].mxu1 %v2603_v48  ;;  %1028 = vmatmul.mubr.bf16.gmra.mrb[16].mxu0 %v2628_v52 }
  0x48   : > { %1164 = vmatprep.mubr.bf16.mxu1 %v2608_v51  ;;  %1035 = vmatprep.mubr.bf16.mxu0 %v2630_v54 }
  0x49   : > { %2480 = vmatprep.subr.bf16.mxu0 %v2690_v33 }
  0x4a   : > { %2481 = vmatpush3.bf16.msra.mxu0 %v2690_v33 }
  0x4b   : > { %2482 = vmatprep.subr.bf16.mxu0 %v2691_v34 }
  0x4e   : > { %2483 = vmatpush3.bf16.msra.mxu0 %v2691_v34 }
  0x4f   : > { %1165 = vmatmul.mubr.bf16.gmra.mrb[20].mxu1 %v2611_v53  ;;  %1036 = vmatmul.mubr.bf16.gmra.mrb[20].mxu0 %v2634_v56 }
  0x50   : > { %1172 = vmatprep.mubr.bf16.mxu1 %v2614_v55  ;;  %1043 = vmatprep.mubr.bf16.mxu0 %v2636_v58 }
  0x57   : > { %1173 = vmatmul.mubr.bf16.gmra.mrb[24].mxu1 %v2617_v57  ;;  %1044 = vmatmul.mubr.bf16.gmra.mrb[24].mxu0 %v2640_v60 }
  0x58   : > { %1180 = vmatprep.mubr.bf16.mxu1 %v2620_v59  ;;  %1051 = vmatprep.mubr.bf16.mxu0 %v2642_v62 }
  0x5f   : > { %1181 = vmatmul.mubr.bf16.gmra.mrb[28].mxu1 %v2623_v61  ;;  %1052 = vmatmul.mubr.bf16.gmra.mrb[28].mxu0 %v2646_v0 }
  0x60   : > { %1188 = vmatprep.mubr.bf16.mxu1 %v2626_v63  ;;  %1059 = vmatprep.mubr.bf16.mxu0 %v2648_v2 }
  0x67   : > { %1189 = vmatmul.mubr.bf16.gmra.mrb[32].mxu1 %v2629_v1  ;;  %1060 = vmatmul.mubr.bf16.gmra.mrb[32].mxu0 %v2652_v4 }
  0x68   : > { %1196 = vmatprep.mubr.bf16.mxu1 %v2632_v3  ;;  %1067 = vmatprep.mubr.bf16.mxu0 %v2654_v6 }
  0x6f   : > { %1197 = vmatmul.mubr.bf16.gmra.mrb[36].mxu1 %v2635_v5  ;;  %1068 = vmatmul.mubr.bf16.gmra.mrb[36].mxu0 %v2658_v8 }
  0x70   : > { %1204 = vmatprep.mubr.bf16.mxu1 %v2638_v7  ;;  %1075 = vmatprep.mubr.bf16.mxu0 %v2660_v10 }
  0x77   : > { %1205 = vmatmul.mubr.bf16.gmra.mrb[40].mxu1 %v2641_v9  ;;  %1076 = vmatmul.mubr.bf16.gmra.mrb[40].mxu0 %v2664_v12 }
  0x78   : > { %1212 = vmatprep.mubr.bf16.mxu1 %v2644_v11  ;;  %1083 = vmatprep.mubr.bf16.mxu0 %v2666_v14 }
  0x7f   : > { %1213 = vmatmul.mubr.bf16.gmra.mrb[44].mxu1 %v2647_v13  ;;  %1084 = vmatmul.mubr.bf16.gmra.mrb[44].mxu0 %v2670_v16 }
  0x80   : > { %1220 = vmatprep.mubr.bf16.mxu1 %v2650_v15 }
  0x87   : > { %1221 = vmatmul.mubr.bf16.gmra.mrb[48].mxu1 %v2653_v17 }
  0x88   : > { %1228 = vmatprep.mubr.bf16.mxu1 %v2656_v18 }
  0x8f   : > { %1229 = vmatmul.mubr.bf16.gmra.mrb[52].mxu1 %v2659_v20 }
  0x90   : > { %1236 = vmatprep.mubr.bf16.mxu1 %v2662_v21 }
  0x97   : > { %1237 = vmatmul.mubr.bf16.gmra.mrb[56].mxu1 %v2665_v23 }
  0x98   : > { %1244 = vmatprep.mubr.bf16.mxu1 %v2668_v24 }
  0x9f   : > { %1245 = vmatmul.mubr.bf16.gmra.mrb[60].mxu1 %v2671_v27  ;;  %v2972_v27 = vld [vmem:[%s3084_s2] ss:$0 sm:$0xff] }
  0xa0   : > { %1252 = vmatprep.mubr.bf16.mxu1 %v2672_v28 }
  0xa7   : > { %1253 = vmatmul.mubr.bf16.gmra.mrb[64].mxu1 %v2674_v31 }
  0xa8   : > { %1260 = vmatprep.mubr.bf16.mxu1 %v2675_v32 }
  0xaf   : > { %1261 = vmatmul.mubr.bf16.gmra.mrb[68].mxu1 %v2677_v35 }
  0xb0   : > { %1268 = vmatprep.mubr.bf16.mxu1 %v2678_v36 }
  0xb7   : > { %1269 = vmatmul.mubr.bf16.gmra.mrb[72].mxu1 %v2680_v37 }
  0xb8   : > { %1276 = vmatprep.mubr.bf16.mxu1 %v2681_v38 }
  0xbf   : > { %1277 = vmatmul.mubr.bf16.gmra.mrb[76].mxu1 %v2683_v39 }
  0xfa   : > { %v2308_v40 = vpop.f32.mrb[0].mxu1  ;;  %v2236_v46 = vpop.f32.mrb[0].mxu0 }
  0xfb   : > { %v2309_v41 = vpop.f32.mrb[1].mxu1  ;;  %v2237_v48 = vpop.f32.mrb[1].mxu0 }
  0xfc   : > { %v2951_v42 = vadd.f32 %v2309_v41, %v2308_v40  ;;  %v2311_v43 = vpop.f32.mrb[2].mxu1  ;;  %v2238_v50 = vadd.f32 %v2237_v48, %v2236_v46  ;;  %v2239_v51 = vpop.f32.mrb[2].mxu0 }
  0xfd   : > { %v2312_v44 = vpop.f32.mrb[3].mxu1  ;;  %v2240_v54 = vpop.f32.mrb[3].mxu0 }
  0xfe   : > { %v2953_v45 = vadd.f32 %v2312_v44, %v2311_v43  ;;  %v2241_v56 = vadd.f32 %v2240_v54, %v2239_v51 }
 0x102   : > { %v2314_v47 = vpop.f32.mrb[4].mxu1  ;;  %v2242_v58 = vpop.f32.mrb[4].mxu0 }
 0x103   : > { %v2315_v49 = vpop.f32.mrb[5].mxu1  ;;  %v2243_v60 = vpop.f32.mrb[5].mxu0 }
 0x104   : > { %v2955_v52 = vadd.f32 %v2315_v49, %v2314_v47  ;;  %v2317_v53 = vpop.f32.mrb[6].mxu1  ;;  %v2244_v62 = vadd.f32 %v2243_v60, %v2242_v58  ;;  %v2245_v63 = vpop.f32.mrb[6].mxu0 }
 0x105   : > { %v2318_v55 = vpop.f32.mrb[7].mxu1  ;;  %v2246_v2 = vpop.f32.mrb[7].mxu0 }
 0x106   : > { %v2957_v57 = vadd.f32 %v2318_v55, %v2317_v53  ;;  %v2247_v4 = vadd.f32 %v2246_v2, %v2245_v63 }
 0x10a   : > { %v2320_v59 = vpop.f32.mrb[8].mxu1  ;;  %v2248_v6 = vpop.f32.mrb[8].mxu0 }
 0x10b   : > { %v2321_v61 = vpop.f32.mrb[9].mxu1  ;;  %v2249_v8 = vpop.f32.mrb[9].mxu0 }
 0x10c   : > { %v2959_v0 = vadd.f32 %v2321_v61, %v2320_v59  ;;  %v2323_v1 = vpop.f32.mrb[10].mxu1  ;;  %v2250_v10 = vadd.f32 %v2249_v8, %v2248_v6  ;;  %v2251_v11 = vpop.f32.mrb[10].mxu0 }
 0x10d   : > { %v2324_v3 = vpop.f32.mrb[11].mxu1  ;;  %v2252_v14 = vpop.f32.mrb[11].mxu0 }
 0x10e   : > { %v2961_v5 = vadd.f32 %v2324_v3, %v2323_v1  ;;  %v2253_v16 = vadd.f32 %v2252_v14, %v2251_v11 }
 0x112   : > { %v2326_v7 = vpop.f32.mrb[12].mxu1  ;;  %v2254_v18 = vpop.f32.mrb[12].mxu0 }
 0x113   : > { %v2327_v9 = vpop.f32.mrb[13].mxu1  ;;  %v2255_v20 = vpop.f32.mrb[13].mxu0 }
 0x114   : > { %v2963_v12 = vadd.f32 %v2327_v9, %v2326_v7  ;;  %v2329_v13 = vpop.f32.mrb[14].mxu1  ;;  %v2967_v22 = vadd.f32 %v2255_v20, %v2254_v18  ;;  %v2257_v23 = vpop.f32.mrb[14].mxu0 }
 0x115   : > { %v2330_v15 = vpop.f32.mrb[15].mxu1  ;;  %v2258_v26 = vpop.f32.mrb[15].mxu0 }
 0x116   : > { %v2965_v17 = vadd.f32 %v2330_v15, %v2329_v13  ;;  %v2974_v29 = vadd.f32 %v2258_v26, %v2257_v23 }
 0x11a   : > { %v2348_v19 = vpop.f32.mrb[16].mxu1  ;;  %v2260_v34 = vpop.f32.mrb[16].mxu0 }
 0x11b   : > { %v2349_v21 = vpop.f32.mrb[17].mxu1  ;;  %v2261_v37 = vpop.f32.mrb[17].mxu0 }
 0x11c   : > { %v2350_v24 = vadd.f32 %v2349_v21, %v2348_v19  ;;  %v2351_v25 = vpop.f32.mrb[18].mxu1  ;;  %v2978_v39 = vadd.f32 %v2261_v37, %v2260_v34  ;;  %v2263_v40 = vpop.f32.mrb[18].mxu0 }
 0x11d   : > { %v2352_v28 = vpop.f32.mrb[19].mxu1  ;;  %v2264_v47 = vpop.f32.mrb[19].mxu0 }
 0x11e   : > { %v1159_v30 = vadd.f32 %v2350_v24, %v2238_v50  ;;  %v2353_v31 = vadd.f32 %v2352_v28, %v2351_v25  ;;  %v2980_v49 = vadd.f32 %v2264_v47, %v2263_v40 }
 0x120   : > { %v1391_v32 = vadd.f32 %v2972_v27, %v1159_v30  ;;  %v1162_v33 = vadd.f32 %v2353_v31, %v2241_v56 }
 0x122   : > { %v1392_v35 = vadd.f32 %v2972_v27, %v1162_v33  ;;  %v2354_v36 = vpop.f32.mrb[20].mxu1  ;;  %v1423_v41 = vmax.f32 %v1391_v32, 0.0  ;;  %v2266_v56 = vpop.f32.mrb[20].mxu0 }
 0x123   : > { %v2355_v38 = vpop.f32.mrb[21].mxu1  ;;  %v2267_v60 = vpop.f32.mrb[21].mxu0 }
 0x124   : > { %v1424_v43 = vmax.f32 %v1392_v35, 0.0  ;;  %v2356_v44 = vadd.f32 %v2355_v38, %v2354_v36  ;;  %v2357_v46 = vpop.f32.mrb[22].mxu1  ;;  %v2984_v63 = vadd.f32 %v2267_v60, %v2266_v56  ;;  %v2269_v1 = vpop.f32.mrb[22].mxu0 }
 0x125   : > { %v2358_v48 = vpop.f32.mrb[23].mxu1 }
 0x126   : > { %v1167_v50 = vadd.f32 %v2356_v44, %v2244_v62  ;;  %v2359_v51 = vadd.f32 %v2358_v48, %v2357_v46  ;;  %v1455_v53 = vpack.c.bf16 %v1424_v43, %v1423_v41  ;;  %v2270_v62 = vpop.f32.mrb[23].mxu0 }
 0x127   : > { %v2986_v9 = vadd.f32 %v2270_v62, %v2269_v1 }
 0x128   : > { %v1393_v54 = vadd.f32 %v2972_v27, %v1167_v50  ;;  %v1170_v55 = vadd.f32 %v2359_v51, %v2247_v4  ;;  %2484 = vmatprep.mubr.bf16.mxu0 %v1455_v53 }
 0x12a   : > { %v1394_v58 = vadd.f32 %v2972_v27, %v1170_v55  ;;  %v2360_v59 = vpop.f32.mrb[24].mxu1  ;;  %v1425_v2 = vmax.f32 %v1393_v54, 0.0  ;;  %v2272_v18 = vpop.f32.mrb[24].mxu0 }
 0x12b   : > { %v2361_v61 = vpop.f32.mrb[25].mxu1  ;;  %v2273_v21 = vpop.f32.mrb[25].mxu0 }
 0x12c   : > { %v1426_v3 = vmax.f32 %v1394_v58, 0.0  ;;  %v2362_v6 = vadd.f32 %v2361_v61, %v2360_v59  ;;  %v2363_v7 = vpop.f32.mrb[26].mxu1  ;;  %v2990_v24 = vadd.f32 %v2273_v21, %v2272_v18  ;;  %v2275_v25 = vpop.f32.mrb[26].mxu0 }
 0x12d   : > { %v2364_v8 = vpop.f32.mrb[27].mxu1  ;;  %v2276_v32 = vpop.f32.mrb[27].mxu0 }
 0x12e   : > { %v1456_v11 = vpack.c.bf16 %v1426_v3, %v1425_v2  ;;  %v1175_v4 = vadd.f32 %v2362_v6, %v2250_v10  ;;  %v2365_v13 = vadd.f32 %v2364_v8, %v2363_v7  ;;  %v2992_v33 = vadd.f32 %v2276_v32, %v2275_v25 }
 0x130   : > { %v1395_v14 = vadd.f32 %v2972_v27, %v1175_v4  ;;  %v1178_v15 = vadd.f32 %v2365_v13, %v2253_v16  ;;  %2485 = vmatmul.mubr.bf16.vlgmr.msra.gmra.mrb[48].mxu0 %v1456_v11 }
 0x132   : > { %v1396_v19 = vadd.f32 %v2972_v27, %v1178_v15  ;;  %v2366_v20 = vpop.f32.mrb[28].mxu1  ;;  %v1427_v26 = vmax.f32 %v1395_v14, 0.0  ;;  %v2278_v38 = vpop.f32.mrb[28].mxu0 }
 0x133   : > { %v2367_v23 = vpop.f32.mrb[29].mxu1  ;;  %v2279_v43 = vpop.f32.mrb[29].mxu0 }
 0x134   : > { %v1428_v28 = vmax.f32 %v1396_v19, 0.0  ;;  %v2368_v30 = vadd.f32 %v2367_v23, %v2366_v20  ;;  %v2369_v31 = vpop.f32.mrb[30].mxu1  ;;  %v2998_v46 = vadd.f32 %v2279_v43, %v2278_v38  ;;  %v2281_v47 = vpop.f32.mrb[30].mxu0 }
 0x135   : > { %v2370_v10 = vpop.f32.mrb[31].mxu1  ;;  %v2282_v53 = vpop.f32.mrb[31].mxu0 }
 0x136   : > { %v1183_v16 = vadd.f32 %v2368_v30, %v2967_v22  ;;  %v2371_v34 = vadd.f32 %v2370_v10, %v2369_v31  ;;  %v1457_v35 = vpack.c.bf16 %v1428_v28, %v1427_v26  ;;  %v3000_v55 = vadd.f32 %v2282_v53, %v2281_v47 }
 0x138   : > { %v1397_v36 = vadd.f32 %v2972_v27, %v1183_v16  ;;  %v1186_v37 = vadd.f32 %v2371_v34, %v2974_v29  ;;  %2488 = vmatprep.mubr.bf16.mxu0 %v1457_v35 }
 0x13a   : > { %v1398_v40 = vadd.f32 %v2972_v27, %v1186_v37  ;;  %v2372_v41 = vpop.f32.mrb[32].mxu1  ;;  %v1429_v48 = vmax.f32 %v1397_v36, 0.0  ;;  %v2284_v61 = vpop.f32.mrb[32].mxu0 }
 0x13b   : > { %v2373_v44 = vpop.f32.mrb[33].mxu1  ;;  %v2285_v3 = vpop.f32.mrb[33].mxu0 }
 0x13c   : > { %v1430_v50 = vmax.f32 %v1398_v40, 0.0  ;;  %v2374_v51 = vadd.f32 %v2373_v44, %v2372_v41  ;;  %v2375_v22 = vpop.f32.mrb[34].mxu1  ;;  %v3006_v7 = vadd.f32 %v2285_v3, %v2284_v61  ;;  %v2287_v62 = vpop.f32.mrb[34].mxu0 }
 0x13d   : > { %v2376_v54 = vpop.f32.mrb[35].mxu1  ;;  %v2288_v13 = vpop.f32.mrb[35].mxu0 }
 0x13e   : > { %v1191_v29 = vadd.f32 %v2374_v51, %v2978_v39  ;;  %v2377_v56 = vadd.f32 %v2376_v54, %v2375_v22  ;;  %v1458_v58 = vpack.c.bf16 %v1430_v50, %v1429_v48  ;;  %v3008_v15 = vadd.f32 %v2288_v13, %v2287_v62 }
 0x140   : > { %v1399_v59 = vadd.f32 %v2972_v27, %v1191_v29  ;;  %v1194_v60 = vadd.f32 %v2377_v56, %v2980_v49  ;;  %2489 = vmatmul.mubr.bf16.gmra.mrb[52].mxu0 %v1458_v58 }
 0x142   : > { %v1400_v1 = vadd.f32 %v2972_v27, %v1194_v60  ;;  %v2378_v2 = vpop.f32.mrb[36].mxu1  ;;  %v1431_v8 = vmax.f32 %v1399_v59, 0.0  ;;  %v2290_v23 = vpop.f32.mrb[36].mxu0 }
 0x143   : > { %v2379_v6 = vpop.f32.mrb[37].mxu1  ;;  %v2291_v28 = vpop.f32.mrb[37].mxu0 }
 0x144   : > { %v1432_v11 = vmax.f32 %v1400_v1, 0.0  ;;  %v2380_v4 = vadd.f32 %v2379_v6, %v2378_v2  ;;  %v2381_v39 = vpop.f32.mrb[38].mxu1  ;;  %v3014_v31 = vadd.f32 %v2291_v28, %v2290_v23  ;;  %v2293_v32 = vpop.f32.mrb[38].mxu0 }
 0x145   : > { %v2382_v14 = vpop.f32.mrb[39].mxu1  ;;  %v2294_v35 = vpop.f32.mrb[39].mxu0 }
 0x146   : > { %v1199_v49 = vadd.f32 %v2380_v4, %v2984_v63  ;;  %v2383_v18 = vadd.f32 %v2382_v14, %v2381_v39  ;;  %v1459_v19 = vpack.c.bf16 %v1432_v11, %v1431_v8  ;;  %v2295_v37 = vadd.f32 %v2294_v35, %v2293_v32 }
 0x148   : > { %v1401_v20 = vadd.f32 %v2972_v27, %v1199_v49  ;;  %v1202_v21 = vadd.f32 %v2383_v18, %v2986_v9  ;;  %2492 = vmatprep.mubr.bf16.mxu0 %v1459_v19 }
 0x14a   : > { %v1402_v25 = vadd.f32 %v2972_v27, %v1202_v21  ;;  %v2384_v26 = vpop.f32.mrb[40].mxu1  ;;  %v1433_v10 = vmax.f32 %v1401_v20, 0.0  ;;  %v2296_v44 = vpop.f32.mrb[40].mxu0 }
 0x14b   : > { %v2385_v30 = vpop.f32.mrb[41].mxu1  ;;  %v2297_v50 = vpop.f32.mrb[41].mxu0 }
 0x14c   : > { %v1434_v16 = vmax.f32 %v1402_v25, 0.0  ;;  %v2386_v34 = vadd.f32 %v2385_v30, %v2384_v26  ;;  %v2387_v63 = vpop.f32.mrb[42].mxu1  ;;  %v2298_v22 = vadd.f32 %v2297_v50, %v2296_v44  ;;  %v2299_v53 = vpop.f32.mrb[42].mxu0 }
 0x14d   : > { %v2388_v36 = vpop.f32.mrb[43].mxu1 }
 0x14e   : > { %v1207_v38 = vadd.f32 %v2386_v34, %v2990_v24  ;;  %v2389_v9 = vadd.f32 %v2388_v36, %v2387_v63  ;;  %v1460_v40 = vpack.c.bf16 %v1434_v16, %v1433_v10  ;;  %v2300_v24 = vpop.f32.mrb[43].mxu0 }
 0x14f   : > { %v2301_v60 = vadd.f32 %v2300_v24, %v2299_v53 }
 0x150   : > { %v1403_v41 = vadd.f32 %v2972_v27, %v1207_v38  ;;  %v1210_v43 = vadd.f32 %v2389_v9, %v2992_v33  ;;  %2493 = vmatmul.mubr.bf16.gmra.mrb[56].mxu0 %v1460_v40 }
 0x152   : > { %v1404_v47 = vadd.f32 %v2972_v27, %v1210_v43  ;;  %v2390_v48 = vpop.f32.mrb[44].mxu1  ;;  %v1435_v54 = vmax.f32 %v1403_v41, 0.0  ;;  %v2302_v6 = vpop.f32.mrb[44].mxu0 }
 0x153   : > { %v2391_v51 = vpop.f32.mrb[45].mxu1  ;;  %v2303_v11 = vpop.f32.mrb[45].mxu0 }
 0x154   : > { %v1436_v29 = vmax.f32 %v1404_v47, 0.0  ;;  %v2392_v56 = vadd.f32 %v2391_v51, %v2390_v48  ;;  %v2393_v58 = vpop.f32.mrb[46].mxu1  ;;  %v2304_v39 = vadd.f32 %v2303_v11, %v2302_v6  ;;  %v2305_v13 = vpop.f32.mrb[46].mxu0 }
 0x155   : > { %v2394_v59 = vpop.f32.mrb[47].mxu1 }
 0x156   : > { %v1215_v61 = vadd.f32 %v2392_v56, %v2998_v46  ;;  %v2395_v1 = vadd.f32 %v2394_v59, %v2393_v58  ;;  %v1461_v33 = vpack.c.bf16 %v1436_v29, %v1435_v54  ;;  %v2306_v46 = vpop.f32.mrb[47].mxu0 }
 0x157   : > { %v2307_v21 = vadd.f32 %v2306_v46, %v2305_v13 }
 0x158   : > { %v1405_v2 = vadd.f32 %v2972_v27, %v1215_v61  ;;  %v1218_v3 = vadd.f32 %v2395_v1, %v3000_v55  ;;  %2496 = vmatprep.mubr.bf16.mxu0 %v1461_v33 }
 0x15a   : > { %v1406_v62 = vadd.f32 %v2972_v27, %v1218_v3  ;;  %v2396_v8 = vpop.f32.mrb[48].mxu1  ;;  %v1437_v14 = vmax.f32 %v1405_v2, 0.0 }
 0x15b   : > { %v2397_v4 = vpop.f32.mrb[49].mxu1 }
 0x15c   : > { %v1438_v49 = vmax.f32 %v1406_v62, 0.0  ;;  %v2398_v18 = vadd.f32 %v2397_v4, %v2396_v8  ;;  %v2399_v19 = vpop.f32.mrb[50].mxu1 }
 0x15d   : > { %v2400_v20 = vpop.f32.mrb[51].mxu1 }
 0x15e   : > { %v1223_v23 = vadd.f32 %v2398_v18, %v3006_v7  ;;  %v2401_v25 = vadd.f32 %v2400_v20, %v2399_v19  ;;  %v1462_v55 = vpack.c.bf16 %v1438_v49, %v1437_v14 }
 0x160   : > { %v1407_v26 = vadd.f32 %v2972_v27, %v1223_v23  ;;  %v1226_v28 = vadd.f32 %v2401_v25, %v3008_v15  ;;  %2497 = vmatmul.mubr.bf16.gmra.mrb[60].mxu0 %v1462_v55 }
 0x162   : > { %v1408_v30 = vadd.f32 %v2972_v27, %v1226_v28  ;;  %v2402_v32 = vpop.f32.mrb[52].mxu1  ;;  %v1439_v16 = vmax.f32 %v1407_v26, 0.0 }
 0x163   : > { %v2403_v10 = vpop.f32.mrb[53].mxu1 }
 0x164   : > { %v1440_v34 = vmax.f32 %v1408_v30, 0.0  ;;  %v2404_v63 = vadd.f32 %v2403_v10, %v2402_v32  ;;  %v2405_v35 = vpop.f32.mrb[54].mxu1 }
 0x165   : > { %v2406_v36 = vpop.f32.mrb[55].mxu1 }
 0x166   : > { %v1231_v38 = vadd.f32 %v2404_v63, %v3014_v31  ;;  %v2407_v9 = vadd.f32 %v2406_v36, %v2405_v35  ;;  %v1463_v7 = vpack.c.bf16 %v1440_v34, %v1439_v16 }
 0x168   : > { %v1409_v40 = vadd.f32 %v2972_v27, %v1231_v38  ;;  %v1234_v41 = vadd.f32 %v2407_v9, %v2295_v37  ;;  %2500 = vmatprep.mubr.bf16.mxu0 %v1463_v7 }
 0x16a   : > { %v1410_v15 = vadd.f32 %v2972_v27, %v1234_v41  ;;  %v2408_v43 = vpop.f32.mrb[56].mxu1  ;;  %v1441_v47 = vmax.f32 %v1409_v40, 0.0 }
 0x16b   : > { %v2409_v44 = vpop.f32.mrb[57].mxu1 }
 0x16c   : > { %v1442_v48 = vmax.f32 %v1410_v15, 0.0  ;;  %v2410_v50 = vadd.f32 %v2409_v44, %v2408_v43  ;;  %v2411_v51 = vpop.f32.mrb[58].mxu1 }
 0x16d   : > { %v2412_v53 = vpop.f32.mrb[59].mxu1 }
 0x16e   : > { %v1239_v54 = vadd.f32 %v2410_v50, %v2298_v22  ;;  %v2413_v29 = vadd.f32 %v2412_v53, %v2411_v51  ;;  %v1464_v56 = vpack.c.bf16 %v1442_v48, %v1441_v47 }
 0x170   : > { %v1411_v31 = vadd.f32 %v2972_v27, %v1239_v54  ;;  %v1242_v58 = vadd.f32 %v2413_v29, %v2301_v60  ;;  %2501 = vmatmul.mubr.bf16.gmra.mrb[64].mxu0 %v1464_v56 }
 0x172   : > { %v1412_v24 = vadd.f32 %v2972_v27, %v1242_v58  ;;  %v2414_v37 = vpop.f32.mrb[60].mxu1  ;;  %v1443_v61 = vmax.f32 %v1411_v31, 0.0 }
 0x173   : > { %v2415_v59 = vpop.f32.mrb[61].mxu1 }
 0x174   : > { %v1444_v1 = vmax.f32 %v1412_v24, 0.0  ;;  %v2416_v33 = vadd.f32 %v2415_v59, %v2414_v37  ;;  %v2417_v2 = vpop.f32.mrb[62].mxu1 }
 0x175   : > { %v2418_v3 = vpop.f32.mrb[63].mxu1 }
 0x176   : > { %v1247_v6 = vadd.f32 %v2416_v33, %v2304_v39  ;;  %v2419_v62 = vadd.f32 %v2418_v3, %v2417_v2  ;;  %v1465_v8 = vpack.c.bf16 %v1444_v1, %v1443_v61 }
 0x178   : > { %v1413_v22 = vadd.f32 %v2972_v27, %v1247_v6  ;;  %v1250_v11 = vadd.f32 %v2419_v62, %v2307_v21  ;;  %2504 = vmatprep.mubr.bf16.mxu0 %v1465_v8 }
 0x17a   : > { %v1414_v4 = vadd.f32 %v2972_v27, %v1250_v11  ;;  %v2420_v60 = vpop.f32.mrb[64].mxu1  ;;  %v1445_v14 = vmax.f32 %v1413_v22, 0.0 }
 0x17b   : > { %v2421_v13 = vpop.f32.mrb[65].mxu1 }
 0x17c   : > { %v1446_v49 = vmax.f32 %v1414_v4, 0.0  ;;  %v2422_v18 = vadd.f32 %v2421_v13, %v2420_v60  ;;  %v2423_v19 = vpop.f32.mrb[66].mxu1 }
 0x17d   : > { %v2424_v46 = vpop.f32.mrb[67].mxu1 }
 0x17e   : > { %v1255_v20 = vadd.f32 %v2422_v18, %v2951_v42  ;;  %v2425_v23 = vadd.f32 %v2424_v46, %v2423_v19  ;;  %v1466_v25 = vpack.c.bf16 %v1446_v49, %v1445_v14 }
 0x180   : > { %v1415_v39 = vadd.f32 %v2972_v27, %v1255_v20  ;;  %v1258_v55 = vadd.f32 %v2425_v23, %v2953_v45  ;;  %2505 = vmatmul.mubr.bf16.gmra.mrb[68].mxu0 %v1466_v25 }
 0x182   : > { %v1416_v21 = vadd.f32 %v2972_v27, %v1258_v55  ;;  %v2426_v26 = vpop.f32.mrb[68].mxu1  ;;  %v1447_v30 = vmax.f32 %v1415_v39, 0.0 }
 0x183   : > { %v2427_v28 = vpop.f32.mrb[69].mxu1 }
 0x184   : > { %v1448_v32 = vmax.f32 %v1416_v21, 0.0  ;;  %v2428_v10 = vadd.f32 %v2427_v28, %v2426_v26  ;;  %v2429_v16 = vpop.f32.mrb[70].mxu1 }
 0x185   : > { %v2430_v34 = vpop.f32.mrb[71].mxu1 }
 0x186   : > { %v1263_v63 = vadd.f32 %v2428_v10, %v2955_v52  ;;  %v2431_v35 = vadd.f32 %v2430_v34, %v2429_v16  ;;  %v1467_v42 = vpack.c.bf16 %v1448_v32, %v1447_v30 }
 0x188   : > { %v1417_v36 = vadd.f32 %v2972_v27, %v1263_v63  ;;  %v1266_v38 = vadd.f32 %v2431_v35, %v2957_v57  ;;  %2508 = vmatprep.mubr.bf16.mxu0 %v1467_v42 }
 0x18a   : > { %v1418_v45 = vadd.f32 %v2972_v27, %v1266_v38  ;;  %v2432_v9 = vpop.f32.mrb[72].mxu1  ;;  %v1449_v40 = vmax.f32 %v1417_v36, 0.0 }
 0x18b   : > { %v2433_v7 = vpop.f32.mrb[73].mxu1 }
 0x18c   : > { %v1450_v41 = vmax.f32 %v1418_v45, 0.0  ;;  %v2434_v15 = vadd.f32 %v2433_v7, %v2432_v9  ;;  %v2435_v43 = vpop.f32.mrb[74].mxu1 }
 0x18d   : > { %v2436_v44 = vpop.f32.mrb[75].mxu1 }
 0x18e   : > { %v1271_v47 = vadd.f32 %v2434_v15, %v2959_v0  ;;  %v2437_v48 = vadd.f32 %v2436_v44, %v2435_v43  ;;  %v1468_v52 = vpack.c.bf16 %v1450_v41, %v1449_v40 }
 0x190   : > { %v1419_v50 = vadd.f32 %v2972_v27, %v1271_v47  ;;  %v1274_v51 = vadd.f32 %v2437_v48, %v2961_v5  ;;  %2509 = vmatmul.mubr.bf16.gmra.mrb[72].mxu0 %v1468_v52 }
 0x192   : > { %v1420_v57 = vadd.f32 %v2972_v27, %v1274_v51  ;;  %v2438_v53 = vpop.f32.mrb[76].mxu1  ;;  %v1451_v29 = vmax.f32 %v1419_v50, 0.0 }
 0x193   : > { %v2439_v54 = vpop.f32.mrb[77].mxu1 }
 0x194   : > { %v1452_v56 = vmax.f32 %v1420_v57, 0.0  ;;  %v2440_v31 = vadd.f32 %v2439_v54, %v2438_v53  ;;  %v2441_v58 = vpop.f32.mrb[78].mxu1 }
 0x195   : > { %v2442_v24 = vpop.f32.mrb[79].mxu1 }
 0x196   : > { %v1279_v37 = vadd.f32 %v2440_v31, %v2963_v12  ;;  %v2443_v0 = vadd.f32 %v2442_v24, %v2441_v58  ;;  %v1469_v59 = vpack.c.bf16 %v1452_v56, %v1451_v29 }
 0x198   : > { %v1421_v61 = vadd.f32 %v2972_v27, %v1279_v37  ;;  %v1282_v1 = vadd.f32 %v2443_v0, %v2965_v17  ;;  %2512 = vmatprep.mubr.bf16.mxu0 %v1469_v59 }
 0x19a   : > { %v1422_v5 = vadd.f32 %v2972_v27, %v1282_v1  ;;  %v1453_v33 = vmax.f32 %v1421_v61, 0.0 }
 0x19c   : > { %v1454_v2 = vmax.f32 %v1422_v5, 0.0 }
 0x19e   : > { %v1470_v3 = vpack.c.bf16 %v1454_v2, %v1453_v33 }
 0x1a0   : > { %2513 = vmatmul.mubr.bf16.gmra.mrb[76].mxu0 %v1470_v3 }
 0x203   : > { %v2486_v6 = vpop.f32.mrb[48].mxu0 }
 0x204   : > { %v1569_v62 = vpop.f32.mrb[49].mxu0 }
 0x205   : > { %v2487_v12 = vpop.f32.mrb[50].mxu0 }
 0x206   : > { %v2133_v17 = vpack.c.bf16 %v2487_v12, %v2486_v6  ;;  %v1572_v8 = vpop.f32.mrb[51].mxu0 }
 0x207   : > { %v2128_v27 = vpack.c.bf16 %v1572_v8, %v1569_v62 }
 0x208   : > { %2205 = vst [vmem:[%s3055_s23 + $0x8] sm:$0xff] %v2133_v17  }
 0x209   : > { %2129 = vst [vmem:[%s3055_s23] sm:$0xff] %v2128_v27  }
 0x213   : > { %v2490_v22 = vpop.f32.mrb[52].mxu0 }
 0x214   : > { %v1585_v11 = vpop.f32.mrb[53].mxu0 }
 0x215   : > { %v2491_v4 = vpop.f32.mrb[54].mxu0 }
 0x216   : > { %v2143_v60 = vpack.c.bf16 %v2491_v4, %v2490_v22  ;;  %v1588_v13 = vpop.f32.mrb[55].mxu0 }
 0x217   : > { %v2138_v14 = vpack.c.bf16 %v1588_v13, %v1585_v11 }
 0x218   : > { %2207 = vst [vmem:[%s3055_s23 + $0x18] sm:$0xff] %v2143_v60  }
 0x219   : > { %2206 = vst [vmem:[%s3055_s23 + $0x10] sm:$0xff] %v2138_v14  }
 0x223   : > { %v2494_v49 = vpop.f32.mrb[56].mxu0 }
 0x224   : > { %v1601_v18 = vpop.f32.mrb[57].mxu0 }
 0x225   : > { %v2495_v19 = vpop.f32.mrb[58].mxu0 }
 0x226   : > { %v2153_v46 = vpack.c.bf16 %v2495_v19, %v2494_v49  ;;  %v1604_v20 = vpop.f32.mrb[59].mxu0 }
 0x227   : > { %v2148_v23 = vpack.c.bf16 %v1604_v20, %v1601_v18 }
 0x228   : > { %2209 = vst [vmem:[%s3055_s23 + $0x28] sm:$0xff] %v2153_v46  }
 0x229   : > { %2208 = vst [vmem:[%s3055_s23 + $0x20] sm:$0xff] %v2148_v23  }
 0x233   : > { %v2498_v25 = vpop.f32.mrb[60].mxu0 }
 0x234   : > { %v1617_v39 = vpop.f32.mrb[61].mxu0 }
 0x235   : > { %v2499_v55 = vpop.f32.mrb[62].mxu0 }
 0x236   : > { %v2163_v21 = vpack.c.bf16 %v2499_v55, %v2498_v25  ;;  %v1620_v26 = vpop.f32.mrb[63].mxu0 }
 0x237   : > { %v2158_v28 = vpack.c.bf16 %v1620_v26, %v1617_v39 }
 0x238   : > { %2211 = vst [vmem:[%s3055_s23 + $0x38] sm:$0xff] %v2163_v21  }
 0x239   : > { %2210 = vst [vmem:[%s3055_s23 + $0x30] sm:$0xff] %v2158_v28  }
 0x243   : > { %v2502_v30 = vpop.f32.mrb[64].mxu0 }
 0x244   : > { %v1633_v32 = vpop.f32.mrb[65].mxu0 }
 0x245   : > { %v2503_v10 = vpop.f32.mrb[66].mxu0 }
 0x246   : > { %v2173_v16 = vpack.c.bf16 %v2503_v10, %v2502_v30  ;;  %v1636_v34 = vpop.f32.mrb[67].mxu0 }
 0x247   : > { %v2168_v63 = vpack.c.bf16 %v1636_v34, %v1633_v32 }
 0x248   : > { %2213 = vst [vmem:[%s3055_s23 + $0x48] sm:$0xff] %v2173_v16  }
 0x249   : > { %2212 = vst [vmem:[%s3055_s23 + $0x40] sm:$0xff] %v2168_v63  }
 0x253   : > { %v2506_v35 = vpop.f32.mrb[68].mxu0 }
 0x254   : > { %v1649_v42 = vpop.f32.mrb[69].mxu0 }
 0x255   : > { %v2507_v36 = vpop.f32.mrb[70].mxu0 }
 0x256   : > { %v2183_v38 = vpack.c.bf16 %v2507_v36, %v2506_v35  ;;  %v1652_v45 = vpop.f32.mrb[71].mxu0 }
 0x257   : > { %v2178_v9 = vpack.c.bf16 %v1652_v45, %v1649_v42 }
 0x258   : > { %2215 = vst [vmem:[%s3055_s23 + $0x58] sm:$0xff] %v2183_v38  }
 0x259   : > { %2214 = vst [vmem:[%s3055_s23 + $0x50] sm:$0xff] %v2178_v9  }
 0x263   : > { %v2510_v7 = vpop.f32.mrb[72].mxu0 }
 0x264   : > { %v1665_v40 = vpop.f32.mrb[73].mxu0 }
 0x265   : > { %v2511_v41 = vpop.f32.mrb[74].mxu0 }
 0x266   : > { %v2193_v15 = vpack.c.bf16 %v2511_v41, %v2510_v7  ;;  %v1668_v43 = vpop.f32.mrb[75].mxu0 }
 0x267   : > { %v2188_v44 = vpack.c.bf16 %v1668_v43, %v1665_v40 }
 0x268   : > { %2217 = vst [vmem:[%s3055_s23 + $0x68] sm:$0xff] %v2193_v15  }
 0x269   : > { %2216 = vst [vmem:[%s3055_s23 + $0x60] sm:$0xff] %v2188_v44  }
 0x273   : > { %v2514_v47 = vpop.f32.mrb[76].mxu0 }
 0x274   : > { %v1681_v48 = vpop.f32.mrb[77].mxu0 }
 0x275   : > { %v2515_v52 = vpop.f32.mrb[78].mxu0 }
 0x276   : > { %v2203_v50 = vpack.c.bf16 %v2515_v52, %v2514_v47  ;;  %v1684_v51 = vpop.f32.mrb[79].mxu0 }
 0x277   : > { %v2198_v57 = vpack.c.bf16 %v1684_v51, %v1681_v48 }
 0x278   : > { %2219 = vst [vmem:[%s3055_s23 + $0x78] sm:$0xff] %v2203_v50  }
 0x279   : > { %2218 = vst [vmem:[%s3055_s23 + $0x70] sm:$0xff] %v2198_v57  }
 0x27a PF: > { %s14_s17 = sadd.s32 1, %s2714_s17   ;;  %s3087_s15 = smov %s2710_s16 }
 0x27b   : > { %p11_p5 = scmp.ge.s32.totalorder %s14_s17, 4   ;;  %s3088_s16 = smov %s3090_s18 }
 0x27d   :  { %13 = sbr.rel (!%p11_p5) target bundleno = 2 (0x2), region = 77 }

// kernel: gcn_forward.5
= control target key start
LH: loop header
LB: loop body
LE: loop exit
PB: predicated region body
PF: predicated region fallthrough
CT: control target
= control target key end

     0   :  { %s2592_s12 = smov 0   ;;  %s2594_s13 = smov 0   ;;  %s3316_s0 = inlined_call_operand.vmem [shape: bf16[512,512], index: 0, kind: input, shape index: {}]   ;;  %s3317_s1 = inlined_call_operand.vmem [shape: bf16[512,128], index: 1, kind: input, shape index: {}]   ;;  %s3318_s2 = inlined_call_operand.vmem [shape: f32[1,128], index: 2, kind: input, shape index: {}]   ;;  %s3319_s3 = inlined_call_operand.vmem [shape: f32[512,128], index: 3, kind: output, shape index: {}]  }
   0x1   :  { %s2596_s14 = smov 0  }
   0x2 LB: > { %s25_s15 = sadd.s32 1, %s2566_s13  ;;  %p1938_p0 = scmp.ge.s32.totalorder %s2570_s14, 1  ;;  %s2570_s14 = sphi %s2596_s14, %s13_s14   ;;  %s2566_s13 = sphi %s2594_s13, %s3321_s13   ;;  %s2562_s12 = sphi %s2592_s12, %s3320_s12  }
   0x3   : > { %p27_p1 = scmp.ge.s32.totalorder %s25_s15, 2  ;;  %p169_p2 = scmp.lt.s32.totalorder %s2570_s14, 3 }
   0x5   : > { %s3323_s15 = smov (%p27_p1, %s25_s15), 0  ;;  %p170_p3 = pnand %p1938_p0, %p169_p2 }
   0x6   : > { %v2292_v0 = vld [vmem:[%s3317_s1 + $0x40] sm:$0xff] (!%p170_p3)   ;;  %v2296_v4 = vld [vmem:[%s3317_s1 + $0x48] sm:$0xff] (!%p170_p3)   ;;  %v2300_v8 = vld [vmem:[%s3317_s1 + $0x50] sm:$0xff] (!%p170_p3)   ;;  %s1939_s25 = sshll.u32 (!%p170_p3), %s2562_s12, 5 }
   0x7   : > { %173 = sbr.rel (%p170_p3) target bundleno = 700 (0x2bc), region = 32  ;;  %v2293_v1 = vld [vmem:[%s3317_s1 + $0xc0] sm:$0xff] (!%p170_p3)   ;;  %2044 = vmatprep.subr.bf16.mxu0 (!%p170_p3), %v2292_v0  ;;  %v2297_v5 = vld [vmem:[%s3317_s1 + $0xc8] sm:$0xff] (!%p170_p3)   ;;  %v2301_v9 = vld [vmem:[%s3317_s1 + $0xd0] sm:$0xff] (!%p170_p3)   ;;  %p205_p4 = scmp.lt.s32.totalorder (!%p170_p3), %s1939_s25, 63 }
   0x8   : > { %v2294_v2 = vld [vmem:[%s3317_s1] sm:$0xff] (!%p170_p3)   ;;  %2156 = vmatprep.subr.bf16.mxu1 (!%p170_p3), %v2293_v1  ;;  %v2298_v6 = vld [vmem:[%s3317_s1 + $0x8] sm:$0xff] (!%p170_p3)   ;;  %v2302_v10 = vld [vmem:[%s3317_s1 + $0x10] sm:$0xff] (!%p170_p3)  }
   0x9   : > { %v2295_v3 = vld [vmem:[%s3317_s1 + $0x80] sm:$0xff] (!%p170_p3)   ;;  %2045 = vmatpush3.bf16.msra.mxu0 (!%p170_p3), %v2294_v2  ;;  %v2299_v7 = vld [vmem:[%s3317_s1 + $0x88] sm:$0xff] (!%p170_p3)   ;;  %v2303_v11 = vld [vmem:[%s3317_s1 + $0x90] sm:$0xff] (!%p170_p3)  }
   0xa   : > { %2157 = vmatpush3.bf16.msra.mxu1 (!%p170_p3), %v2295_v3  ;;  %2046 = vmatprep.subr.bf16.mxu0 (!%p170_p3), %v2296_v4  ;;  %v2304_v12 = vld [vmem:[%s3317_s1 + $0x58] sm:$0xff] (!%p170_p3)   ;;  %v2308_v16 = vld [vmem:[%s3317_s1 + $0x60] sm:$0xff] (!%p170_p3)   ;;  %v2312_v20 = vld [vmem:[%s3317_s1 + $0x68] sm:$0xff] (!%p170_p3)  }
   0xb   : > { %2158 = vmatprep.subr.bf16.mxu1 (!%p170_p3), %v2297_v5  ;;  %v2305_v13 = vld [vmem:[%s3317_s1 + $0xd8] sm:$0xff] (!%p170_p3)   ;;  %v2309_v17 = vld [vmem:[%s3317_s1 + $0xe0] sm:$0xff] (!%p170_p3)   ;;  %v2313_v21 = vld [vmem:[%s3317_s1 + $0xe8] sm:$0xff] (!%p170_p3)  }
   0xc   : > { %v2306_v14 = vld [vmem:[%s3317_s1 + $0x18] sm:$0xff] (!%p170_p3)   ;;  %v2310_v18 = vld [vmem:[%s3317_s1 + $0x20] sm:$0xff] (!%p170_p3)   ;;  %v2314_v22 = vld [vmem:[%s3317_s1 + $0x28] sm:$0xff] (!%p170_p3)  }
   0xd   : > { %2047 = vmatpush3.bf16.msra.mxu0 (!%p170_p3), %v2298_v6  ;;  %v2307_v15 = vld [vmem:[%s3317_s1 + $0x98] sm:$0xff] (!%p170_p3)   ;;  %v2311_v19 = vld [vmem:[%s3317_s1 + $0xa0] sm:$0xff] (!%p170_p3)   ;;  %v2315_v23 = vld [vmem:[%s3317_s1 + $0xa8] sm:$0xff] (!%p170_p3)  }
   0xe   : > { %2159 = vmatpush3.bf16.msra.mxu1 %v2299_v7  ;;  %2048 = vmatprep.subr.bf16.mxu0 %v2300_v8  ;;  %s3325_s25 = smov (!%p205_p4, %s1939_s25), 63  ;;  %v2316_v24 = vld [vmem:[%s3317_s1 + $0x70] sm:$0xff]   ;;  %v2320_v28 = vld [vmem:[%s3317_s1 + $0x78] sm:$0xff]  }
   0xf   : > { %2160 = vmatprep.subr.bf16.mxu1 %v2301_v9  ;;  %v2317_v25 = vld [vmem:[%s3317_s1 + $0xf0] sm:$0xff]   ;;  %s2043_s24 = sshll.u32 %s3325_s25, 4  ;;  %v2321_v29 = vld [vmem:[%s3317_s1 + $0xf8] sm:$0xff]   ;;  %s1943_s17 = sshll.u32 %s3325_s25, 3 }
  0x10   : > { %v2318_v26 = vld [vmem:[%s3317_s1 + $0x30] sm:$0xff]   ;;  %s2709_s12 = scalar_lea.vmem %s3316_s0, %s2043_s24  ;;  %v2322_v30 = vld [vmem:[%s3317_s1 + $0x38] sm:$0xff]   ;;  %s3177_s20 = scalar_lea.vmem %s3319_s3, %s1943_s17 }
  0x11   : > { %2049 = vmatpush3.bf16.msra.mxu0 %v2302_v10  ;;  %v2319_v27 = vld [vmem:[%s3317_s1 + $0xb0] sm:$0xff]   ;;  %v2323_v31 = vld [vmem:[%s3317_s1 + $0xb8] sm:$0xff]  }
  0x12   : > { %2161 = vmatpush3.bf16.msra.mxu1 %v2303_v11  ;;  %2050 = vmatprep.subr.bf16.mxu0 %v2304_v12  ;;  %v2324_v32 = vld [vmem:[%s2709_s12] ss:$16 sps:$4 sm:$0xff]   ;;  %v2326_v33 = vld [vmem:[%s2709_s12 + $0x4] ss:$16 sps:$4 sm:$0xff]   ;;  %v2327_v34 = vld [vmem:[%s2709_s12 + $0x8] ss:$16 sps:$4 sm:$0xff]  }
  0x13   : > { %2162 = vmatprep.subr.bf16.mxu1 %v2305_v13  ;;  %v2329_v35 = vld [vmem:[%s2709_s12 + $0xc] ss:$16 sps:$4 sm:$0xff]   ;;  %968 = vmatprep.mubr.bf16.mxu0 %v2326_v33  ;;  %v2330_v36 = vld [vmem:[%s2709_s12 + $0x24] ss:$16 sps:$4 sm:$0xff]   ;;  %v2334_v38 = vld [vmem:[%s2709_s12 + $0x20] ss:$16 sps:$4 sm:$0xff]  }
  0x14   : > { %1129 = vmatprep.mubr.bf16.mxu1 %v2329_v35  ;;  %v2332_v37 = vld [vmem:[%s2709_s12 + $0x2c] ss:$16 sps:$4 sm:$0xff]   ;;  %v2335_v39 = vld [vmem:[%s2709_s12 + $0x28] ss:$16 sps:$4 sm:$0xff]   ;;  %v2336_v40 = vld [vmem:[%s2709_s12 + $0x44] ss:$16 sps:$4 sm:$0xff]  }
  0x15   : > { %2051 = vmatpush3.bf16.msra.mxu0 %v2306_v14  ;;  %v2338_v41 = vld [vmem:[%s2709_s12 + $0x4c] ss:$16 sps:$4 sm:$0xff]   ;;  %v2340_v42 = vld [vmem:[%s2709_s12 + $0x40] ss:$16 sps:$4 sm:$0xff]   ;;  %v2341_v43 = vld [vmem:[%s2709_s12 + $0x48] ss:$16 sps:$4 sm:$0xff]  }
  0x16   : > { %2163 = vmatpush3.bf16.msra.mxu1 %v2307_v15  ;;  %2052 = vmatprep.subr.bf16.mxu0 %v2308_v16  ;;  %v2342_v44 = vld [vmem:[%s2709_s12 + $0x64] ss:$16 sps:$4 sm:$0xff]   ;;  %v2344_v45 = vld [vmem:[%s2709_s12 + $0x6c] ss:$16 sps:$4 sm:$0xff]   ;;  %v2346_v46 = vld [vmem:[%s2709_s12 + $0x60] ss:$16 sps:$4 sm:$0xff]  }
  0x17   : > { %2164 = vmatprep.subr.bf16.mxu1 %v2309_v17  ;;  %v2347_v47 = vld [vmem:[%s2709_s12 + $0x68] ss:$16 sps:$4 sm:$0xff]   ;;  %v2348_v48 = vld [vmem:[%s2709_s12 + $0x84] ss:$16 sps:$4 sm:$0xff]   ;;  %v2350_v49 = vld [vmem:[%s2709_s12 + $0x8c] ss:$16 sps:$4 sm:$0xff]  }
  0x18   : > { %v2352_v50 = vld [vmem:[%s2709_s12 + $0x80] ss:$16 sps:$4 sm:$0xff]   ;;  %v2353_v51 = vld [vmem:[%s2709_s12 + $0x88] ss:$16 sps:$4 sm:$0xff]   ;;  %v2354_v52 = vld [vmem:[%s2709_s12 + $0xa4] ss:$16 sps:$4 sm:$0xff]  }
  0x19   : > { %2053 = vmatpush3.bf16.msra.mxu0 %v2310_v18  ;;  %v2356_v53 = vld [vmem:[%s2709_s12 + $0xac] ss:$16 sps:$4 sm:$0xff]   ;;  %v2358_v54 = vld [vmem:[%s2709_s12 + $0xa0] ss:$16 sps:$4 sm:$0xff]   ;;  %v2359_v55 = vld [vmem:[%s2709_s12 + $0xa8] ss:$16 sps:$4 sm:$0xff]  }
  0x1a   : > { %2165 = vmatpush3.bf16.msra.mxu1 %v2311_v19  ;;  %2054 = vmatprep.subr.bf16.mxu0 %v2312_v20  ;;  %v2360_v56 = vld [vmem:[%s2709_s12 + $0xc4] ss:$16 sps:$4 sm:$0xff]   ;;  %v2362_v57 = vld [vmem:[%s2709_s12 + $0xcc] ss:$16 sps:$4 sm:$0xff]   ;;  %v2364_v58 = vld [vmem:[%s2709_s12 + $0xc0] ss:$16 sps:$4 sm:$0xff]  }
  0x1b   : > { %2166 = vmatprep.subr.bf16.mxu1 %v2313_v21  ;;  %v2365_v59 = vld [vmem:[%s2709_s12 + $0xc8] ss:$16 sps:$4 sm:$0xff]   ;;  %v2366_v60 = vld [vmem:[%s2709_s12 + $0xe4] ss:$16 sps:$4 sm:$0xff]   ;;  %v2368_v61 = vld [vmem:[%s2709_s12 + $0xec] ss:$16 sps:$4 sm:$0xff]  }
  0x1c   : > { %v2370_v62 = vld [vmem:[%s2709_s12 + $0xe0] ss:$16 sps:$4 sm:$0xff]   ;;  %v2371_v63 = vld [vmem:[%s2709_s12 + $0xe8] ss:$16 sps:$4 sm:$0xff]   ;;  %v2372_v0 = vld [vmem:[%s2709_s12 + $0x104] ss:$16 sps:$4 sm:$0xff]  }
  0x1d   : > { %2055 = vmatpush3.bf16.msra.mxu0 %v2314_v22  ;;  %v2374_v1 = vld [vmem:[%s2709_s12 + $0x10c] ss:$16 sps:$4 sm:$0xff]   ;;  %v2376_v2 = vld [vmem:[%s2709_s12 + $0x100] ss:$16 sps:$4 sm:$0xff]   ;;  %v2377_v3 = vld [vmem:[%s2709_s12 + $0x108] ss:$16 sps:$4 sm:$0xff]  }
  0x1e   : > { %2167 = vmatpush3.bf16.msra.mxu1 %v2315_v23  ;;  %2056 = vmatprep.subr.bf16.mxu0 %v2316_v24  ;;  %v2378_v4 = vld [vmem:[%s2709_s12 + $0x124] ss:$16 sps:$4 sm:$0xff]   ;;  %v2380_v5 = vld [vmem:[%s2709_s12 + $0x12c] ss:$16 sps:$4 sm:$0xff]   ;;  %v2382_v6 = vld [vmem:[%s2709_s12 + $0x120] ss:$16 sps:$4 sm:$0xff]  }
  0x1f   : > { %2168 = vmatprep.subr.bf16.mxu1 %v2317_v25  ;;  %v2383_v7 = vld [vmem:[%s2709_s12 + $0x128] ss:$16 sps:$4 sm:$0xff]   ;;  %v2384_v8 = vld [vmem:[%s2709_s12 + $0x144] ss:$16 sps:$4 sm:$0xff]   ;;  %v2386_v9 = vld [vmem:[%s2709_s12 + $0x14c] ss:$16 sps:$4 sm:$0xff]  }
  0x20   : > { %v2388_v10 = vld [vmem:[%s2709_s12 + $0x140] ss:$16 sps:$4 sm:$0xff]   ;;  %v2389_v11 = vld [vmem:[%s2709_s12 + $0x148] ss:$16 sps:$4 sm:$0xff]   ;;  %v2390_v12 = vld [vmem:[%s2709_s12 + $0x164] ss:$16 sps:$4 sm:$0xff]  }
  0x21   : > { %2057 = vmatpush3.bf16.msra.mxu0 %v2318_v26  ;;  %v2392_v13 = vld [vmem:[%s2709_s12 + $0x16c] ss:$16 sps:$4 sm:$0xff]   ;;  %v2394_v14 = vld [vmem:[%s2709_s12 + $0x160] ss:$16 sps:$4 sm:$0xff]   ;;  %v2395_v15 = vld [vmem:[%s2709_s12 + $0x168] ss:$16 sps:$4 sm:$0xff]  }
  0x22   : > { %2169 = vmatpush3.bf16.msra.mxu1 %v2319_v27  ;;  %2058 = vmatprep.subr.bf16.mxu0 %v2320_v28  ;;  %v2396_v16 = vld [vmem:[%s2709_s12 + $0x184] ss:$16 sps:$4 sm:$0xff]   ;;  %v2398_v17 = vld [vmem:[%s2709_s12 + $0x18c] ss:$16 sps:$4 sm:$0xff]   ;;  %v2400_v18 = vld [vmem:[%s2709_s12 + $0x180] ss:$16 sps:$4 sm:$0xff]  }
  0x23   : > { %2170 = vmatprep.subr.bf16.mxu1 %v2321_v29  ;;  %v2401_v19 = vld [vmem:[%s2709_s12 + $0x188] ss:$16 sps:$4 sm:$0xff]   ;;  %v2402_v20 = vld [vmem:[%s2709_s12 + $0x1a4] ss:$16 sps:$4 sm:$0xff]   ;;  %v2404_v21 = vld [vmem:[%s2709_s12 + $0x1ac] ss:$16 sps:$4 sm:$0xff]  }
  0x24   : > { %v2406_v22 = vld [vmem:[%s2709_s12 + $0x1a0] ss:$16 sps:$4 sm:$0xff]   ;;  %v2407_v23 = vld [vmem:[%s2709_s12 + $0x1a8] ss:$16 sps:$4 sm:$0xff]   ;;  %v2408_v24 = vld [vmem:[%s2709_s12 + $0x1c4] ss:$16 sps:$4 sm:$0xff]  }
  0x25   : > { %2059 = vmatpush3.bf16.msra.mxu0 %v2322_v30  ;;  %v2410_v25 = vld [vmem:[%s2709_s12 + $0x1cc] ss:$16 sps:$4 sm:$0xff]   ;;  %v2412_v26 = vld [vmem:[%s2709_s12 + $0x1c0] ss:$16 sps:$4 sm:$0xff]   ;;  %v2413_v27 = vld [vmem:[%s2709_s12 + $0x1c8] ss:$16 sps:$4 sm:$0xff]  }
  0x26   : > { %2171 = vmatpush3.bf16.msra.mxu1 %v2323_v31  ;;  %v2414_v28 = vld [vmem:[%s2709_s12 + $0x1e4] ss:$16 sps:$4 sm:$0xff]   ;;  %v2416_v29 = vld [vmem:[%s2709_s12 + $0x1ec] ss:$16 sps:$4 sm:$0xff]   ;;  %v2418_v30 = vld [vmem:[%s2709_s12 + $0x1e0] ss:$16 sps:$4 sm:$0xff]  }
  0x27   : > { %v2419_v31 = vld [vmem:[%s2709_s12 + $0x1e8] ss:$16 sps:$4 sm:$0xff]  }
  0x28   : > { %969 = vmatmul.mubr.bf16.vlgmr.msra.gmra.mrb[0].mxu0 %v2324_v32  ;;  %v1396_v32 = vlaneseq }
  0x29   : > { %1130 = vmatmul.mubr.bf16.vlgmr.msra.gmra.mrb[0].mxu1 %v2327_v34  ;;  %976 = vmatprep.mubr.bf16.mxu0 %v2330_v36 }
  0x2a   : > { %1137 = vmatprep.mubr.bf16.mxu1 %v2332_v37 }
  0x30   : > { %977 = vmatmul.mubr.bf16.gmra.mrb[4].mxu0 %v2334_v38 }
  0x31   : > { %1138 = vmatmul.mubr.bf16.gmra.mrb[4].mxu1 %v2335_v39  ;;  %984 = vmatprep.mubr.bf16.mxu0 %v2336_v40  ;;  %v2781_v39 = vand.u32 127, %v1396_v32 }
  0x32   : > { %1145 = vmatprep.mubr.bf16.mxu1 %v2338_v41 }
  0x33   : > { %vm1398_vm0 = vcmp.lt.s32.totalorder %v2781_v39, 8 }
  0x38   : > { %985 = vmatmul.mubr.bf16.gmra.mrb[8].mxu0 %v2340_v42 }
  0x39   : > { %1146 = vmatmul.mubr.bf16.gmra.mrb[8].mxu1 %v2341_v43  ;;  %992 = vmatprep.mubr.bf16.mxu0 %v2342_v44 }
  0x3a   : > { %1153 = vmatprep.mubr.bf16.mxu1 %v2344_v45  ;;  %v2786_v45 = vld [vmem:[%s3318_s2] ss:$0 sm:$0xff] }
  0x40   : > { %993 = vmatmul.mubr.bf16.gmra.mrb[12].mxu0 %v2346_v46 }
  0x41   : > { %1154 = vmatmul.mubr.bf16.gmra.mrb[12].mxu1 %v2347_v47  ;;  %1000 = vmatprep.mubr.bf16.mxu0 %v2348_v48 }
  0x42   : > { %1161 = vmatprep.mubr.bf16.mxu1 %v2350_v49 }
  0x48   : > { %1001 = vmatmul.mubr.bf16.gmra.mrb[16].mxu0 %v2352_v50 }
  0x49   : > { %1162 = vmatmul.mubr.bf16.gmra.mrb[16].mxu1 %v2353_v51  ;;  %1008 = vmatprep.mubr.bf16.mxu0 %v2354_v52 }
  0x4a   : > { %1169 = vmatprep.mubr.bf16.mxu1 %v2356_v53 }
  0x50   : > { %1009 = vmatmul.mubr.bf16.gmra.mrb[20].mxu0 %v2358_v54 }
  0x51   : > { %1170 = vmatmul.mubr.bf16.gmra.mrb[20].mxu1 %v2359_v55  ;;  %1016 = vmatprep.mubr.bf16.mxu0 %v2360_v56 }
  0x52   : > { %1177 = vmatprep.mubr.bf16.mxu1 %v2362_v57 }
  0x58   : > { %1017 = vmatmul.mubr.bf16.gmra.mrb[24].mxu0 %v2364_v58 }
  0x59   : > { %1178 = vmatmul.mubr.bf16.gmra.mrb[24].mxu1 %v2365_v59  ;;  %1024 = vmatprep.mubr.bf16.mxu0 %v2366_v60 }
  0x5a   : > { %1185 = vmatprep.mubr.bf16.mxu1 %v2368_v61 }
  0x60   : > { %1025 = vmatmul.mubr.bf16.gmra.mrb[28].mxu0 %v2370_v62 }
  0x61   : > { %1186 = vmatmul.mubr.bf16.gmra.mrb[28].mxu1 %v2371_v63  ;;  %1032 = vmatprep.mubr.bf16.mxu0 %v2372_v0 }
  0x62   : > { %1193 = vmatprep.mubr.bf16.mxu1 %v2374_v1 }
  0x68   : > { %1033 = vmatmul.mubr.bf16.gmra.mrb[32].mxu0 %v2376_v2 }
  0x69   : > { %1194 = vmatmul.mubr.bf16.gmra.mrb[32].mxu1 %v2377_v3  ;;  %1040 = vmatprep.mubr.bf16.mxu0 %v2378_v4 }
  0x6a   : > { %1201 = vmatprep.mubr.bf16.mxu1 %v2380_v5 }
  0x70   : > { %1041 = vmatmul.mubr.bf16.gmra.mrb[36].mxu0 %v2382_v6 }
  0x71   : > { %1202 = vmatmul.mubr.bf16.gmra.mrb[36].mxu1 %v2383_v7  ;;  %1048 = vmatprep.mubr.bf16.mxu0 %v2384_v8 }
  0x72   : > { %1209 = vmatprep.mubr.bf16.mxu1 %v2386_v9 }
  0x78   : > { %1049 = vmatmul.mubr.bf16.gmra.mrb[40].mxu0 %v2388_v10 }
  0x79   : > { %1210 = vmatmul.mubr.bf16.gmra.mrb[40].mxu1 %v2389_v11  ;;  %1056 = vmatprep.mubr.bf16.mxu0 %v2390_v12 }
  0x7a   : > { %1217 = vmatprep.mubr.bf16.mxu1 %v2392_v13 }
  0x80   : > { %1057 = vmatmul.mubr.bf16.gmra.mrb[44].mxu0 %v2394_v14 }
  0x81   : > { %1218 = vmatmul.mubr.bf16.gmra.mrb[44].mxu1 %v2395_v15  ;;  %1064 = vmatprep.mubr.bf16.mxu0 %v2396_v16 }
  0x82   : > { %1225 = vmatprep.mubr.bf16.mxu1 %v2398_v17 }
  0x88   : > { %1065 = vmatmul.mubr.bf16.gmra.mrb[48].mxu0 %v2400_v18 }
  0x89   : > { %1226 = vmatmul.mubr.bf16.gmra.mrb[48].mxu1 %v2401_v19  ;;  %1072 = vmatprep.mubr.bf16.mxu0 %v2402_v20 }
  0x8a   : > { %1233 = vmatprep.mubr.bf16.mxu1 %v2404_v21 }
  0x90   : > { %1073 = vmatmul.mubr.bf16.gmra.mrb[52].mxu0 %v2406_v22 }
  0x91   : > { %1234 = vmatmul.mubr.bf16.gmra.mrb[52].mxu1 %v2407_v23  ;;  %1080 = vmatprep.mubr.bf16.mxu0 %v2408_v24 }
  0x92   : > { %1241 = vmatprep.mubr.bf16.mxu1 %v2410_v25 }
  0x98   : > { %1081 = vmatmul.mubr.bf16.gmra.mrb[56].mxu0 %v2412_v26 }
  0x99   : > { %1242 = vmatmul.mubr.bf16.gmra.mrb[56].mxu1 %v2413_v27  ;;  %1088 = vmatprep.mubr.bf16.mxu0 %v2414_v28 }
  0x9a   : > { %1249 = vmatprep.mubr.bf16.mxu1 %v2416_v29 }
  0xa0   : > { %1089 = vmatmul.mubr.bf16.gmra.mrb[60].mxu0 %v2418_v30 }
  0xa1   : > { %1250 = vmatmul.mubr.bf16.gmra.mrb[60].mxu1 %v2419_v31 }
  0xfb   : > { %v2060_v33 = vpop.f32.mrb[0].mxu0 }
  0xfc   : > { %v2172_v34 = vpop.f32.mrb[0].mxu1  ;;  %v2061_v35 = vpop.f32.mrb[1].mxu0 }
  0xfd   : > { %v2062_v36 = vadd.f32 %v2061_v35, %v2060_v33  ;;  %v2173_v37 = vpop.f32.mrb[1].mxu1  ;;  %v2063_v38 = vpop.f32.mrb[2].mxu0 }
  0xfe   : > { %v2174_v40 = vadd.f32 %v2173_v37, %v2172_v34  ;;  %v2175_v41 = vpop.f32.mrb[2].mxu1  ;;  %v2064_v42 = vpop.f32.mrb[3].mxu0 }
  0xff   : > { %v2065_v43 = vadd.f32 %v2064_v42, %v2063_v38  ;;  %v2176_v44 = vpop.f32.mrb[3].mxu1 }
 0x100   : > { %v1132_v46 = vadd.f32 %v2174_v40, %v2062_v36  ;;  %v2177_v47 = vadd.f32 %v2176_v44, %v2175_v41 }
 0x102   : > { %v1135_v48 = vadd.f32 %v2177_v47, %v2065_v43  ;;  %v1364_v49 = vadd.f32 %v2786_v45, %v1132_v46 }
 0x103   : > { %v2066_v50 = vpop.f32.mrb[4].mxu0 }
 0x104   : > { %v2178_v51 = vpop.f32.mrb[4].mxu1  ;;  %v2067_v52 = vpop.f32.mrb[5].mxu0  ;;  %v2792_v53 = vsel %vm1398_vm0, %v1364_v49, -1e+30  ;;  %v1365_v54 = vadd.f32 %v2786_v45, %v1135_v48 }
 0x105   : > { %v2068_v55 = vadd.f32 %v2067_v52, %v2066_v50  ;;  %v2179_v56 = vpop.f32.mrb[5].mxu1  ;;  %1431 = vmax.xlane.f32.xlu0 %v2792_v53  ;;  %v2069_v57 = vpop.f32.mrb[6].mxu0 }
 0x106   : > { %v2180_v58 = vadd.f32 %v2179_v56, %v2178_v51  ;;  %v2181_v59 = vpop.f32.mrb[6].mxu1  ;;  %v2070_v60 = vpop.f32.mrb[7].mxu0  ;;  %v2798_v1 = vsel %vm1398_vm0, %v1365_v54, -1e+30 }
 0x107   : > { %v2071_v61 = vadd.f32 %v2070_v60, %v2069_v57  ;;  %v2182_v62 = vpop.f32.mrb[7].mxu1 }
 0x108   : > { %v1140_v63 = vadd.f32 %v2180_v58, %v2068_v55  ;;  %v2183_v0 = vadd.f32 %v2182_v62, %v2181_v59 }
 0x109   : > { %1433 = vmax.xlane.f32.xlu0 %v2798_v1 }
 0x10a   : > { %v1143_v2 = vadd.f32 %v2183_v0, %v2071_v61  ;;  %v1366_v3 = vadd.f32 %v2786_v45, %v1140_v63 }
 0x10b   : > { %v2072_v4 = vpop.f32.mrb[8].mxu0 }
 0x10c   : > { %v2184_v5 = vpop.f32.mrb[8].mxu1  ;;  %v2073_v6 = vpop.f32.mrb[9].mxu0  ;;  %v2804_v7 = vsel %vm1398_vm0, %v1366_v3, -1e+30  ;;  %v1367_v8 = vadd.f32 %v2786_v45, %v1143_v2 }
 0x10d   : > { %v2074_v9 = vadd.f32 %v2073_v6, %v2072_v4  ;;  %v2185_v10 = vpop.f32.mrb[9].mxu1  ;;  %1435 = vmax.xlane.f32.xlu1 %v2804_v7  ;;  %v2075_v11 = vpop.f32.mrb[10].mxu0 }
 0x10e   : > { %v2186_v12 = vadd.f32 %v2185_v10, %v2184_v5  ;;  %v2187_v13 = vpop.f32.mrb[10].mxu1  ;;  %v2076_v14 = vpop.f32.mrb[11].mxu0  ;;  %v2810_v19 = vsel %vm1398_vm0, %v1367_v8, -1e+30 }
 0x10f   : > { %v2077_v15 = vadd.f32 %v2076_v14, %v2075_v11  ;;  %v2188_v16 = vpop.f32.mrb[11].mxu1 }
 0x110   : > { %v1148_v17 = vadd.f32 %v2186_v12, %v2074_v9  ;;  %v2189_v18 = vadd.f32 %v2188_v16, %v2187_v13 }
 0x111   : > { %1437 = vmax.xlane.f32.xlu1 %v2810_v19 }
 0x112   : > { %v1151_v20 = vadd.f32 %v2189_v18, %v2077_v15  ;;  %v1368_v21 = vadd.f32 %v2786_v45, %v1148_v17 }
 0x113   : > { %v2078_v22 = vpop.f32.mrb[12].mxu0 }
 0x114   : > { %v2190_v23 = vpop.f32.mrb[12].mxu1  ;;  %v2079_v24 = vpop.f32.mrb[13].mxu0  ;;  %v2816_v25 = vsel %vm1398_vm0, %v1368_v21, -1e+30  ;;  %v1369_v26 = vadd.f32 %v2786_v45, %v1151_v20 }
 0x115   : > { %v2080_v27 = vadd.f32 %v2079_v24, %v2078_v22  ;;  %v2191_v28 = vpop.f32.mrb[13].mxu1  ;;  %1439 = vmax.xlane.f32.xlu0 %v2816_v25  ;;  %v2081_v29 = vpop.f32.mrb[14].mxu0 }
 0x116   : > { %v2192_v30 = vadd.f32 %v2191_v28, %v2190_v23  ;;  %v2193_v31 = vpop.f32.mrb[14].mxu1  ;;  %v2082_v32 = vpop.f32.mrb[15].mxu0  ;;  %v2822_v33 = vsel %vm1398_vm0, %v1369_v26, -1e+30 }
 0x117   : > { %v2083_v34 = vadd.f32 %v2082_v32, %v2081_v29  ;;  %v2194_v35 = vpop.f32.mrb[15].mxu1  ;;  %1441 = vmax.xlane.f32.xlu1 %v2822_v33 }
 0x118   : > { %v1156_v36 = vadd.f32 %v2192_v30, %v2080_v27  ;;  %v2195_v37 = vadd.f32 %v2194_v35, %v2193_v31 }
 0x11a   : > { %v1159_v38 = vadd.f32 %v2195_v37, %v2083_v34  ;;  %v1370_v40 = vadd.f32 %v2786_v45, %v1156_v36 }
 0x11b   : > { %v2084_v41 = vpop.f32.mrb[16].mxu0 }
 0x11c   : > { %v2196_v42 = vpop.f32.mrb[16].mxu1  ;;  %v2085_v43 = vpop.f32.mrb[17].mxu0  ;;  %v2828_v44 = vsel %vm1398_vm0, %v1370_v40, -1e+30  ;;  %v1371_v46 = vadd.f32 %v2786_v45, %v1159_v38 }
 0x11d   : > { %v2086_v47 = vadd.f32 %v2085_v43, %v2084_v41  ;;  %v2197_v48 = vpop.f32.mrb[17].mxu1  ;;  %1443 = vmax.xlane.f32.xlu0 %v2828_v44  ;;  %v2087_v49 = vpop.f32.mrb[18].mxu0 }
 0x11e   : > { %v2198_v50 = vadd.f32 %v2197_v48, %v2196_v42  ;;  %v2199_v51 = vpop.f32.mrb[18].mxu1  ;;  %v2088_v52 = vpop.f32.mrb[19].mxu0  ;;  %v2834_v54 = vsel %vm1398_vm0, %v1371_v46, -1e+30 }
 0x11f   : > { %v2089_v55 = vadd.f32 %v2088_v52, %v2087_v49  ;;  %v2200_v56 = vpop.f32.mrb[19].mxu1  ;;  %1445 = vmax.xlane.f32.xlu1 %v2834_v54 }
 0x120   : > { %v1164_v57 = vadd.f32 %v2198_v50, %v2086_v47  ;;  %v2201_v58 = vadd.f32 %v2200_v56, %v2199_v51 }
 0x122   : > { %v1167_v59 = vadd.f32 %v2201_v58, %v2089_v55  ;;  %v1372_v60 = vadd.f32 %v2786_v45, %v1164_v57 }
 0x123   : > { %v2090_v61 = vpop.f32.mrb[20].mxu0 }
 0x124   : > { %v2202_v62 = vpop.f32.mrb[20].mxu1  ;;  %v2091_v63 = vpop.f32.mrb[21].mxu0  ;;  %v2840_v0 = vsel %vm1398_vm0, %v1372_v60, -1e+30  ;;  %v1373_v2 = vadd.f32 %v2786_v45, %v1167_v59 }
 0x125   : > { %v2092_v3 = vadd.f32 %v2091_v63, %v2090_v61  ;;  %v2203_v4 = vpop.f32.mrb[21].mxu1  ;;  %1447 = vmax.xlane.f32.xlu0 %v2840_v0  ;;  %v2093_v5 = vpop.f32.mrb[22].mxu0 }
 0x126   : > { %v2204_v6 = vadd.f32 %v2203_v4, %v2202_v62  ;;  %v2205_v8 = vpop.f32.mrb[22].mxu1  ;;  %v2094_v9 = vpop.f32.mrb[23].mxu0  ;;  %v2846_v10 = vsel %vm1398_vm0, %v1373_v2, -1e+30 }
 0x127   : > { %v2095_v11 = vadd.f32 %v2094_v9, %v2093_v5  ;;  %v2206_v12 = vpop.f32.mrb[23].mxu1  ;;  %1449 = vmax.xlane.f32.xlu1 %v2846_v10 }
 0x128   : > { %v1172_v13 = vadd.f32 %v2204_v6, %v2092_v3  ;;  %v2207_v14 = vadd.f32 %v2206_v12, %v2205_v8 }
 0x12a   : > { %v1175_v15 = vadd.f32 %v2207_v14, %v2095_v11  ;;  %v1374_v16 = vadd.f32 %v2786_v45, %v1172_v13 }
 0x12b   : > { %v2096_v17 = vpop.f32.mrb[24].mxu0 }
 0x12c   : > { %v2208_v18 = vpop.f32.mrb[24].mxu1  ;;  %v2097_v20 = vpop.f32.mrb[25].mxu0  ;;  %v2852_v21 = vsel %vm1398_vm0, %v1374_v16, -1e+30  ;;  %v1375_v22 = vadd.f32 %v2786_v45, %v1175_v15 }
 0x12d   : > { %v2098_v23 = vadd.f32 %v2097_v20, %v2096_v17  ;;  %v2209_v24 = vpop.f32.mrb[25].mxu1  ;;  %1451 = vmax.xlane.f32.xlu0 %v2852_v21  ;;  %v2099_v26 = vpop.f32.mrb[26].mxu0 }
 0x12e   : > { %v2210_v27 = vadd.f32 %v2209_v24, %v2208_v18  ;;  %v2211_v28 = vpop.f32.mrb[26].mxu1  ;;  %v2100_v29 = vpop.f32.mrb[27].mxu0  ;;  %v2858_v30 = vsel %vm1398_vm0, %v1375_v22, -1e+30 }
 0x12f   : > { %v2101_v31 = vadd.f32 %v2100_v29, %v2099_v26  ;;  %v2212_v32 = vpop.f32.mrb[27].mxu1  ;;  %1453 = vmax.xlane.f32.xlu1 %v2858_v30 }
 0x130   : > { %v1180_v34 = vadd.f32 %v2210_v27, %v2098_v23  ;;  %v2213_v35 = vadd.f32 %v2212_v32, %v2211_v28 }
 0x132   : > { %v1183_v36 = vadd.f32 %v2213_v35, %v2101_v31  ;;  %v1376_v37 = vadd.f32 %v2786_v45, %v1180_v34 }
 0x133   : > { %v2102_v38 = vpop.f32.mrb[28].mxu0 }
 0x134   : > { %v2214_v40 = vpop.f32.mrb[28].mxu1  ;;  %v2103_v41 = vpop.f32.mrb[29].mxu0  ;;  %v2864_v42 = vsel %vm1398_vm0, %v1376_v37, -1e+30  ;;  %v1377_v43 = vadd.f32 %v2786_v45, %v1183_v36 }
 0x135   : > { %v2104_v46 = vadd.f32 %v2103_v41, %v2102_v38  ;;  %v2215_v47 = vpop.f32.mrb[29].mxu1  ;;  %1455 = vmax.xlane.f32.xlu0 %v2864_v42  ;;  %v2105_v48 = vpop.f32.mrb[30].mxu0 }
 0x136   : > { %v2216_v49 = vadd.f32 %v2215_v47, %v2214_v40  ;;  %v2217_v50 = vpop.f32.mrb[30].mxu1  ;;  %v2106_v51 = vpop.f32.mrb[31].mxu0  ;;  %v2870_v52 = vsel %vm1398_vm0, %v1377_v43, -1e+30 }
 0x137   : > { %v2107_v55 = vadd.f32 %v2106_v51, %v2105_v48  ;;  %v2218_v56 = vpop.f32.mrb[31].mxu1  ;;  %1457 = vmax.xlane.f32.xlu1 %v2870_v52 }
 0x138   : > { %v1188_v57 = vadd.f32 %v2216_v49, %v2104_v46  ;;  %v2219_v58 = vadd.f32 %v2218_v56, %v2217_v50 }
 0x13a   : > { %v1191_v59 = vadd.f32 %v2219_v58, %v2107_v55  ;;  %v1378_v60 = vadd.f32 %v2786_v45, %v1188_v57 }
 0x13b   : > { %v2108_v61 = vpop.f32.mrb[32].mxu0 }
 0x13c   : > { %v2220_v62 = vpop.f32.mrb[32].mxu1  ;;  %v2109_v63 = vpop.f32.mrb[33].mxu0  ;;  %v2876_v2 = vsel %vm1398_vm0, %v1378_v60, -1e+30  ;;  %v1379_v3 = vadd.f32 %v2786_v45, %v1191_v59 }
 0x13d   : > { %v2110_v4 = vadd.f32 %v2109_v63, %v2108_v61  ;;  %v2221_v5 = vpop.f32.mrb[33].mxu1  ;;  %1459 = vmax.xlane.f32.xlu0 %v2876_v2  ;;  %v2111_v6 = vpop.f32.mrb[34].mxu0 }
 0x13e   : > { %v2222_v8 = vadd.f32 %v2221_v5, %v2220_v62  ;;  %v2223_v9 = vpop.f32.mrb[34].mxu1  ;;  %v2112_v11 = vpop.f32.mrb[35].mxu0  ;;  %v2882_v12 = vsel %vm1398_vm0, %v1379_v3, -1e+30 }
 0x13f   : > { %v2113_v13 = vadd.f32 %v2112_v11, %v2111_v6  ;;  %v2224_v14 = vpop.f32.mrb[35].mxu1  ;;  %1461 = vmax.xlane.f32.xlu1 %v2882_v12 }
 0x140   : > { %v1196_v15 = vadd.f32 %v2222_v8, %v2110_v4  ;;  %v2225_v16 = vadd.f32 %v2224_v14, %v2223_v9 }
 0x142   : > { %v1199_v17 = vadd.f32 %v2225_v16, %v2113_v13  ;;  %v1380_v18 = vadd.f32 %v2786_v45, %v1196_v15 }
 0x143   : > { %v2114_v20 = vpop.f32.mrb[36].mxu0 }
 0x144   : > { %v2226_v22 = vpop.f32.mrb[36].mxu1  ;;  %v2115_v23 = vpop.f32.mrb[37].mxu0  ;;  %v2888_v24 = vsel %vm1398_vm0, %v1380_v18, -1e+30  ;;  %v1381_v26 = vadd.f32 %v2786_v45, %v1199_v17 }
 0x145   : > { %v2116_v27 = vadd.f32 %v2115_v23, %v2114_v20  ;;  %v2227_v28 = vpop.f32.mrb[37].mxu1  ;;  %1463 = vmax.xlane.f32.xlu0 %v2888_v24  ;;  %v2117_v29 = vpop.f32.mrb[38].mxu0 }
 0x146   : > { %v2228_v31 = vadd.f32 %v2227_v28, %v2226_v22  ;;  %v2229_v32 = vpop.f32.mrb[38].mxu1  ;;  %v2118_v34 = vpop.f32.mrb[39].mxu0  ;;  %v2894_v35 = vsel %vm1398_vm0, %v1381_v26, -1e+30 }
 0x147   : > { %v2119_v36 = vadd.f32 %v2118_v34, %v2117_v29  ;;  %v2230_v37 = vpop.f32.mrb[39].mxu1  ;;  %1465 = vmax.xlane.f32.xlu1 %v2894_v35 }
 0x148   : > { %v1204_v38 = vadd.f32 %v2228_v31, %v2116_v27  ;;  %v2231_v40 = vadd.f32 %v2230_v37, %v2229_v32 }
 0x14a   : > { %v1207_v41 = vadd.f32 %v2231_v40, %v2119_v36  ;;  %v1382_v43 = vadd.f32 %v2786_v45, %v1204_v38 }
 0x14b   : > { %v2120_v46 = vpop.f32.mrb[40].mxu0 }
 0x14c   : > { %v2232_v47 = vpop.f32.mrb[40].mxu1  ;;  %v2121_v48 = vpop.f32.mrb[41].mxu0  ;;  %v2900_v49 = vsel %vm1398_vm0, %v1382_v43, -1e+30  ;;  %v1383_v50 = vadd.f32 %v2786_v45, %v1207_v41 }
 0x14d   : > { %v2122_v51 = vadd.f32 %v2121_v48, %v2120_v46  ;;  %v2233_v55 = vpop.f32.mrb[41].mxu1  ;;  %1467 = vmax.xlane.f32.xlu0 %v2900_v49  ;;  %v2123_v56 = vpop.f32.mrb[42].mxu0 }
 0x14e   : > { %v2234_v57 = vadd.f32 %v2233_v55, %v2232_v47  ;;  %v2235_v58 = vpop.f32.mrb[42].mxu1  ;;  %v2124_v59 = vpop.f32.mrb[43].mxu0  ;;  %v2906_v60 = vsel %vm1398_vm0, %v1383_v50, -1e+30 }
 0x14f   : > { %v2125_v61 = vadd.f32 %v2124_v59, %v2123_v56  ;;  %v2236_v62 = vpop.f32.mrb[43].mxu1  ;;  %1469 = vmax.xlane.f32.xlu1 %v2906_v60 }
 0x150   : > { %v1212_v63 = vadd.f32 %v2234_v57, %v2122_v51  ;;  %v2237_v3 = vadd.f32 %v2236_v62, %v2235_v58 }
 0x152   : > { %v1215_v4 = vadd.f32 %v2237_v3, %v2125_v61  ;;  %v1384_v5 = vadd.f32 %v2786_v45, %v1212_v63 }
 0x153   : > { %v2126_v6 = vpop.f32.mrb[44].mxu0 }
 0x154   : > { %v2238_v8 = vpop.f32.mrb[44].mxu1  ;;  %v2127_v9 = vpop.f32.mrb[45].mxu0  ;;  %v2912_v11 = vsel %vm1398_vm0, %v1384_v5, -1e+30  ;;  %v1385_v13 = vadd.f32 %v2786_v45, %v1215_v4 }
 0x155   : > { %v2128_v14 = vadd.f32 %v2127_v9, %v2126_v6  ;;  %v2239_v15 = vpop.f32.mrb[45].mxu1  ;;  %1471 = vmax.xlane.f32.xlu0 %v2912_v11  ;;  %v2129_v16 = vpop.f32.mrb[46].mxu0 }
 0x156   : > { %v2240_v17 = vadd.f32 %v2239_v15, %v2238_v8  ;;  %v2241_v18 = vpop.f32.mrb[46].mxu1  ;;  %v2130_v20 = vpop.f32.mrb[47].mxu0  ;;  %v2918_v22 = vsel %vm1398_vm0, %v1385_v13, -1e+30 }
 0x157   : > { %v2131_v23 = vadd.f32 %v2130_v20, %v2129_v16  ;;  %v2242_v26 = vpop.f32.mrb[47].mxu1  ;;  %1473 = vmax.xlane.f32.xlu1 %v2918_v22 }
 0x158   : > { %v1220_v27 = vadd.f32 %v2240_v17, %v2128_v14  ;;  %v2243_v28 = vadd.f32 %v2242_v26, %v2241_v18 }
 0x15a   : > { %v1223_v29 = vadd.f32 %v2243_v28, %v2131_v23  ;;  %v1386_v31 = vadd.f32 %v2786_v45, %v1220_v27 }
 0x15b   : > { %v2132_v32 = vpop.f32.mrb[48].mxu0 }
 0x15c   : > { %v2244_v34 = vpop.f32.mrb[48].mxu1  ;;  %v2133_v36 = vpop.f32.mrb[49].mxu0  ;;  %v2924_v37 = vsel %vm1398_vm0, %v1386_v31, -1e+30  ;;  %v1387_v38 = vadd.f32 %v2786_v45, %v1223_v29 }
 0x15d   : > { %v2134_v40 = vadd.f32 %v2133_v36, %v2132_v32  ;;  %v2245_v41 = vpop.f32.mrb[49].mxu1  ;;  %1475 = vmax.xlane.f32.xlu0 %v2924_v37  ;;  %v2135_v43 = vpop.f32.mrb[50].mxu0 }
 0x15e   : > { %v2246_v46 = vadd.f32 %v2245_v41, %v2244_v34  ;;  %v2247_v47 = vpop.f32.mrb[50].mxu1  ;;  %v2136_v48 = vpop.f32.mrb[51].mxu0  ;;  %v2930_v50 = vsel %vm1398_vm0, %v1387_v38, -1e+30 }
 0x15f   : > { %v2137_v51 = vadd.f32 %v2136_v48, %v2135_v43  ;;  %v2248_v55 = vpop.f32.mrb[51].mxu1  ;;  %1477 = vmax.xlane.f32.xlu1 %v2930_v50 }
 0x160   : > { %v1228_v56 = vadd.f32 %v2246_v46, %v2134_v40  ;;  %v2249_v57 = vadd.f32 %v2248_v55, %v2247_v47 }
 0x162   : > { %v1231_v58 = vadd.f32 %v2249_v57, %v2137_v51  ;;  %v1388_v59 = vadd.f32 %v2786_v45, %v1228_v56 }
 0x163   : > { %v2138_v61 = vpop.f32.mrb[52].mxu0 }
 0x164   : > { %v2250_v62 = vpop.f32.mrb[52].mxu1  ;;  %v2139_v63 = vpop.f32.mrb[53].mxu0  ;;  %v2936_v3 = vsel %vm1398_vm0, %v1388_v59, -1e+30  ;;  %v1389_v4 = vadd.f32 %v2786_v45, %v1231_v58 }
 0x165   : > { %v2140_v5 = vadd.f32 %v2139_v63, %v2138_v61  ;;  %v2251_v6 = vpop.f32.mrb[53].mxu1  ;;  %1479 = vmax.xlane.f32.xlu0 %v2936_v3  ;;  %v2141_v8 = vpop.f32.mrb[54].mxu0 }
 0x166   : > { %v2252_v9 = vadd.f32 %v2251_v6, %v2250_v62  ;;  %v2253_v13 = vpop.f32.mrb[54].mxu1  ;;  %v2142_v14 = vpop.f32.mrb[55].mxu0  ;;  %v2942_v15 = vsel %vm1398_vm0, %v1389_v4, -1e+30 }
 0x167   : > { %v2143_v16 = vadd.f32 %v2142_v14, %v2141_v8  ;;  %v2254_v17 = vpop.f32.mrb[55].mxu1  ;;  %1481 = vmax.xlane.f32.xlu1 %v2942_v15 }
 0x168   : > { %v1236_v18 = vadd.f32 %v2252_v9, %v2140_v5  ;;  %v2255_v20 = vadd.f32 %v2254_v17, %v2253_v13 }
 0x16a   : > { %v1239_v23 = vadd.f32 %v2255_v20, %v2143_v16  ;;  %v1390_v26 = vadd.f32 %v2786_v45, %v1236_v18 }
 0x16b   : > { %v2144_v27 = vpop.f32.mrb[56].mxu0 }
 0x16c   : > { %v2256_v28 = vpop.f32.mrb[56].mxu1  ;;  %v2145_v29 = vpop.f32.mrb[57].mxu0  ;;  %v2948_v31 = vsel %vm1398_vm0, %v1390_v26, -1e+30  ;;  %v1391_v32 = vadd.f32 %v2786_v45, %v1239_v23 }
 0x16d   : > { %v2146_v34 = vadd.f32 %v2145_v29, %v2144_v27  ;;  %v2257_v36 = vpop.f32.mrb[57].mxu1  ;;  %1483 = vmax.xlane.f32.xlu0 %v2948_v31  ;;  %v2147_v38 = vpop.f32.mrb[58].mxu0 }
 0x16e   : > { %v2258_v40 = vadd.f32 %v2257_v36, %v2256_v28  ;;  %v2259_v41 = vpop.f32.mrb[58].mxu1  ;;  %v2148_v43 = vpop.f32.mrb[59].mxu0  ;;  %v2954_v46 = vsel %vm1398_vm0, %v1391_v32, -1e+30 }
 0x16f   : > { %v2149_v47 = vadd.f32 %v2148_v43, %v2147_v38  ;;  %v2260_v48 = vpop.f32.mrb[59].mxu1  ;;  %1485 = vmax.xlane.f32.xlu1 %v2954_v46 }
 0x170   : > { %v1244_v51 = vadd.f32 %v2258_v40, %v2146_v34  ;;  %v2261_v55 = vadd.f32 %v2260_v48, %v2259_v41 }
 0x172   : > { %v1247_v56 = vadd.f32 %v2261_v55, %v2149_v47  ;;  %v1392_v57 = vadd.f32 %v2786_v45, %v1244_v51 }
 0x173   : > { %v2150_v58 = vpop.f32.mrb[60].mxu0 }
 0x174   : > { %v2262_v59 = vpop.f32.mrb[60].mxu1  ;;  %v2151_v61 = vpop.f32.mrb[61].mxu0  ;;  %v2960_v62 = vsel %vm1398_vm0, %v1392_v57, -1e+30  ;;  %v1393_v63 = vadd.f32 %v2786_v45, %v1247_v56 }
 0x175   : > { %v2152_v4 = vadd.f32 %v2151_v61, %v2150_v58  ;;  %v2263_v5 = vpop.f32.mrb[61].mxu1  ;;  %1487 = vmax.xlane.f32.xlu0 %v2960_v62  ;;  %v2153_v6 = vpop.f32.mrb[62].mxu0 }
 0x176   : > { %v2264_v8 = vadd.f32 %v2263_v5, %v2262_v59  ;;  %v2265_v9 = vpop.f32.mrb[62].mxu1  ;;  %v2154_v13 = vpop.f32.mrb[63].mxu0  ;;  %v2966_v14 = vsel %vm1398_vm0, %v1393_v63, -1e+30 }
 0x177   : > { %v2155_v16 = vadd.f32 %v2154_v13, %v2153_v6  ;;  %v2266_v17 = vpop.f32.mrb[63].mxu1  ;;  %1489 = vmax.xlane.f32.xlu1 %v2966_v14 }
 0x178   : > { %v1252_v18 = vadd.f32 %v2264_v8, %v2152_v4  ;;  %v2267_v20 = vadd.f32 %v2266_v17, %v2265_v9 }
 0x17a   : > { %v1255_v23 = vadd.f32 %v2267_v20, %v2155_v16  ;;  %v1394_v26 = vadd.f32 %v2786_v45, %v1252_v18 }
 0x17c   : > { %v2972_v27 = vsel %vm1398_vm0, %v1394_v26, -1e+30  ;;  %v1395_v28 = vadd.f32 %v2786_v45, %v1255_v23 }
 0x17d   : > { %1491 = vmax.xlane.f32.xlu0 %v2972_v27 }
 0x17e   : > { %v2978_v29 = vsel %vm1398_vm0, %v1395_v28, -1e+30 }
 0x17f   : > { %1493 = vmax.xlane.f32.xlu1 %v2978_v29 }
 0x192   : > { %v1432_v32 = vpop.xlane.xlu0 %1431 }
 0x193   : > { %v2982_v34 = vsub.f32 %v2792_v53, %v1432_v32 }
 0x195   : > { %v1527_v36 = vmul.f32 1.442695, %v2982_v34 }
 0x196   : > { %v1434_v38 = vpop.xlane.xlu0 %1433 }
 0x197   : > { %2420 = vpow2.f32 %v1527_v36  ;;  %v2986_v40 = vsub.f32 %v2798_v1, %v1434_v38 }
 0x199   : > { %v1529_v45 = vmul.f32 1.442695, %v2986_v40 }
 0x19a   : > { %v1436_v41 = vpop.xlane.xlu1 %1435 }
 0x19b   : > { %2422 = vpow2.f32 %v1529_v45  ;;  %v2990_v43 = vsub.f32 %v2804_v7, %v1436_v41 }
 0x19d   : > { %v1531_v47 = vmul.f32 1.442695, %v2990_v43 }
 0x19e   : > { %v1438_v48 = vpop.xlane.xlu1 %1437 }
 0x19f   : > { %2424 = vpow2.f32 %v1531_v47  ;;  %v2994_v53 = vsub.f32 %v2810_v19, %v1438_v48 }
 0x1a1   : > { %v2421_v51 = vpop.eup %2420  ;;  %v1533_v55 = vmul.f32 1.442695, %v2994_v53 }
 0x1a2   : > { %v1440_v56 = vpop.xlane.xlu0 %1439  ;;  %v1591_v1 = vsel %vm1398_vm0, %v2421_v51, 0.0 }
 0x1a3   : > { %2426 = vpow2.f32 %v1533_v55  ;;  %v3000_v57 = vsub.f32 %v2816_v25, %v1440_v56  ;;  %1623 = vadd.xlane.f32.xlu0 %v1591_v1 }
 0x1a4   : > { %v1442_v7 = vpop.xlane.xlu1 %1441 }
 0x1a5   : > { %v2423_v58 = vpop.eup %2422  ;;  %v1535_v59 = vmul.f32 1.442695, %v3000_v57  ;;  %v3004_v61 = vsub.f32 %v2822_v33, %v1442_v7 }
 0x1a6   : > { %v1592_v19 = vsel %vm1398_vm0, %v2423_v58, 0.0 }
 0x1a7   : > { %2428 = vpow2.f32 %v1535_v59  ;;  %v1537_v63 = vmul.f32 1.442695, %v3004_v61  ;;  %1625 = vadd.xlane.f32.xlu1 %v1592_v19 }
 0x1a9   : > { %v2425_v4 = vpop.eup %2424  ;;  %2430 = vpow2.f32 %v1537_v63 }
 0x1aa   : > { %v1444_v5 = vpop.xlane.xlu0 %1443  ;;  %v1593_v25 = vsel %vm1398_vm0, %v2425_v4, 0.0 }
 0x1ab   : > { %v3012_v6 = vsub.f32 %v2828_v44, %v1444_v5  ;;  %1627 = vadd.xlane.f32.xlu0 %v1593_v25 }
 0x1ac   : > { %v1446_v8 = vpop.xlane.xlu1 %1445 }
 0x1ad   : > { %v2427_v33 = vpop.eup %2426  ;;  %v1539_v9 = vmul.f32 1.442695, %v3012_v6  ;;  %v3016_v13 = vsub.f32 %v2834_v54, %v1446_v8 }
 0x1ae   : > { %v1594_v16 = vsel %vm1398_vm0, %v2427_v33, 0.0 }
 0x1af   : > { %2432 = vpow2.f32 %v1539_v9  ;;  %v1541_v17 = vmul.f32 1.442695, %v3016_v13  ;;  %1629 = vadd.xlane.f32.xlu1 %v1594_v16 }
 0x1b1   : > { %v2429_v18 = vpop.eup %2428  ;;  %2434 = vpow2.f32 %v1541_v17 }
 0x1b2   : > { %v1448_v20 = vpop.xlane.xlu0 %1447  ;;  %v1595_v44 = vsel %vm1398_vm0, %v2429_v18, 0.0 }
 0x1b3   : > { %v2431_v23 = vpop.eup %2430  ;;  %v3024_v26 = vsub.f32 %v2840_v0, %v1448_v20  ;;  %1631 = vadd.xlane.f32.xlu0 %v1595_v44 }
 0x1b4   : > { %v1450_v54 = vpop.xlane.xlu1 %1449  ;;  %v1596_v28 = vsel %vm1398_vm0, %v2431_v23, 0.0 }
 0x1b5   : > { %v1543_v32 = vmul.f32 1.442695, %v3024_v26  ;;  %v3030_v36 = vsub.f32 %v2846_v10, %v1450_v54  ;;  %1633 = vadd.xlane.f32.xlu1 %v1596_v28 }
 0x1b7   : > { %2436 = vpow2.f32 %v1543_v32  ;;  %v1545_v38 = vmul.f32 1.442695, %v3030_v36 }
 0x1b9   : > { %v2433_v45 = vpop.eup %2432  ;;  %2438 = vpow2.f32 %v1545_v38 }
 0x1ba   : > { %v1452_v41 = vpop.xlane.xlu0 %1451  ;;  %v1597_v0 = vsel %vm1398_vm0, %v2433_v45, 0.0 }
 0x1bb   : > { %v2435_v47 = vpop.eup %2434  ;;  %v3036_v48 = vsub.f32 %v2852_v21, %v1452_v41  ;;  %1635 = vadd.xlane.f32.xlu0 %v1597_v0 }
 0x1bc   : > { %v1454_v51 = vpop.xlane.xlu1 %1453  ;;  %v1598_v10 = vsel %vm1398_vm0, %v2435_v47, 0.0 }
 0x1bd   : > { %v1547_v55 = vmul.f32 1.442695, %v3036_v48  ;;  %v3042_v56 = vsub.f32 %v2858_v30, %v1454_v51  ;;  %1637 = vadd.xlane.f32.xlu1 %v1598_v10 }
 0x1bf   : > { %2440 = vpow2.f32 %v1547_v55  ;;  %v1549_v1 = vmul.f32 1.442695, %v3042_v56 }
 0x1c1   : > { %v2437_v7 = vpop.eup %2436  ;;  %2442 = vpow2.f32 %v1549_v1 }
 0x1c2   : > { %v1456_v58 = vpop.xlane.xlu0 %1455  ;;  %v1599_v21 = vsel %vm1398_vm0, %v2437_v7, 0.0 }
 0x1c3   : > { %v2439_v59 = vpop.eup %2438  ;;  %v3048_v19 = vsub.f32 %v2864_v42, %v1456_v58  ;;  %1639 = vadd.xlane.f32.xlu0 %v1599_v21 }
 0x1c4   : > { %v1458_v63 = vpop.xlane.xlu1 %1457  ;;  %v1600_v30 = vsel %vm1398_vm0, %v2439_v59, 0.0 }
 0x1c5   : > { %v1551_v4 = vmul.f32 1.442695, %v3048_v19  ;;  %v3054_v5 = vsub.f32 %v2870_v52, %v1458_v63  ;;  %1641 = vadd.xlane.f32.xlu1 %v1600_v30 }
 0x1c7   : > { %2444 = vpow2.f32 %v1551_v4  ;;  %v1553_v25 = vmul.f32 1.442695, %v3054_v5 }
 0x1c9   : > { %v2441_v8 = vpop.eup %2440  ;;  %2446 = vpow2.f32 %v1553_v25 }
 0x1ca   : > { %v1460_v33 = vpop.xlane.xlu0 %1459  ;;  %v1601_v42 = vsel %vm1398_vm0, %v2441_v8, 0.0 }
 0x1cb   : > { %v2443_v9 = vpop.eup %2442  ;;  %v3060_v16 = vsub.f32 %v2876_v2, %v1460_v33  ;;  %1643 = vadd.xlane.f32.xlu0 %v1601_v42 }
 0x1cc   : > { %v1462_v17 = vpop.xlane.xlu1 %1461  ;;  %v1602_v52 = vsel %vm1398_vm0, %v2443_v9, 0.0 }
 0x1cd   : > { %v1555_v18 = vmul.f32 1.442695, %v3060_v16  ;;  %v3066_v20 = vsub.f32 %v2882_v12, %v1462_v17  ;;  %1645 = vadd.xlane.f32.xlu1 %v1602_v52 }
 0x1cf   : > { %2448 = vpow2.f32 %v1555_v18  ;;  %v1557_v44 = vmul.f32 1.442695, %v3066_v20 }
 0x1d1   : > { %v2445_v23 = vpop.eup %2444  ;;  %2450 = vpow2.f32 %v1557_v44 }
 0x1d2   : > { %v1464_v54 = vpop.xlane.xlu0 %1463  ;;  %v1603_v2 = vsel %vm1398_vm0, %v2445_v23, 0.0 }
 0x1d3   : > { %v2447_v28 = vpop.eup %2446  ;;  %v3072_v32 = vsub.f32 %v2888_v24, %v1464_v54  ;;  %1647 = vadd.xlane.f32.xlu0 %v1603_v2 }
 0x1d4   : > { %v1466_v38 = vpop.xlane.xlu1 %1465  ;;  %v1604_v12 = vsel %vm1398_vm0, %v2447_v28, 0.0 }
 0x1d5   : > { %v1559_v45 = vmul.f32 1.442695, %v3072_v32  ;;  %v3078_v41 = vsub.f32 %v2894_v35, %v1466_v38  ;;  %1649 = vadd.xlane.f32.xlu1 %v1604_v12 }
 0x1d7   : > { %2452 = vpow2.f32 %v1559_v45  ;;  %v1561_v0 = vmul.f32 1.442695, %v3078_v41 }
 0x1d9   : > { %v2449_v47 = vpop.eup %2448  ;;  %2454 = vpow2.f32 %v1561_v0 }
 0x1da   : > { %v1468_v51 = vpop.xlane.xlu0 %1467  ;;  %v1605_v24 = vsel %vm1398_vm0, %v2449_v47, 0.0 }
 0x1db   : > { %v2451_v10 = vpop.eup %2450  ;;  %v3084_v55 = vsub.f32 %v2900_v49, %v1468_v51  ;;  %1651 = vadd.xlane.f32.xlu0 %v1605_v24 }
 0x1dc   : > { %v1470_v1 = vpop.xlane.xlu1 %1469  ;;  %v1606_v35 = vsel %vm1398_vm0, %v2451_v10, 0.0 }
 0x1dd   : > { %v1563_v7 = vmul.f32 1.442695, %v3084_v55  ;;  %v3090_v58 = vsub.f32 %v2906_v60, %v1470_v1  ;;  %1653 = vadd.xlane.f32.xlu1 %v1606_v35 }
 0x1df   : > { %2456 = vpow2.f32 %v1563_v7  ;;  %v1565_v21 = vmul.f32 1.442695, %v3090_v58 }
 0x1e1   : > { %v2453_v59 = vpop.eup %2452  ;;  %2458 = vpow2.f32 %v1565_v21 }
 0x1e2   : > { %v1472_v63 = vpop.xlane.xlu0 %1471  ;;  %v1607_v49 = vsel %vm1398_vm0, %v2453_v59, 0.0 }
 0x1e3   : > { %v2455_v30 = vpop.eup %2454  ;;  %v3096_v4 = vsub.f32 %v2912_v11, %v1472_v63  ;;  %1655 = vadd.xlane.f32.xlu0 %v1607_v49 }
 0x1e4   : > { %v1474_v25 = vpop.xlane.xlu1 %1473  ;;  %v1608_v60 = vsel %vm1398_vm0, %v2455_v30, 0.0 }
 0x1e5   : > { %v1567_v8 = vmul.f32 1.442695, %v3096_v4  ;;  %v3102_v33 = vsub.f32 %v2918_v22, %v1474_v25  ;;  %1657 = vadd.xlane.f32.xlu1 %v1608_v60 }
 0x1e7   : > { %2460 = vpow2.f32 %v1567_v8  ;;  %v1569_v42 = vmul.f32 1.442695, %v3102_v33 }
 0x1e9   : > { %v2457_v9 = vpop.eup %2456  ;;  %2462 = vpow2.f32 %v1569_v42 }
 0x1ea   : > { %v1476_v17 = vpop.xlane.xlu0 %1475  ;;  %v1609_v11 = vsel %vm1398_vm0, %v2457_v9, 0.0 }
 0x1eb   : > { %v2459_v52 = vpop.eup %2458  ;;  %v3108_v18 = vsub.f32 %v2924_v37, %v1476_v17  ;;  %1659 = vadd.xlane.f32.xlu0 %v1609_v11 }
 0x1ec   : > { %v1478_v44 = vpop.xlane.xlu1 %1477  ;;  %v1610_v22 = vsel %vm1398_vm0, %v2459_v52, 0.0 }
 0x1ed   : > { %v1571_v23 = vmul.f32 1.442695, %v3108_v18  ;;  %v3114_v54 = vsub.f32 %v2930_v50, %v1478_v44  ;;  %1661 = vadd.xlane.f32.xlu1 %v1610_v22 }
 0x1ef   : > { %2464 = vpow2.f32 %v1571_v23  ;;  %v1573_v2 = vmul.f32 1.442695, %v3114_v54 }
 0x1f1   : > { %v2461_v28 = vpop.eup %2460  ;;  %2466 = vpow2.f32 %v1573_v2 }
 0x1f2   : > { %v1480_v38 = vpop.xlane.xlu0 %1479  ;;  %v1611_v37 = vsel %vm1398_vm0, %v2461_v28, 0.0 }
 0x1f3   : > { %v2463_v12 = vpop.eup %2462  ;;  %v3120_v45 = vsub.f32 %v2936_v3, %v1480_v38  ;;  %1663 = vadd.xlane.f32.xlu0 %v1611_v37 }
 0x1f4   : > { %v1482_v0 = vpop.xlane.xlu1 %1481  ;;  %v1612_v50 = vsel %vm1398_vm0, %v2463_v12, 0.0 }
 0x1f5   : > { %v1575_v47 = vmul.f32 1.442695, %v3120_v45  ;;  %v3126_v51 = vsub.f32 %v2942_v15, %v1482_v0  ;;  %1665 = vadd.xlane.f32.xlu1 %v1612_v50 }
 0x1f7   : > { %2468 = vpow2.f32 %v1575_v47  ;;  %v1577_v24 = vmul.f32 1.442695, %v3126_v51 }
 0x1f9   : > { %v2465_v10 = vpop.eup %2464  ;;  %2470 = vpow2.f32 %v1577_v24 }
 0x1fa   : > { %v1484_v1 = vpop.xlane.xlu0 %1483  ;;  %v1613_v3 = vsel %vm1398_vm0, %v2465_v10, 0.0 }
 0x1fb   : > { %v2467_v35 = vpop.eup %2466  ;;  %v3132_v7 = vsub.f32 %v2948_v31, %v1484_v1  ;;  %1667 = vadd.xlane.f32.xlu0 %v1613_v3 }
 0x1fc   : > { %v1486_v21 = vpop.xlane.xlu1 %1485  ;;  %v1614_v15 = vsel %vm1398_vm0, %v2467_v35, 0.0 }
 0x1fd   : > { %v1579_v59 = vmul.f32 1.442695, %v3132_v7  ;;  %v3138_v63 = vsub.f32 %v2954_v46, %v1486_v21  ;;  %1669 = vadd.xlane.f32.xlu1 %v1614_v15 }
 0x1ff   : > { %2472 = vpow2.f32 %v1579_v59  ;;  %v1581_v49 = vmul.f32 1.442695, %v3138_v63 }
 0x201   : > { %v2469_v30 = vpop.eup %2468  ;;  %2474 = vpow2.f32 %v1581_v49 }
 0x202   : > { %v1488_v25 = vpop.xlane.xlu0 %1487  ;;  %v1615_v31 = vsel %vm1398_vm0, %v2469_v30, 0.0 }
 0x203   : > { %v2471_v60 = vpop.eup %2470  ;;  %v3144_v8 = vsub.f32 %v2960_v62, %v1488_v25  ;;  %1671 = vadd.xlane.f32.xlu0 %v1615_v31 }
 0x204   : > { %v1490_v42 = vpop.xlane.xlu1 %1489  ;;  %v1616_v46 = vsel %vm1398_vm0, %v2471_v60, 0.0 }
 0x205   : > { %v1583_v9 = vmul.f32 1.442695, %v3144_v8  ;;  %v3150_v17 = vsub.f32 %v2966_v14, %v1490_v42  ;;  %1673 = vadd.xlane.f32.xlu1 %v1616_v46 }
 0x207   : > { %2476 = vpow2.f32 %v1583_v9  ;;  %v1585_v11 = vmul.f32 1.442695, %v3150_v17 }
 0x209   : > { %v2473_v52 = vpop.eup %2472  ;;  %2478 = vpow2.f32 %v1585_v11 }
 0x20a   : > { %v1492_v44 = vpop.xlane.xlu0 %1491  ;;  %v1617_v62 = vsel %vm1398_vm0, %v2473_v52, 0.0 }
 0x20b   : > { %v2475_v22 = vpop.eup %2474  ;;  %v3156_v23 = vsub.f32 %v2972_v27, %v1492_v44  ;;  %1675 = vadd.xlane.f32.xlu0 %v1617_v62 }
 0x20c   : > { %v1494_v2 = vpop.xlane.xlu1 %1493  ;;  %v1618_v14 = vsel %vm1398_vm0, %v2475_v22, 0.0 }
 0x20d   : > { %v1587_v28 = vmul.f32 1.442695, %v3156_v23  ;;  %v3162_v38 = vsub.f32 %v2978_v29, %v1494_v2  ;;  %1677 = vadd.xlane.f32.xlu1 %v1618_v14 }
 0x20f   : > { %2480 = vpow2.f32 %v1587_v28  ;;  %v1589_v37 = vmul.f32 1.442695, %v3162_v38 }
 0x211   : > { %v2477_v12 = vpop.eup %2476  ;;  %2482 = vpow2.f32 %v1589_v37 }
 0x212   : > { %v1619_v27 = vsel %vm1398_vm0, %v2477_v12, 0.0 }
 0x213   : > { %v2479_v0 = vpop.eup %2478  ;;  %1679 = vadd.xlane.f32.xlu0 %v1619_v27 }
 0x214   : > { %v1620_v50 = vsel %vm1398_vm0, %v2479_v0, 0.0 }
 0x215   : > { %1681 = vadd.xlane.f32.xlu1 %v1620_v50 }
 0x219   : > { %v2481_v47 = vpop.eup %2480 }
 0x21a   : > { %v1621_v29 = vsel %vm1398_vm0, %v2481_v47, 0.0 }
 0x21b   : > { %v2483_v24 = vpop.eup %2482  ;;  %1683 = vadd.xlane.f32.xlu0 %v1621_v29 }
 0x21c   : > { %v1622_v10 = vsel %vm1398_vm0, %v2483_v24, 0.0 }
 0x21d   : > { %1685 = vadd.xlane.f32.xlu1 %v1622_v10 }
 0x230   : > { %v1624_v1 = vpop.xlane.xlu0 %1623 }
 0x231   : > { %2484 = vlog2.f32 %v1624_v1 }
 0x234   : > { %v1626_v3 = vpop.xlane.xlu1 %1625 }
 0x235   : > { %2486 = vlog2.f32 %v1626_v3 }
 0x238   : > { %v1628_v35 = vpop.xlane.xlu0 %1627 }
 0x239   : > { %2488 = vlog2.f32 %v1628_v35 }
 0x23b   : > { %v2485_v21 = vpop.eup %2484 }
 0x23c   : > { %v1688_v15 = vmul.f32 0.6931472, %v2485_v21  ;;  %v1630_v59 = vpop.xlane.xlu1 %1629 }
 0x23d   : > { %2490 = vlog2.f32 %v1630_v59 }
 0x23e   : > { %v1751_v49 = vsub.f32 %v2982_v34, %v1688_v15 }
 0x23f   : > { %v2487_v30 = vpop.eup %2486 }
 0x240   : > { %v1783_v25 = vsel %vm1398_vm0, %v1751_v49, 0.0  ;;  %v1690_v31 = vmul.f32 0.6931472, %v2487_v30  ;;  %v1632_v60 = vpop.xlane.xlu0 %1631 }
 0x241   : > { %1815 = vst [vmem:[%s3177_s20] sm:$0xff] %v1783_v25  ;;  %2492 = vlog2.f32 %v1632_v60 }
 0x242   : > { %v1752_v42 = vsub.f32 %v2986_v40, %v1690_v31  ;;  %v1634_v46 = vpop.xlane.xlu1 %1633 }
 0x243   : > { %v2489_v9 = vpop.eup %2488  ;;  %2494 = vlog2.f32 %v1634_v46 }
 0x244   : > { %v1784_v11 = vsel %vm1398_vm0, %v1752_v42, 0.0  ;;  %v1692_v52 = vmul.f32 0.6931472, %v2489_v9 }
 0x245   : > { %1816 = vst [vmem:[%s3177_s20 + $0x8] sm:$0xff] %v1784_v11 }
 0x246   : > { %v1753_v34 = vsub.f32 %v2990_v43, %v1692_v52 }
 0x247   : > { %v2491_v44 = vpop.eup %2490 }
 0x248   : > { %v1785_v62 = vsel %vm1398_vm0, %v1753_v34, 0.0  ;;  %v1694_v22 = vmul.f32 0.6931472, %v2491_v44  ;;  %v1636_v2 = vpop.xlane.xlu0 %1635 }
 0x249   : > { %1817 = vst [vmem:[%s3177_s20 + $0x10] sm:$0xff] %v1785_v62  ;;  %2496 = vlog2.f32 %v1636_v2 }
 0x24a   : > { %v1754_v40 = vsub.f32 %v2994_v53, %v1694_v22  ;;  %v1638_v14 = vpop.xlane.xlu1 %1637 }
 0x24b   : > { %v2493_v28 = vpop.eup %2492  ;;  %2498 = vlog2.f32 %v1638_v14 }
 0x24c   : > { %v1786_v37 = vsel %vm1398_vm0, %v1754_v40, 0.0  ;;  %v1696_v12 = vmul.f32 0.6931472, %v2493_v28 }
 0x24d   : > { %v2495_v43 = vpop.eup %2494  ;;  %1818 = vst [vmem:[%s3177_s20 + $0x18] sm:$0xff] %v1786_v37 }
 0x24e   : > { %v1755_v27 = vsub.f32 %v3000_v57, %v1696_v12  ;;  %v1698_v0 = vmul.f32 0.6931472, %v2495_v43 }
 0x250   : > { %v1787_v50 = vsel %vm1398_vm0, %v1755_v27, 0.0  ;;  %v1756_v47 = vsub.f32 %v3004_v61, %v1698_v0  ;;  %v1640_v53 = vpop.xlane.xlu0 %1639 }
 0x251   : > { %1819 = vst [vmem:[%s3177_s20 + $0x20] sm:$0xff] %v1787_v50  ;;  %2500 = vlog2.f32 %v1640_v53 }
 0x252   : > { %v1788_v29 = vsel %vm1398_vm0, %v1756_v47, 0.0  ;;  %v1642_v24 = vpop.xlane.xlu1 %1641 }
 0x253   : > { %v2497_v10 = vpop.eup %2496  ;;  %1820 = vst [vmem:[%s3177_s20 + $0x28] sm:$0xff] %v1788_v29  ;;  %2502 = vlog2.f32 %v1642_v24 }
 0x254   : > { %v1700_v1 = vmul.f32 0.6931472, %v2497_v10 }
 0x255   : > { %v2499_v57 = vpop.eup %2498 }
 0x256   : > { %v1757_v3 = vsub.f32 %v3012_v6, %v1700_v1  ;;  %v1702_v35 = vmul.f32 0.6931472, %v2499_v57 }
 0x258   : > { %v1789_v61 = vsel %vm1398_vm0, %v1757_v3, 0.0  ;;  %v1758_v21 = vsub.f32 %v3016_v13, %v1702_v35  ;;  %v1644_v15 = vpop.xlane.xlu0 %1643 }
 0x259   : > { %1821 = vst [vmem:[%s3177_s20 + $0x30] sm:$0xff] %v1789_v61  ;;  %2504 = vlog2.f32 %v1644_v15 }
 0x25a   : > { %v1790_v59 = vsel %vm1398_vm0, %v1758_v21, 0.0  ;;  %v1646_v49 = vpop.xlane.xlu1 %1645 }
 0x25b   : > { %v2501_v30 = vpop.eup %2500  ;;  %1822 = vst [vmem:[%s3177_s20 + $0x38] sm:$0xff] %v1790_v59  ;;  %2506 = vlog2.f32 %v1646_v49 }
 0x25c   : > { %v1704_v25 = vmul.f32 0.6931472, %v2501_v30 }
 0x25d   : > { %v2503_v6 = vpop.eup %2502 }
 0x25e   : > { %v1759_v31 = vsub.f32 %v3024_v26, %v1704_v25  ;;  %v1706_v60 = vmul.f32 0.6931472, %v2503_v6 }
 0x260   : > { %v1791_v13 = vsel %vm1398_vm0, %v1759_v31, 0.0  ;;  %v1760_v42 = vsub.f32 %v3030_v36, %v1706_v60  ;;  %v1648_v46 = vpop.xlane.xlu0 %1647 }
 0x261   : > { %1823 = vst [vmem:[%s3177_s20 + $0x40] sm:$0xff] %v1791_v13  ;;  %2508 = vlog2.f32 %v1648_v46 }
 0x262   : > { %v1792_v9 = vsel %vm1398_vm0, %v1760_v42, 0.0  ;;  %v1650_v11 = vpop.xlane.xlu1 %1649 }
 0x263   : > { %v2505_v52 = vpop.eup %2504  ;;  %1824 = vst [vmem:[%s3177_s20 + $0x48] sm:$0xff] %v1792_v9  ;;  %2510 = vlog2.f32 %v1650_v11 }
 0x264   : > { %v1708_v34 = vmul.f32 0.6931472, %v2505_v52 }
 0x265   : > { %v2507_v26 = vpop.eup %2506 }
 0x266   : > { %v1761_v44 = vsub.f32 %v3036_v48, %v1708_v34  ;;  %v1710_v62 = vmul.f32 0.6931472, %v2507_v26 }
 0x268   : > { %v1793_v36 = vsel %vm1398_vm0, %v1761_v44, 0.0  ;;  %v1762_v22 = vsub.f32 %v3042_v56, %v1710_v62  ;;  %v1652_v2 = vpop.xlane.xlu0 %1651 }
 0x269   : > { %1825 = vst [vmem:[%s3177_s20 + $0x50] sm:$0xff] %v1793_v36  ;;  %2512 = vlog2.f32 %v1652_v2 }
 0x26a   : > { %v1794_v40 = vsel %vm1398_vm0, %v1762_v22, 0.0  ;;  %v1654_v14 = vpop.xlane.xlu1 %1653 }
 0x26b   : > { %v2509_v28 = vpop.eup %2508  ;;  %1826 = vst [vmem:[%s3177_s20 + $0x58] sm:$0xff] %v1794_v40  ;;  %2514 = vlog2.f32 %v1654_v14 }
 0x26c   : > { %v1712_v37 = vmul.f32 0.6931472, %v2509_v28 }
 0x26d   : > { %v2511_v48 = vpop.eup %2510 }
 0x26e   : > { %v1763_v12 = vsub.f32 %v3048_v19, %v1712_v37  ;;  %v1714_v43 = vmul.f32 0.6931472, %v2511_v48 }
 0x270   : > { %v1795_v56 = vsel %vm1398_vm0, %v1763_v12, 0.0  ;;  %v1764_v27 = vsub.f32 %v3054_v5, %v1714_v43  ;;  %v1656_v0 = vpop.xlane.xlu0 %1655 }
 0x271   : > { %1827 = vst [vmem:[%s3177_s20 + $0x60] sm:$0xff] %v1795_v56  ;;  %2516 = vlog2.f32 %v1656_v0 }
 0x272   : > { %v1796_v50 = vsel %vm1398_vm0, %v1764_v27, 0.0  ;;  %v1658_v47 = vpop.xlane.xlu1 %1657 }
 0x273   : > { %v2513_v53 = vpop.eup %2512  ;;  %1828 = vst [vmem:[%s3177_s20 + $0x68] sm:$0xff] %v1796_v50  ;;  %2518 = vlog2.f32 %v1658_v47 }
 0x274   : > { %v1716_v29 = vmul.f32 0.6931472, %v2513_v53 }
 0x275   : > { %v2515_v19 = vpop.eup %2514 }
 0x276   : > { %v1765_v24 = vsub.f32 %v3060_v16, %v1716_v29  ;;  %v1718_v10 = vmul.f32 0.6931472, %v2515_v19 }
 0x278   : > { %v1797_v5 = vsel %vm1398_vm0, %v1765_v24, 0.0  ;;  %v1766_v1 = vsub.f32 %v3066_v20, %v1718_v10  ;;  %v1660_v57 = vpop.xlane.xlu0 %1659 }
 0x279   : > { %1829 = vst [vmem:[%s3177_s20 + $0x70] sm:$0xff] %v1797_v5  ;;  %2520 = vlog2.f32 %v1660_v57 }
 0x27a   : > { %v1798_v3 = vsel %vm1398_vm0, %v1766_v1, 0.0  ;;  %v1662_v35 = vpop.xlane.xlu1 %1661 }
 0x27b   : > { %v2517_v61 = vpop.eup %2516  ;;  %1830 = vst [vmem:[%s3177_s20 + $0x78] sm:$0xff] %v1798_v3  ;;  %2522 = vlog2.f32 %v1662_v35 }
 0x27c   : > { %v1720_v21 = vmul.f32 0.6931472, %v2517_v61 }
 0x27d   : > { %v2519_v16 = vpop.eup %2518 }
 0x27e   : > { %v1767_v15 = vsub.f32 %v3072_v32, %v1720_v21  ;;  %v1722_v59 = vmul.f32 0.6931472, %v2519_v16 }
 0x280   : > { %v1799_v20 = vsel %vm1398_vm0, %v1767_v15, 0.0  ;;  %v1768_v49 = vsub.f32 %v3078_v41, %v1722_v59  ;;  %v1664_v30 = vpop.xlane.xlu0 %1663 }
 0x281   : > { %1831 = vst [vmem:[%s3177_s20 + $0x80] sm:$0xff] %v1799_v20  ;;  %2524 = vlog2.f32 %v1664_v30 }
 0x282   : > { %v1800_v25 = vsel %vm1398_vm0, %v1768_v49, 0.0  ;;  %v1666_v6 = vpop.xlane.xlu1 %1665 }
 0x283   : > { %v2521_v31 = vpop.eup %2520  ;;  %1832 = vst [vmem:[%s3177_s20 + $0x88] sm:$0xff] %v1800_v25  ;;  %2526 = vlog2.f32 %v1666_v6 }
 0x284   : > { %v1724_v60 = vmul.f32 0.6931472, %v2521_v31 }
 0x285   : > { %v2523_v32 = vpop.eup %2522 }
 0x286   : > { %v1769_v13 = vsub.f32 %v3084_v55, %v1724_v60  ;;  %v1726_v42 = vmul.f32 0.6931472, %v2523_v32 }
 0x288   : > { %v1801_v41 = vsel %vm1398_vm0, %v1769_v13, 0.0  ;;  %v1770_v46 = vsub.f32 %v3090_v58, %v1726_v42  ;;  %v1668_v9 = vpop.xlane.xlu0 %1667 }
 0x289   : > { %1833 = vst [vmem:[%s3177_s20 + $0x90] sm:$0xff] %v1801_v41  ;;  %2528 = vlog2.f32 %v1668_v9 }
 0x28a   : > { %v1802_v11 = vsel %vm1398_vm0, %v1770_v46, 0.0  ;;  %v1670_v52 = vpop.xlane.xlu1 %1669 }
 0x28b   : > { %v2525_v34 = vpop.eup %2524  ;;  %1834 = vst [vmem:[%s3177_s20 + $0x98] sm:$0xff] %v1802_v11  ;;  %2530 = vlog2.f32 %v1670_v52 }
 0x28c   : > { %v1728_v26 = vmul.f32 0.6931472, %v2525_v34 }
 0x28d   : > { %v2527_v55 = vpop.eup %2526 }
 0x28e   : > { %v1771_v44 = vsub.f32 %v3096_v4, %v1728_v26  ;;  %v1730_v62 = vmul.f32 0.6931472, %v2527_v55 }
 0x290   : > { %v1803_v58 = vsel %vm1398_vm0, %v1771_v44, 0.0  ;;  %v1772_v36 = vsub.f32 %v3102_v33, %v1730_v62  ;;  %v1672_v22 = vpop.xlane.xlu0 %1671 }
 0x291   : > { %1835 = vst [vmem:[%s3177_s20 + $0xa0] sm:$0xff] %v1803_v58  ;;  %2532 = vlog2.f32 %v1672_v22 }
 0x292   : > { %v1804_v2 = vsel %vm1398_vm0, %v1772_v36, 0.0  ;;  %v1674_v40 = vpop.xlane.xlu1 %1673 }
 0x293   : > { %v2529_v14 = vpop.eup %2528  ;;  %1836 = vst [vmem:[%s3177_s20 + $0xa8] sm:$0xff] %v1804_v2  ;;  %2534 = vlog2.f32 %v1674_v40 }
 0x294   : > { %v1732_v28 = vmul.f32 0.6931472, %v2529_v14 }
 0x295   : > { %v2531_v4 = vpop.eup %2530 }
 0x296   : > { %v1773_v37 = vsub.f32 %v3108_v18, %v1732_v28  ;;  %v1734_v48 = vmul.f32 0.6931472, %v2531_v4 }
 0x298   : > { %v1805_v33 = vsel %vm1398_vm0, %v1773_v37, 0.0  ;;  %v1774_v12 = vsub.f32 %v3114_v54, %v1734_v48  ;;  %v1676_v43 = vpop.xlane.xlu0 %1675 }
 0x299   : > { %1837 = vst [vmem:[%s3177_s20 + $0xb0] sm:$0xff] %v1805_v33  ;;  %2536 = vlog2.f32 %v1676_v43 }
 0x29a   : > { %v1806_v56 = vsel %vm1398_vm0, %v1774_v12, 0.0  ;;  %v1678_v27 = vpop.xlane.xlu1 %1677 }
 0x29b   : > { %v2533_v0 = vpop.eup %2532  ;;  %1838 = vst [vmem:[%s3177_s20 + $0xb8] sm:$0xff] %v1806_v56  ;;  %2538 = vlog2.f32 %v1678_v27 }
 0x29c   : > { %v1736_v50 = vmul.f32 0.6931472, %v2533_v0 }
 0x29d   : > { %v2535_v18 = vpop.eup %2534 }
 0x29e   : > { %v1775_v47 = vsub.f32 %v3120_v45, %v1736_v50  ;;  %v1738_v53 = vmul.f32 0.6931472, %v2535_v18 }
 0x2a0   : > { %v1807_v54 = vsel %vm1398_vm0, %v1775_v47, 0.0  ;;  %v1776_v29 = vsub.f32 %v3126_v51, %v1738_v53  ;;  %v1680_v19 = vpop.xlane.xlu0 %1679 }
 0x2a1   : > { %1839 = vst [vmem:[%s3177_s20 + $0xc0] sm:$0xff] %v1807_v54  ;;  %2540 = vlog2.f32 %v1680_v19 }
 0x2a2   : > { %v1808_v24 = vsel %vm1398_vm0, %v1776_v29, 0.0  ;;  %v1682_v10 = vpop.xlane.xlu1 %1681 }
 0x2a3   : > { %v2537_v5 = vpop.eup %2536  ;;  %1840 = vst [vmem:[%s3177_s20 + $0xc8] sm:$0xff] %v1808_v24  ;;  %2542 = vlog2.f32 %v1682_v10 }
 0x2a4   : > { %v1740_v1 = vmul.f32 0.6931472, %v2537_v5 }
 0x2a5   : > { %v2539_v45 = vpop.eup %2538 }
 0x2a6   : > { %v1777_v57 = vsub.f32 %v3132_v7, %v1740_v1  ;;  %v1742_v3 = vmul.f32 0.6931472, %v2539_v45 }
 0x2a8   : > { %v1809_v51 = vsel %vm1398_vm0, %v1777_v57, 0.0  ;;  %v1778_v35 = vsub.f32 %v3138_v63, %v1742_v3  ;;  %v1684_v61 = vpop.xlane.xlu0 %1683 }
 0x2a9   : > { %1841 = vst [vmem:[%s3177_s20 + $0xd0] sm:$0xff] %v1809_v51  ;;  %2544 = vlog2.f32 %v1684_v61 }
 0x2aa   : > { %v1810_v21 = vsel %vm1398_vm0, %v1778_v35, 0.0  ;;  %v1686_v16 = vpop.xlane.xlu1 %1685 }
 0x2ab   : > { %v2541_v15 = vpop.eup %2540  ;;  %1842 = vst [vmem:[%s3177_s20 + $0xd8] sm:$0xff] %v1810_v21  ;;  %2546 = vlog2.f32 %v1686_v16 }
 0x2ac   : > { %v1744_v59 = vmul.f32 0.6931472, %v2541_v15 }
 0x2ad   : > { %v2543_v7 = vpop.eup %2542 }
 0x2ae   : > { %v1779_v20 = vsub.f32 %v3144_v8, %v1744_v59  ;;  %v1746_v49 = vmul.f32 0.6931472, %v2543_v7 }
 0x2b0   : > { %v1811_v63 = vsel %vm1398_vm0, %v1779_v20, 0.0  ;;  %v1780_v30 = vsub.f32 %v3150_v17, %v1746_v49 }
 0x2b1   : > { %1843 = vst [vmem:[%s3177_s20 + $0xe0] sm:$0xff] %v1811_v63 }
 0x2b2   : > { %v1812_v25 = vsel %vm1398_vm0, %v1780_v30, 0.0 }
 0x2b3   : > { %v2545_v6 = vpop.eup %2544  ;;  %1844 = vst [vmem:[%s3177_s20 + $0xe8] sm:$0xff] %v1812_v25 }
 0x2b4   : > { %v1748_v31 = vmul.f32 0.6931472, %v2545_v6 }
 0x2b5   : > { %v2547_v60 = vpop.eup %2546 }
 0x2b6   : > { %v1781_v32 = vsub.f32 %v3156_v23, %v1748_v31  ;;  %v1750_v13 = vmul.f32 0.6931472, %v2547_v60 }
 0x2b8   : > { %v1813_v8 = vsel %vm1398_vm0, %v1781_v32, 0.0  ;;  %v1782_v42 = vsub.f32 %v3162_v38, %v1750_v13 }
 0x2b9   : > { %1845 = vst [vmem:[%s3177_s20 + $0xf0] sm:$0xff] %v1813_v8 }
 0x2ba   : > { %v1814_v17 = vsel %vm1398_vm0, %v1782_v42, 0.0 }
 0x2bb   : > { %1846 = vst [vmem:[%s3177_s20 + $0xf8] sm:$0xff] %v1814_v17 }
 0x2bc PF: > { %s13_s14 = sadd.s32 1, %s2570_s14   ;;  %s3320_s12 = smov %s2566_s13 }
 0x2bd   : > { %p10_p5 = scmp.ge.s32.totalorder %s13_s14, 4   ;;  %s3321_s13 = smov %s3323_s15 }
 0x2bf   :  { %12 = sbr.rel (!%p10_p5) target bundleno = 2 (0x2), region = 73 }

</bundles_post_ra>
